<compile_context>
chip_gen: v7x
topology: tpu7x:2x2x1
jax: 0.10.0
libtpu: 0.0.40
codegen_flags: <defaults>
</compile_context>

<pallas_src>
import jax
import jax.numpy as jnp
from jax.experimental import pallas as pl
from jax.experimental.pallas import tpu as pltpu

IN_DIM = 32 * 32 * 3   # 3072
HID = 200
OUT_DIM = 10

# lane-aligned padded sizes (multiples of 128)
HID_P = 256
OUT_P = 128


def _round_up(x, m):
    return (x + m - 1) // m * m


def tanhnet2_kernel(x_ref, w1_ref, b1_ref, w2_ref, b2_ref, w3_ref, b3_ref, o_ref):
    # Cast the streamed f32 input to bf16 in-kernel (saves a whole extra HBM
    # pass compared to a wrapper-side convert).  MXU in bf16, accumulate f32.
    x = x_ref[...].astype(jnp.bfloat16)                                # (TB, 3072)
    h1 = jnp.dot(x, w1_ref[...], preferred_element_type=jnp.float32)   # (TB, 256)
    h1 = jnp.tanh(h1 + b1_ref[...])
    h2 = jnp.dot(h1.astype(jnp.bfloat16), w2_ref[...],
                 preferred_element_type=jnp.float32)                   # (TB, 256)
    h2 = jnp.tanh(h2 + b2_ref[...])
    o = jnp.dot(h2.astype(jnp.bfloat16), w3_ref[...],
                preferred_element_type=jnp.float32)                    # (TB, 128)
    o_ref[...] = o + b3_ref[...]


def tanhnet2_forward(x_nchw, params):
    w1, b1, w2, b2, w3, b3 = params
    B = x_nchw.shape[0]
    x = x_nchw.reshape(B, -1)                       # NCHW flatten == torch .view
    if x.dtype != jnp.float32:
        x = x.astype(jnp.float32)

    # Pad rows only when B is not already a multiple of 8 (sublane alignment).
    # Typical batches are multiples of 8, so this is normally a no-op and the
    # old full-array pad-to-TB copy is eliminated entirely.
    B_in = _round_up(B, 8)
    if B_in != B:
        x = jnp.pad(x, ((0, B_in - B), (0, 0)))

    # ---- generation-aware VMEM budget (v7x: 64 MiB / TC, v5e/v6e: 128 MiB).
    try:
        vmem_cap = int(pltpu.get_tpu_info().vmem_capacity_bytes)
    except Exception:
        vmem_cap = 64 << 20  # conservative (v7x per-core)

    tb_max = 2048 if vmem_cap >= (96 << 20) else 1024
    # >= 2 tiles whenever possible so the "parallel" batch axis can shard across
    # both v7x TensorCores; TB never exceeds the (8-aligned) batch.
    TB = max(8, min(tb_max, _round_up(pl.cdiv(B_in, 2), 8)))
    num_tiles = pl.cdiv(B_in, TB)

    # ---- zero-pad weights/biases to lane-aligned shapes; bf16 MXU operands.
    w1p = jnp.pad(w1, ((0, 0), (0, HID_P - HID))).astype(jnp.bfloat16)              # (3072, 256)
    b1p = jnp.pad(b1, ((0, 0), (0, HID_P - HID))).astype(jnp.float32)               # (1, 256)
    w2p = jnp.pad(w2, ((0, HID_P - HID), (0, HID_P - HID))).astype(jnp.bfloat16)    # (256, 256)
    b2p = jnp.pad(b2, ((0, 0), (0, HID_P - HID))).astype(jnp.float32)               # (1, 256)
    w3p = jnp.pad(w3, ((0, HID_P - HID), (0, OUT_P - OUT_DIM))).astype(jnp.bfloat16)  # (256, 128)
    b3p = jnp.pad(b3, ((0, 0), (0, OUT_P - OUT_DIM))).astype(jnp.float32)            # (1, 128)

    # ---- VMEM limit from actual tile sizes, capped by the physical capacity.
    weight_bytes = (IN_DIM * HID_P + HID_P * HID_P + HID_P * OUT_P) * 2 \
                   + (2 * HID_P + OUT_P) * 4
    x_stream = 2 * TB * IN_DIM * 4          # double-buffered f32 input tiles
    out_stream = 2 * TB * OUT_P * 4         # double-buffered f32 output tiles
    act_bytes = 6 * TB * HID_P * 4          # in-kernel intermediates + slack
    vmem_limit = max(x_stream + out_stream + 2 * weight_bytes + act_bytes + (8 << 20),
                     16 << 20)
    vmem_limit = int(min(vmem_limit, (vmem_cap * 3) // 4))

    cost = pl.CostEstimate(
        flops=2 * B_in * (IN_DIM * HID_P + HID_P * HID_P + HID_P * OUT_P),
        transcendentals=2 * B_in * HID_P,
        bytes_accessed=(B_in * IN_DIM * 4 + B_in * OUT_P * 4 + weight_bytes),
    )

    def run(single_buffer_weights):
        def wspec(shape):
            # Constant index_map -> weights stay VMEM-resident; single-buffer
            # them so they don't burn 2x VMEM.
            if single_buffer_weights:
                return pl.BlockSpec(shape, lambda i: (0, 0),
                                    pipeline_mode=pl.Buffered(1))
            return pl.BlockSpec(shape, lambda i: (0, 0))

        return pl.pallas_call(
            tanhnet2_kernel,
            out_shape=jax.ShapeDtypeStruct((B_in, OUT_P), jnp.float32),
            grid=(num_tiles,),
            in_specs=[
                pl.BlockSpec((TB, IN_DIM), lambda i: (i, 0)),   # x: streamed per tile (f32)
                wspec((IN_DIM, HID_P)),                          # weights/biases: resident
                wspec((1, HID_P)),
                wspec((HID_P, HID_P)),
                wspec((1, HID_P)),
                wspec((HID_P, OUT_P)),
                wspec((1, OUT_P)),
            ],
            out_specs=pl.BlockSpec((TB, OUT_P), lambda i: (i, 0)),
            compiler_params=pltpu.CompilerParams(
                dimension_semantics=("parallel",),
                vmem_limit_bytes=vmem_limit,
            ),
            cost_estimate=cost,
        )(x, w1p, b1p, w2p, b2p, w3p, b3p)

    try:
        out_pad = run(True)
    except Exception:
        # pipeline_mode=pl.Buffered(1) not accepted by this jax build — fall
        # back to default double-buffered weight specs (~1.7 MiB extra VMEM).
        out_pad = run(False)

    return out_pad[:B, :OUT_DIM]


def init_params(key):
    # torch.nn.Linear default init: U(-1/sqrt(fan_in), +1/sqrt(fan_in)).
    k1, k2, k3, k4, k5, k6 = jax.random.split(key, 6)

    def lin(kw, kb, fan_in, fan_out):
        bound = 1.0 / jnp.sqrt(jnp.float32(fan_in))
        w = jax.random.uniform(kw, (fan_in, fan_out), jnp.float32, -bound, bound)
        b = jax.random.uniform(kb, (1, fan_out), jnp.float32, -bound, bound)
        return w, b

    w1, b1 = lin(k1, k2, IN_DIM, HID)
    w2, b2 = lin(k3, k4, HID, HID)
    w3, b3 = lin(k5, k6, HID, OUT_DIM)
    return (w1, b1, w2, b2, w3, b3)


def reference_forward_f32(x_nchw, params):
    w1, b1, w2, b2, w3, b3 = params
    x = x_nchw.reshape(x_nchw.shape[0], -1).astype(jnp.float32)
    h1 = jnp.tanh(x @ w1 + b1)
    h2 = jnp.tanh(h1 @ w2 + b2)
    return h2 @ w3 + b3


def reference_forward_bf16(x_nchw, params):
    # mimics the kernel's bf16-operand / f32-accumulate numerics
    w1, b1, w2, b2, w3, b3 = params
    x = x_nchw.reshape(x_nchw.shape[0], -1).astype(jnp.bfloat16)
    h1 = jnp.tanh(jnp.dot(x, w1.astype(jnp.bfloat16),
                          preferred_element_type=jnp.float32) + b1)
    h2 = jnp.tanh(jnp.dot(h1.astype(jnp.bfloat16), w2.astype(jnp.bfloat16),
                          preferred_element_type=jnp.float32) + b2)
    return jnp.dot(h2.astype(jnp.bfloat16), w3.astype(jnp.bfloat16),
                   preferred_element_type=jnp.float32) + b3


if __name__ == "__main__":
    key = jax.random.PRNGKey(0)
    kx, kp = jax.random.split(key)

    B = 2
    x = jax.random.normal(kx, (B, 3, 32, 32), jnp.float32)   # NCHW, 32*32*3 = 3072 inputs
    params = init_params(kp)

    out = tanhnet2_forward(x, params)
    out = jax.block_until_ready(out)
    assert out.shape == (B, OUT_DIM)
    assert bool(jnp.all(jnp.isfinite(out)))

    # tight check vs a reference with identical bf16-operand numerics
    ref_bf16 = reference_forward_bf16(x, params)
    assert jnp.allclose(out, ref_bf16, atol=2e-3, rtol=2e-3)

    # loose check vs exact f32 torch semantics (expected bf16-MXU rounding only)
    ref_f32 = reference_forward_f32(x, params)
    assert jnp.allclose(out, ref_f32, atol=5e-2, rtol=5e-2)

    print("KERNEL_OK")
</pallas_src>

<mosaic_0001>
module attributes {stable_mosaic.version = 11 : i64} {
  func.func @tanhnet2_kernel(%arg0: i32, %arg1: memref<8x3072xf32, #tpu.memory_space<vmem>>, %arg2: memref<3072x256xbf16, #tpu.memory_space<vmem>>, %arg3: memref<1x256xf32, #tpu.memory_space<vmem>>, %arg4: memref<256x256xbf16, #tpu.memory_space<vmem>>, %arg5: memref<1x256xf32, #tpu.memory_space<vmem>>, %arg6: memref<256x128xbf16, #tpu.memory_space<vmem>>, %arg7: memref<1x128xf32, #tpu.memory_space<vmem>>, %arg8: memref<8x128xf32, #tpu.memory_space<vmem>>) attributes {dimension_semantics = [#tpu.dimension_semantics<parallel>], iteration_bounds = array<i64: 1>, scalar_prefetch = 0 : i64, scratch_operands = 0 : i64, tpu.core_type = #tpu.core_type<tc>, window_params = [{transform_indices = @transform_0, window_bounds = array<i64: 8, 3072>}, {pipeline_mode = #tpu.pipeline_mode<synchronous>, transform_indices = @transform_1, window_bounds = array<i64: 3072, 256>}, {pipeline_mode = #tpu.pipeline_mode<synchronous>, transform_indices = @transform_2, window_bounds = array<i64: 1, 256>}, {pipeline_mode = #tpu.pipeline_mode<synchronous>, transform_indices = @transform_3, window_bounds = array<i64: 256, 256>}, {pipeline_mode = #tpu.pipeline_mode<synchronous>, transform_indices = @transform_4, window_bounds = array<i64: 1, 256>}, {pipeline_mode = #tpu.pipeline_mode<synchronous>, transform_indices = @transform_5, window_bounds = array<i64: 256, 128>}, {pipeline_mode = #tpu.pipeline_mode<synchronous>, transform_indices = @transform_6, window_bounds = array<i64: 1, 128>}, {transform_indices = @transform_7, window_bounds = array<i64: 8, 128>}]} {
    %c0 = arith.constant 0 : index
    %c0_0 = arith.constant 0 : index
    %0 = vector.load %arg1[%c0, %c0_0] : memref<8x3072xf32, #tpu.memory_space<vmem>>, vector<8x3072xf32>
    %1 = arith.truncf %0 : vector<8x3072xf32> to vector<8x3072xbf16>
    %c0_1 = arith.constant 0 : index
    %c0_2 = arith.constant 0 : index
    %2 = vector.load %arg2[%c0_1, %c0_2] : memref<3072x256xbf16, #tpu.memory_space<vmem>>, vector<3072x256xbf16>
    %cst = arith.constant dense<0.000000e+00> : vector<8x256xf32>
    %3 = tpu.matmul %1, %2, %cst {dimension_numbers = #tpu.dot_dimension_numbers<[1], [0], [0], [1], [0, 0, 1, 1], [], []>} : vector<8x3072xbf16>, vector<3072x256xbf16>, vector<8x256xf32> -> vector<8x256xf32>
    %c0_3 = arith.constant 0 : index
    %c0_4 = arith.constant 0 : index
    %4 = vector.load %arg3[%c0_3, %c0_4] : memref<1x256xf32, #tpu.memory_space<vmem>>, vector<1x256xf32>
    %5 = vector.broadcast %4 : vector<1x256xf32> to vector<8x256xf32>
    %6 = arith.addf %3, %5 : vector<8x256xf32>
    %7 = math.tanh %6 : vector<8x256xf32>
    %8 = arith.truncf %7 : vector<8x256xf32> to vector<8x256xbf16>
    %c0_5 = arith.constant 0 : index
    %c0_6 = arith.constant 0 : index
    %9 = vector.load %arg4[%c0_5, %c0_6] : memref<256x256xbf16, #tpu.memory_space<vmem>>, vector<256x256xbf16>
    %cst_7 = arith.constant dense<0.000000e+00> : vector<8x256xf32>
    %10 = tpu.matmul %8, %9, %cst_7 {dimension_numbers = #tpu.dot_dimension_numbers<[1], [0], [0], [1], [0, 0, 1, 1], [], []>} : vector<8x256xbf16>, vector<256x256xbf16>, vector<8x256xf32> -> vector<8x256xf32>
    %c0_8 = arith.constant 0 : index
    %c0_9 = arith.constant 0 : index
    %11 = vector.load %arg5[%c0_8, %c0_9] : memref<1x256xf32, #tpu.memory_space<vmem>>, vector<1x256xf32>
    %12 = vector.broadcast %11 : vector<1x256xf32> to vector<8x256xf32>
    %13 = arith.addf %10, %12 : vector<8x256xf32>
    %14 = math.tanh %13 : vector<8x256xf32>
    %15 = arith.truncf %14 : vector<8x256xf32> to vector<8x256xbf16>
    %c0_10 = arith.constant 0 : index
    %c0_11 = arith.constant 0 : index
    %16 = vector.load %arg6[%c0_10, %c0_11] : memref<256x128xbf16, #tpu.memory_space<vmem>>, vector<256x128xbf16>
    %cst_12 = arith.constant dense<0.000000e+00> : vector<8x128xf32>
    %17 = tpu.matmul %15, %16, %cst_12 {dimension_numbers = #tpu.dot_dimension_numbers<[1], [0], [0], [1], [0, 0, 1, 1], [], []>} : vector<8x256xbf16>, vector<256x128xbf16>, vector<8x128xf32> -> vector<8x128xf32>
    %c0_13 = arith.constant 0 : index
    %c0_14 = arith.constant 0 : index
    %18 = vector.load %arg7[%c0_13, %c0_14] : memref<1x128xf32, #tpu.memory_space<vmem>>, vector<1x128xf32>
    %19 = vector.broadcast %18 : vector<1x128xf32> to vector<8x128xf32>
    %20 = arith.addf %17, %19 : vector<8x128xf32>
    %c0_15 = arith.constant 0 : index
    %c0_16 = arith.constant 0 : index
    %21 = vector.load %arg8[%c0_15, %c0_16] : memref<8x128xf32, #tpu.memory_space<vmem>>, vector<8x128xf32>
    tpu.vector_store %arg8[%c0_15, %c0_16], %20 {strides = array<i32>} : memref<8x128xf32, #tpu.memory_space<vmem>>, vector<8x128xf32>,
    return
  }
  func.func @transform_0(%arg0: i32) -> (i32, i32) {
    %c0_i32 = arith.constant 0 : i32
    %c0_i32_0 = arith.constant 0 : i32
    return %arg0, %c0_i32 : i32, i32
  }
  func.func @transform_1(%arg0: i32) -> (i32, i32) {
    %c0_i32 = arith.constant 0 : i32
    %c0_i32_0 = arith.constant 0 : i32
    %c0_i32_1 = arith.constant 0 : i32
    return %c0_i32, %c0_i32_0 : i32, i32
  }
  func.func @transform_2(%arg0: i32) -> (i32, i32) {
    %c0_i32 = arith.constant 0 : i32
    %c0_i32_0 = arith.constant 0 : i32
    %c0_i32_1 = arith.constant 0 : i32
    return %c0_i32, %c0_i32_0 : i32, i32
  }
  func.func @transform_3(%arg0: i32) -> (i32, i32) {
    %c0_i32 = arith.constant 0 : i32
    %c0_i32_0 = arith.constant 0 : i32
    %c0_i32_1 = arith.constant 0 : i32
    return %c0_i32, %c0_i32_0 : i32, i32
  }
  func.func @transform_4(%arg0: i32) -> (i32, i32) {
    %c0_i32 = arith.constant 0 : i32
    %c0_i32_0 = arith.constant 0 : i32
    %c0_i32_1 = arith.constant 0 : i32
    return %c0_i32, %c0_i32_0 : i32, i32
  }
  func.func @transform_5(%arg0: i32) -> (i32, i32) {
    %c0_i32 = arith.constant 0 : i32
    %c0_i32_0 = arith.constant 0 : i32
    %c0_i32_1 = arith.constant 0 : i32
    return %c0_i32, %c0_i32_0 : i32, i32
  }
  func.func @transform_6(%arg0: i32) -> (i32, i32) {
    %c0_i32 = arith.constant 0 : i32
    %c0_i32_0 = arith.constant 0 : i32
    %c0_i32_1 = arith.constant 0 : i32
    return %c0_i32, %c0_i32_0 : i32, i32
  }
  func.func @transform_7(%arg0: i32) -> (i32, i32) {
    %c0_i32 = arith.constant 0 : i32
    %c0_i32_0 = arith.constant 0 : i32
    return %arg0, %c0_i32 : i32, i32
  }
}

module attributes {stable_mosaic.version = 11 : i64} {
  func.func @tanhnet2_kernel(%arg0: i32, %arg1: memref<8x3072xf32, #tpu.memory_space<vmem>>, %arg2: memref<3072x256xbf16, #tpu.memory_space<vmem>>, %arg3: memref<1x256xf32, #tpu.memory_space<vmem>>, %arg4: memref<256x256xbf16, #tpu.memory_space<vmem>>, %arg5: memref<1x256xf32, #tpu.memory_space<vmem>>, %arg6: memref<256x128xbf16, #tpu.memory_space<vmem>>, %arg7: memref<1x128xf32, #tpu.memory_space<vmem>>, %arg8: memref<8x128xf32, #tpu.memory_space<vmem>>) attributes {dimension_semantics = [#tpu.dimension_semantics<parallel>], iteration_bounds = array<i64: 1>, scalar_prefetch = 0 : i64, scratch_operands = 0 : i64, tpu.core_type = #tpu.core_type<tc>, window_params = [{transform_indices = @transform_0, window_bounds = array<i64: 8, 3072>}, {pipeline_mode = #tpu.pipeline_mode<synchronous>, transform_indices = @transform_1, window_bounds = array<i64: 3072, 256>}, {pipeline_mode = #tpu.pipeline_mode<synchronous>, transform_indices = @transform_2, window_bounds = array<i64: 1, 256>}, {pipeline_mode = #tpu.pipeline_mode<synchronous>, transform_indices = @transform_3, window_bounds = array<i64: 256, 256>}, {pipeline_mode = #tpu.pipeline_mode<synchronous>, transform_indices = @transform_4, window_bounds = array<i64: 1, 256>}, {pipeline_mode = #tpu.pipeline_mode<synchronous>, transform_indices = @transform_5, window_bounds = array<i64: 256, 128>}, {pipeline_mode = #tpu.pipeline_mode<synchronous>, transform_indices = @transform_6, window_bounds = array<i64: 1, 128>}, {transform_indices = @transform_7, window_bounds = array<i64: 8, 128>}]} {
    %c0 = arith.constant 0 : index
    %c0_0 = arith.constant 0 : index
    %0 = vector.load %arg1[%c0, %c0_0] : memref<8x3072xf32, #tpu.memory_space<vmem>>, vector<8x3072xf32>
    %1 = arith.truncf %0 : vector<8x3072xf32> to vector<8x3072xbf16>
    %c0_1 = arith.constant 0 : index
    %c0_2 = arith.constant 0 : index
    %2 = vector.load %arg2[%c0_1, %c0_2] : memref<3072x256xbf16, #tpu.memory_space<vmem>>, vector<3072x256xbf16>
    %cst = arith.constant dense<0.000000e+00> : vector<8x256xf32>
    %3 = tpu.matmul %1, %2, %cst {dimension_numbers = #tpu.dot_dimension_numbers<[1], [0], [0], [1], [0, 0, 1, 1], [], []>} : vector<8x3072xbf16>, vector<3072x256xbf16>, vector<8x256xf32> -> vector<8x256xf32>
    %c0_3 = arith.constant 0 : index
    %c0_4 = arith.constant 0 : index
    %4 = vector.load %arg3[%c0_3, %c0_4] : memref<1x256xf32, #tpu.memory_space<vmem>>, vector<1x256xf32>
    %5 = vector.broadcast %4 : vector<1x256xf32> to vector<8x256xf32>
    %6 = arith.addf %3, %5 : vector<8x256xf32>
    %7 = math.tanh %6 : vector<8x256xf32>
    %8 = arith.truncf %7 : vector<8x256xf32> to vector<8x256xbf16>
    %c0_5 = arith.constant 0 : index
    %c0_6 = arith.constant 0 : index
    %9 = vector.load %arg4[%c0_5, %c0_6] : memref<256x256xbf16, #tpu.memory_space<vmem>>, vector<256x256xbf16>
    %cst_7 = arith.constant dense<0.000000e+00> : vector<8x256xf32>
    %10 = tpu.matmul %8, %9, %cst_7 {dimension_numbers = #tpu.dot_dimension_numbers<[1], [0], [0], [1], [0, 0, 1, 1], [], []>} : vector<8x256xbf16>, vector<256x256xbf16>, vector<8x256xf32> -> vector<8x256xf32>
    %c0_8 = arith.constant 0 : index
    %c0_9 = arith.constant 0 : index
    %11 = vector.load %arg5[%c0_8, %c0_9] : memref<1x256xf32, #tpu.memory_space<vmem>>, vector<1x256xf32>
    %12 = vector.broadcast %11 : vector<1x256xf32> to vector<8x256xf32>
    %13 = arith.addf %10, %12 : vector<8x256xf32>
    %14 = math.tanh %13 : vector<8x256xf32>
    %15 = arith.truncf %14 : vector<8x256xf32> to vector<8x256xbf16>
    %c0_10 = arith.constant 0 : index
    %c0_11 = arith.constant 0 : index
    %16 = vector.load %arg6[%c0_10, %c0_11] : memref<256x128xbf16, #tpu.memory_space<vmem>>, vector<256x128xbf16>
    %cst_12 = arith.constant dense<0.000000e+00> : vector<8x128xf32>
    %17 = tpu.matmul %15, %16, %cst_12 {dimension_numbers = #tpu.dot_dimension_numbers<[1], [0], [0], [1], [0, 0, 1, 1], [], []>} : vector<8x256xbf16>, vector<256x128xbf16>, vector<8x128xf32> -> vector<8x128xf32>
    %c0_13 = arith.constant 0 : index
    %c0_14 = arith.constant 0 : index
    %18 = vector.load %arg7[%c0_13, %c0_14] : memref<1x128xf32, #tpu.memory_space<vmem>>, vector<1x128xf32>
    %19 = vector.broadcast %18 : vector<1x128xf32> to vector<8x128xf32>
    %20 = arith.addf %17, %19 : vector<8x128xf32>
    %c0_15 = arith.constant 0 : index
    %c0_16 = arith.constant 0 : index
    %21 = vector.load %arg8[%c0_15, %c0_16] : memref<8x128xf32, #tpu.memory_space<vmem>>, vector<8x128xf32>
    tpu.vector_store %arg8[%c0_15, %c0_16], %20 {strides = array<i32>} : memref<8x128xf32, #tpu.memory_space<vmem>>, vector<8x128xf32>,
    return
  }
  func.func @transform_0(%arg0: i32) -> (i32, i32) {
    %c0_i32 = arith.constant 0 : i32
    %c0_i32_0 = arith.constant 0 : i32
    return %arg0, %c0_i32 : i32, i32
  }
  func.func @transform_1(%arg0: i32) -> (i32, i32) {
    %c0_i32 = arith.constant 0 : i32
    %c0_i32_0 = arith.constant 0 : i32
    %c0_i32_1 = arith.constant 0 : i32
    return %c0_i32, %c0_i32_0 : i32, i32
  }
  func.func @transform_2(%arg0: i32) -> (i32, i32) {
    %c0_i32 = arith.constant 0 : i32
    %c0_i32_0 = arith.constant 0 : i32
    %c0_i32_1 = arith.constant 0 : i32
    return %c0_i32, %c0_i32_0 : i32, i32
  }
  func.func @transform_3(%arg0: i32) -> (i32, i32) {
    %c0_i32 = arith.constant 0 : i32
    %c0_i32_0 = arith.constant 0 : i32
    %c0_i32_1 = arith.constant 0 : i32
    return %c0_i32, %c0_i32_0 : i32, i32
  }
  func.func @transform_4(%arg0: i32) -> (i32, i32) {
    %c0_i32 = arith.constant 0 : i32
    %c0_i32_0 = arith.constant 0 : i32
    %c0_i32_1 = arith.constant 0 : i32
    return %c0_i32, %c0_i32_0 : i32, i32
  }
  func.func @transform_5(%arg0: i32) -> (i32, i32) {
    %c0_i32 = arith.constant 0 : i32
    %c0_i32_0 = arith.constant 0 : i32
    %c0_i32_1 = arith.constant 0 : i32
    return %c0_i32, %c0_i32_0 : i32, i32
  }
  func.func @transform_6(%arg0: i32) -> (i32, i32) {
    %c0_i32 = arith.constant 0 : i32
    %c0_i32_0 = arith.constant 0 : i32
    %c0_i32_1 = arith.constant 0 : i32
    return %c0_i32, %c0_i32_0 : i32, i32
  }
  func.func @transform_7(%arg0: i32) -> (i32, i32) {
    %c0_i32 = arith.constant 0 : i32
    %c0_i32_0 = arith.constant 0 : i32
    return %arg0, %c0_i32 : i32, i32
  }
}

</mosaic_0001>

<bundles_post_ra>
// kernel: tpu_custom_call.1
= control target key start
LH: loop header
LB: loop body
LE: loop exit
PB: predicated region body
PF: predicated region fallthrough
CT: control target
= control target key end

     0   :  { %12 = vsyncpa [#allocation3], 0  ;;  %s4911_s0 = inlined_call_operand.hbm [shape: f32[8,3072], index: 0, kind: input, shape index: {}]   ;;  %s4912_s1 = inlined_call_operand.hbm [shape: bf16[3072,256], index: 1, kind: input, shape index: {}]   ;;  %s4913_s2 = inlined_call_operand.hbm [shape: f32[1,256], index: 2, kind: input, shape index: {}]   ;;  %s4914_s3 = inlined_call_operand.hbm [shape: bf16[256,256], index: 3, kind: input, shape index: {}]   ;;  %s4915_s4 = inlined_call_operand.hbm [shape: f32[1,256], index: 4, kind: input, shape index: {}]   ;;  %s4916_s5 = inlined_call_operand.hbm [shape: bf16[256,128], index: 5, kind: input, shape index: {}]   ;;  %s4917_s6 = inlined_call_operand.hbm [shape: f32[1,128], index: 6, kind: input, shape index: {}]   ;;  %s4918_s7 = inlined_call_operand.hbm [shape: f32[8,128], index: 7, kind: output, shape index: {}]  }
   0x1   :  { %13 = vsyncpa [#allocation6], 0 }
   0x2   :  { %14 = vsyncpa [#allocation9], 0 }
   0x3   :  { %15 = vsyncpa [#allocation12], 0 }
   0x4   :  { %16 = vsyncpa [#allocation4], 0  ;;  %s4763_s24 = smov [#allocation5]   ;;  %s4577_s28 = scalar_lea.hbm %s4912_s1, 49152 }
   0x5   :  { %s32_s25 = sshll.u32 %s4763_s24, 4  ;;  %p4578_p0 = scmp.ne.s32.totalorder %s4912_s1, %s4577_s28  ;;  %s33_s25 = int_to_ptr.vmem [resolvable:$true] %s32_s25 }
   0x6   :  { %p4581_p1 = scmp.lt.u32.totalorder %s4577_s28, %s4912_s1 }
   0x8   :  { %p4583_p2 = pnand %p4581_p1, %p4578_p0 }
   0xa   :  { %4586 = shalt.err (!%p4583_p2)
}
   0xb   :  { %s4587_s10 = scalar_lea.vmem %s33_s25, 49152  ;;  %p4592_p4 = scmp.lt.s32.totalorder %s33_s25, %s33_s25 }
   0xc   :  { %p4588_p3 = scmp.ne.s32.totalorder %s33_s25, %s4587_s10  ;;  %p4593_p5 = scmp.lt.s32.totalorder %s4587_s10, %s4587_s10 }
   0xe   :  { %p4594_p6 = por %p4593_p5, %p4592_p4 }
  0x10   :  { %p4595_p7 = pnand %p4594_p6, %p4588_p3 }
  0x12   :  { %4598 = shalt.err (!%p4595_p7)
}
  0x13   :  { %s4764_s11 = smov 128   ;;  %s4765_s12 = smov 8  }
  0x14   :  { %38 = dma.hbm_to_vmem [thread:$0]  %s4912_s1, 49152, %s33_s25, [#allocation6], %s4764_s11, %s4764_s11, %s4765_s12  }
  0x15   :  { %s4766_s15 = smov [#allocation8]   ;;  %s4767_s17 = smov [#allocation11]  }
  0x16   :  { %s54_s16 = sshll.u32 %s4766_s15, 4  ;;  %s76_s18 = sshll.u32 %s4767_s17, 4  ;;  %s55_s16 = int_to_ptr.vmem [resolvable:$true] %s54_s16  ;;  %s77_s18 = int_to_ptr.vmem [resolvable:$true] %s76_s18 }
  0x17   :  { %s4599_s21 = scalar_lea.hbm %s4914_s3, 4096 }
  0x18   :  { %p4600_p8 = scmp.ne.s32.totalorder %s4914_s3, %s4599_s21  ;;  %p4603_p9 = scmp.lt.u32.totalorder %s4599_s21, %s4914_s3 }
  0x1a   :  { %p4605_p10 = pnand %p4603_p9, %p4600_p8 }
  0x1c   :  { %4608 = shalt.err (!%p4605_p10)
}
  0x1d   :  { %s4609_s1 = scalar_lea.vmem %s55_s16, 4096  ;;  %p4614_p12 = scmp.lt.s32.totalorder %s55_s16, %s55_s16 }
  0x1e   :  { %p4610_p11 = scmp.ne.s32.totalorder %s55_s16, %s4609_s1  ;;  %p4615_p13 = scmp.lt.s32.totalorder %s4609_s1, %s4609_s1 }
  0x20   :  { %p4616_p0 = por %p4615_p13, %p4614_p12 }
  0x22   :  { %p4617_p1 = pnand %p4616_p0, %p4610_p11 }
  0x24   :  { %4620 = shalt.err (!%p4617_p1)
}
  0x25   :  { %60 = dma.hbm_to_vmem [thread:$0]  %s4914_s3, 4096, %s55_s16, [#allocation9], %s4764_s11, %s4764_s11, %s4765_s12  }
  0x26   :  { %s4621_s30 = scalar_lea.hbm %s4916_s5, 2048 }
  0x27   :  { %p4622_p2 = scmp.ne.s32.totalorder %s4916_s5, %s4621_s30  ;;  %p4625_p3 = scmp.lt.u32.totalorder %s4621_s30, %s4916_s5 }
  0x29   :  { %p4627_p4 = pnand %p4625_p3, %p4622_p2 }
  0x2b   :  { %4630 = shalt.err (!%p4627_p4)
}
  0x2c   :  { %s4631_s14 = scalar_lea.vmem %s77_s18, 2048  ;;  %p4636_p6 = scmp.lt.s32.totalorder %s77_s18, %s77_s18 }
  0x2d   :  { %p4632_p5 = scmp.ne.s32.totalorder %s77_s18, %s4631_s14  ;;  %p4637_p7 = scmp.lt.s32.totalorder %s4631_s14, %s4631_s14 }
  0x2f   :  { %p4638_p8 = por %p4637_p7, %p4636_p6 }
  0x31   :  { %p4639_p9 = pnand %p4638_p8, %p4632_p5 }
  0x33   :  { %4642 = shalt.err (!%p4639_p9)
}
  0x34   :  { %s4768_s3 = smov 64   ;;  %s4769_s11 = smov 4  }
  0x35   :  { %82 = dma.hbm_to_vmem [thread:$0]  %s4916_s5, 2048, %s77_s18, [#allocation12], %s4768_s3, %s4768_s3, %s4769_s11  }
  0x36   :  { %s4770_s16 = smov [#allocation2]   ;;  %s4771_s19 = smov [#allocation7]  }
  0x37   :  { %s23_s17 = sshll.u32 %s4770_s16, 4  ;;  %s45_s20 = sshll.u32 %s4771_s19, 4  ;;  %s24_s17 = int_to_ptr.vmem [resolvable:$true] %s23_s17  ;;  %s46_s20 = int_to_ptr.vmem [resolvable:$true] %s45_s20 }
  0x38   :  { %s4643_s23 = scalar_lea.hbm %s4911_s0, 3072 }
  0x39   :  { %p4644_p10 = scmp.ne.s32.totalorder %s4911_s0, %s4643_s23  ;;  %p4647_p11 = scmp.lt.u32.totalorder %s4643_s23, %s4911_s0 }
  0x3b   :  { %p4649_p12 = pnand %p4647_p11, %p4644_p10 }
  0x3d   :  { %4652 = shalt.err (!%p4649_p12)
}
  0x3e   :  { %s4653_s5 = scalar_lea.vmem %s24_s17, 3072  ;;  %p4658_p0 = scmp.lt.s32.totalorder %s24_s17, %s24_s17 }
  0x3f   :  { %p4654_p13 = scmp.ne.s32.totalorder %s24_s17, %s4653_s5  ;;  %p4659_p1 = scmp.lt.s32.totalorder %s4653_s5, %s4653_s5 }
  0x41   :  { %p4660_p2 = por %p4659_p1, %p4658_p0 }
  0x43   :  { %p4661_p3 = pnand %p4660_p2, %p4654_p13 }
  0x45   :  { %4664 = shalt.err (!%p4661_p3)
}
  0x46   :  { %26 = dma.hbm_to_vmem [thread:$0]  %s4911_s0, 3072, %s24_s17, [#allocation3]  }
  0x47   :  { %s4665_s30 = scalar_lea.hbm %s4913_s2, 32 }
  0x48   :  { %p4666_p4 = scmp.ne.s32.totalorder %s4913_s2, %s4665_s30  ;;  %p4669_p5 = scmp.lt.u32.totalorder %s4665_s30, %s4913_s2 }
  0x4a   :  { %p4671_p6 = pnand %p4669_p5, %p4666_p4 }
  0x4c   :  { %4674 = shalt.err (!%p4671_p6)
}
  0x4d   :  { %s4675_s14 = scalar_lea.vmem %s46_s20, 32  ;;  %p4680_p8 = scmp.lt.s32.totalorder %s46_s20, %s46_s20 }
  0x4e   :  { %p4676_p7 = scmp.ne.s32.totalorder %s46_s20, %s4675_s14  ;;  %p4681_p9 = scmp.lt.s32.totalorder %s4675_s14, %s4675_s14 }
  0x50   :  { %p4682_p10 = por %p4681_p9, %p4680_p8 }
  0x52   :  { %p4683_p11 = pnand %p4682_p10, %p4676_p7 }
  0x54   :  { %4686 = shalt.err (!%p4683_p11)
}
  0x55   :  { %48 = dma.hbm_to_vmem [thread:$0]  %s4913_s2, 32, %s46_s20, [#allocation6]  }
  0x56   :  { %s4772_s11 = smov [#allocation10]   ;;  %s4773_s15 = smov [#allocation13]  }
  0x57   :  { %s67_s12 = sshll.u32 %s4772_s11, 4  ;;  %s89_s16 = sshll.u32 %s4773_s15, 4  ;;  %s68_s12 = int_to_ptr.vmem [resolvable:$true] %s67_s12  ;;  %s90_s16 = int_to_ptr.vmem [resolvable:$true] %s89_s16 }
  0x58   :  { %s4687_s21 = scalar_lea.hbm %s4915_s4, 32 }
  0x59   :  { %p4688_p12 = scmp.ne.s32.totalorder %s4915_s4, %s4687_s21  ;;  %p4691_p13 = scmp.lt.u32.totalorder %s4687_s21, %s4915_s4 }
  0x5b   :  { %p4693_p0 = pnand %p4691_p13, %p4688_p12 }
  0x5d   :  { %4696 = shalt.err (!%p4693_p0)
}
  0x5e   :  { %s4697_s2 = scalar_lea.vmem %s68_s12, 32  ;;  %p4702_p2 = scmp.lt.s32.totalorder %s68_s12, %s68_s12 }
  0x5f   :  { %p4698_p1 = scmp.ne.s32.totalorder %s68_s12, %s4697_s2  ;;  %p4703_p3 = scmp.lt.s32.totalorder %s4697_s2, %s4697_s2 }
  0x61   :  { %p4704_p4 = por %p4703_p3, %p4702_p2 }
  0x63   :  { %p4705_p5 = pnand %p4704_p4, %p4698_p1 }
  0x65   :  { %4708 = shalt.err (!%p4705_p5)
}
  0x66   :  { %70 = dma.hbm_to_vmem [thread:$0]  %s4915_s4, 32, %s68_s12, [#allocation9]  }
  0x67   :  { %s4709_s18 = scalar_lea.hbm %s4917_s6, 16 }
  0x68   :  { %p4710_p6 = scmp.ne.s32.totalorder %s4917_s6, %s4709_s18  ;;  %p4713_p7 = scmp.lt.u32.totalorder %s4709_s18, %s4917_s6 }
  0x6a   :  { %p4715_p8 = pnand %p4713_p7, %p4710_p6 }
  0x6c   :  { %4718 = shalt.err (!%p4715_p8)
}
  0x6d   :  { %s4719_s8 = scalar_lea.vmem %s90_s16, 16  ;;  %s4723_s9 = scalar_lea.vmem %s90_s16, 32 }
  0x6e   :  { %p4720_p9 = scmp.ne.s32.totalorder %s90_s16, %s4719_s8  ;;  %p4724_p10 = scmp.lt.s32.totalorder %s90_s16, %s90_s16 }
  0x6f   :  { %p4725_p11 = scmp.lt.s32.totalorder %s4723_s9, %s4719_s8 }
  0x71   :  { %p4726_p12 = por %p4725_p11, %p4724_p10 }
  0x73   :  { %p4727_p13 = pnand %p4726_p12, %p4720_p9 }
  0x75   :  { %4730 = shalt.err (!%p4727_p13)
}
  0x76   :  { %92 = dma.hbm_to_vmem [thread:$0]  %s4917_s6, 16, %s90_s16, [#allocation12]  }
  0x77   :  { %4753 = dma.done.wait [#allocation3], 3072  }
  0x78   :  { %4754 = vsyncadd [#allocation3], 4294964224 }
  0x79   :  { %4755 = dma.done.wait [#allocation6], 49184  }
  0x7a   :  { %4756 = vsyncadd [#allocation6], 4294918112 }
  0x7b   :  { %4757 = dma.done.wait [#allocation9], 4128  }
  0x7c   :  { %4758 = vsyncadd [#allocation9], 4294963168 }
  0x7d   :  { %4759 = dma.done.wait [#allocation12], 2064  }
  0x7e   :  { %4760 = vsyncadd [#allocation12], 4294965232  ;;  %v3929_v0 = vld [vmem:[#allocation5 + $0x4] ss:$8 sps:$4 sm:$0xff]   ;;  %v3933_v2 = vld [vmem:[#allocation5] ss:$8 sps:$4 sm:$0xff]  }
  0x7f   :  { %v3931_v1 = vld [vmem:[#allocation5 + $0x504] ss:$8 sps:$4 sm:$0xff]   ;;  %2479 = vmatprep.subr.bf16.mxu1 %v3929_v0  ;;  %v3934_v3 = vld [vmem:[#allocation5 + $0x500] ss:$8 sps:$4 sm:$0xff]   ;;  %v3935_v4 = vld [vmem:[#allocation5 + $0x14] ss:$8 sps:$4 sm:$0xff]  }
  0x80   :  { %2684 = vmatprep.subr.bf16.mxu0 %v3931_v1  ;;  %2480 = vmatpush1.bf16.msra.mxu1 %v3933_v2  ;;  %v3937_v5 = vld [vmem:[#allocation5 + $0x514] ss:$8 sps:$4 sm:$0xff]   ;;  %v3939_v6 = vld [vmem:[#allocation5 + $0x10] ss:$8 sps:$4 sm:$0xff]   ;;  %v3941_v8 = vld [vmem:[#allocation5 + $0x24] ss:$8 sps:$4 sm:$0xff]  }
  0x81   :  { %2685 = vmatpush1.bf16.msra.mxu0 %v3934_v3  ;;  %2481 = vmatprep.subr.bf16.mxu1 %v3935_v4  ;;  %v3940_v7 = vld [vmem:[#allocation5 + $0x510] ss:$8 sps:$4 sm:$0xff]   ;;  %v3943_v9 = vld [vmem:[#allocation5 + $0x524] ss:$8 sps:$4 sm:$0xff]   ;;  %v3945_v10 = vld [vmem:[#allocation5 + $0x20] ss:$8 sps:$4 sm:$0xff]  }
  0x82   :  { %2686 = vmatprep.subr.bf16.mxu0 %v3937_v5  ;;  %v3946_v11 = vld [vmem:[#allocation5 + $0x520] ss:$8 sps:$4 sm:$0xff]   ;;  %v3947_v12 = vld [vmem:[#allocation5 + $0x34] ss:$8 sps:$4 sm:$0xff]   ;;  %v3951_v14 = vld [vmem:[#allocation5 + $0x30] ss:$8 sps:$4 sm:$0xff]  }
  0x83   :  { %v3949_v13 = vld [vmem:[#allocation5 + $0x534] ss:$8 sps:$4 sm:$0xff]   ;;  %v3952_v15 = vld [vmem:[#allocation5 + $0x530] ss:$8 sps:$4 sm:$0xff]   ;;  %v3953_v16 = vld [vmem:[#allocation5 + $0x44] ss:$8 sps:$4 sm:$0xff]  }
  0x84   :  { %2482 = vmatpush1.bf16.msra.mxu1 %v3939_v6  ;;  %v3955_v17 = vld [vmem:[#allocation5 + $0x544] ss:$8 sps:$4 sm:$0xff]   ;;  %v3957_v18 = vld [vmem:[#allocation5 + $0x40] ss:$8 sps:$4 sm:$0xff]   ;;  %v3959_v20 = vld [vmem:[#allocation5 + $0x54] ss:$8 sps:$4 sm:$0xff]  }
  0x85   :  { %2687 = vmatpush1.bf16.msra.mxu0 %v3940_v7  ;;  %2483 = vmatprep.subr.bf16.mxu1 %v3941_v8  ;;  %v3958_v19 = vld [vmem:[#allocation5 + $0x540] ss:$8 sps:$4 sm:$0xff]   ;;  %v3961_v21 = vld [vmem:[#allocation5 + $0x554] ss:$8 sps:$4 sm:$0xff]   ;;  %v3963_v22 = vld [vmem:[#allocation5 + $0x50] ss:$8 sps:$4 sm:$0xff]  }
  0x86   :  { %2688 = vmatprep.subr.bf16.mxu0 %v3943_v9  ;;  %v3964_v23 = vld [vmem:[#allocation5 + $0x550] ss:$8 sps:$4 sm:$0xff]   ;;  %v3965_v24 = vld [vmem:[#allocation5 + $0x64] ss:$8 sps:$4 sm:$0xff]   ;;  %v3969_v26 = vld [vmem:[#allocation5 + $0x60] ss:$8 sps:$4 sm:$0xff]  }
  0x87   :  { %v3967_v25 = vld [vmem:[#allocation5 + $0x564] ss:$8 sps:$4 sm:$0xff]   ;;  %v3970_v27 = vld [vmem:[#allocation5 + $0x560] ss:$8 sps:$4 sm:$0xff]   ;;  %v3971_v28 = vld [vmem:[#allocation5 + $0x74] ss:$8 sps:$4 sm:$0xff]  }
  0x88   :  { %2484 = vmatpush1.bf16.msra.mxu1 %v3945_v10  ;;  %v3973_v29 = vld [vmem:[#allocation5 + $0x574] ss:$8 sps:$4 sm:$0xff]   ;;  %v3975_v30 = vld [vmem:[#allocation5 + $0x70] ss:$8 sps:$4 sm:$0xff]   ;;  %v3977_v32 = vld [vmem:[#allocation5 + $0x84] ss:$8 sps:$4 sm:$0xff]  }
  0x89   :  { %2689 = vmatpush1.bf16.msra.mxu0 %v3946_v11  ;;  %2485 = vmatprep.subr.bf16.mxu1 %v3947_v12  ;;  %v3976_v31 = vld [vmem:[#allocation5 + $0x570] ss:$8 sps:$4 sm:$0xff]   ;;  %v3979_v33 = vld [vmem:[#allocation5 + $0x584] ss:$8 sps:$4 sm:$0xff]   ;;  %v3981_v34 = vld [vmem:[#allocation5 + $0x80] ss:$8 sps:$4 sm:$0xff]  }
  0x8a   :  { %2690 = vmatprep.subr.bf16.mxu0 %v3949_v13  ;;  %v3982_v35 = vld [vmem:[#allocation5 + $0x580] ss:$8 sps:$4 sm:$0xff]   ;;  %v3983_v36 = vld [vmem:[#allocation5 + $0x94] ss:$8 sps:$4 sm:$0xff]   ;;  %v3987_v38 = vld [vmem:[#allocation5 + $0x90] ss:$8 sps:$4 sm:$0xff]  }
  0x8b   :  { %v3985_v37 = vld [vmem:[#allocation5 + $0x594] ss:$8 sps:$4 sm:$0xff]   ;;  %v3988_v39 = vld [vmem:[#allocation5 + $0x590] ss:$8 sps:$4 sm:$0xff]   ;;  %v3989_v40 = vld [vmem:[#allocation5 + $0xa4] ss:$8 sps:$4 sm:$0xff]  }
  0x8c   :  { %2486 = vmatpush1.bf16.msra.mxu1 %v3951_v14  ;;  %v3991_v41 = vld [vmem:[#allocation5 + $0x5a4] ss:$8 sps:$4 sm:$0xff]   ;;  %v3993_v42 = vld [vmem:[#allocation5 + $0xa0] ss:$8 sps:$4 sm:$0xff]   ;;  %v3995_v44 = vld [vmem:[#allocation5 + $0xb4] ss:$8 sps:$4 sm:$0xff]  }
  0x8d   :  { %2691 = vmatpush1.bf16.msra.mxu0 %v3952_v15  ;;  %2487 = vmatprep.subr.bf16.mxu1 %v3953_v16  ;;  %v3994_v43 = vld [vmem:[#allocation5 + $0x5a0] ss:$8 sps:$4 sm:$0xff]   ;;  %v3997_v45 = vld [vmem:[#allocation5 + $0x5b4] ss:$8 sps:$4 sm:$0xff]   ;;  %v3999_v47 = vld [vmem:[#allocation5 + $0xb0] ss:$8 sps:$4 sm:$0xff]  }
  0x8e   :  { %2692 = vmatprep.subr.bf16.mxu0 %v3955_v17  ;;  %v116_v46 = vld [vmem:[#allocation2 + $0x8] sm:$0xff]  ;;  %v4000_v49 = vld [vmem:[#allocation5 + $0x5b0] ss:$8 sps:$4 sm:$0xff]   ;;  %v4007_v56 = vld [vmem:[#allocation5 + $0xd4] ss:$8 sps:$4 sm:$0xff]   ;;  %s4774_s6 = smov [#allocation14]  }
  0x8f   :  { %v140_v48 = vpack.c.bf16 %v116_v46, %v116_v46  ;;  %v126_v50 = vld [vmem:[#allocation2 + $0x58] sm:$0xff]  ;;  %v4001_v51 = vld [vmem:[#allocation5 + $0xc4] ss:$8 sps:$4 sm:$0xff]   ;;  %v4005_v54 = vld [vmem:[#allocation5 + $0xc0] ss:$8 sps:$4 sm:$0xff]   ;;  %s3406_s13 = sshll.u32 %s4774_s6, 4  ;;  %s3407_s13 = int_to_ptr.vmem [resolvable:$true] %s3406_s13 }
  0x90   :  { %2488 = vmatpush1.bf16.msra.mxu1 %v3957_v18  ;;  %v4003_v52 = vld [vmem:[#allocation5 + $0x5c4] ss:$8 sps:$4 sm:$0xff]   ;;  %v150_v53 = vpack.c.bf16 %v126_v50, %v126_v50  ;;  %v4006_v55 = vld [vmem:[#allocation5 + $0x5c0] ss:$8 sps:$4 sm:$0xff]   ;;  %v4009_v57 = vld [vmem:[#allocation5 + $0x5d4] ss:$8 sps:$4 sm:$0xff]   ;;  %p4736_p1 = scmp.lt.s32.totalorder %s3407_s13, %s3407_s13 }
  0x91   :  { %2693 = vmatpush1.bf16.msra.mxu0 %v3958_v19  ;;  %2489 = vmatprep.subr.bf16.mxu1 %v3959_v20  ;;  %v4011_v58 = vld [vmem:[#allocation5 + $0xd0] ss:$8 sps:$4 sm:$0xff]   ;;  %v4013_v60 = vld [vmem:[#allocation5 + $0xe4] ss:$8 sps:$4 sm:$0xff]   ;;  %v4017_v62 = vld [vmem:[#allocation5 + $0xe0] ss:$8 sps:$4 sm:$0xff]  }
  0x92   :  { %2694 = vmatprep.subr.bf16.mxu0 %v3961_v21  ;;  %2511 = vmatprep.mubr.bf16.mxu1 %v140_v48  ;;  %v4012_v59 = vld [vmem:[#allocation5 + $0x5d0] ss:$8 sps:$4 sm:$0xff]   ;;  %v4015_v61 = vld [vmem:[#allocation5 + $0x5e4] ss:$8 sps:$4 sm:$0xff]   ;;  %v4018_v63 = vld [vmem:[#allocation5 + $0x5e0] ss:$8 sps:$4 sm:$0xff]  }
  0x93   :  { %2716 = vmatprep.mubr.bf16.mxu0 %v150_v53  ;;  %v4019_v0 = vld [vmem:[#allocation5 + $0xf4] ss:$8 sps:$4 sm:$0xff]   ;;  %v4023_v2 = vld [vmem:[#allocation5 + $0xf0] ss:$8 sps:$4 sm:$0xff]   ;;  %v4027_v4 = vld [vmem:[#allocation5 + $0x104] ss:$8 sps:$4 sm:$0xff]  }
  0x94   :  { %2490 = vmatpush1.bf16.msra.mxu1 %v3963_v22  ;;  %v4021_v1 = vld [vmem:[#allocation5 + $0x5f4] ss:$8 sps:$4 sm:$0xff]   ;;  %v4024_v3 = vld [vmem:[#allocation5 + $0x5f0] ss:$8 sps:$4 sm:$0xff]   ;;  %v115_v5 = vld [vmem:[#allocation2] sm:$0xff]  ;;  %s4731_s14 = scalar_lea.vmem %s3407_s13, 128 }
  0x95   :  { %2695 = vmatpush1.bf16.msra.mxu0 %v3964_v23  ;;  %2491 = vmatprep.subr.bf16.mxu1 %v3965_v24  ;;  %v125_v6 = vld [vmem:[#allocation2 + $0x50] sm:$0xff]  ;;  %v4030_v7 = vld [vmem:[#allocation5 + $0x604] ss:$8 sps:$4 sm:$0xff]   ;;  %v4025_v8 = vld [vmem:[#allocation5 + $0x100] ss:$8 sps:$4 sm:$0xff]   ;;  %v139_v10 = vpack.c.bf16 %v115_v5, %v115_v5  ;;  %p4732_p0 = scmp.ne.s32.totalorder %s3407_s13, %s4731_s14  ;;  %p4737_p2 = scmp.lt.s32.totalorder %s4731_s14, %s4731_s14 }
  0x96   :  { %2696 = vmatprep.subr.bf16.mxu0 %v3967_v25  ;;  %v4028_v9 = vld [vmem:[#allocation5 + $0x600] ss:$8 sps:$4 sm:$0xff]   ;;  %v149_v11 = vpack.c.bf16 %v125_v6, %v125_v6  ;;  %v4033_v12 = vld [vmem:[#allocation5 + $0x114] ss:$8 sps:$4 sm:$0xff]   ;;  %v4031_v14 = vld [vmem:[#allocation5 + $0x110] ss:$8 sps:$4 sm:$0xff]  }
  0x97   :  { %v4036_v13 = vld [vmem:[#allocation5 + $0x614] ss:$8 sps:$4 sm:$0xff]   ;;  %v4034_v15 = vld [vmem:[#allocation5 + $0x610] ss:$8 sps:$4 sm:$0xff]   ;;  %v4039_v16 = vld [vmem:[#allocation5 + $0x124] ss:$8 sps:$4 sm:$0xff]   ;;  %p4738_p3 = por %p4737_p2, %p4736_p1 }
  0x98   :  { %2492 = vmatpush1.bf16.msra.mxu1 %v3969_v26  ;;  %v4042_v17 = vld [vmem:[#allocation5 + $0x624] ss:$8 sps:$4 sm:$0xff]   ;;  %v4037_v18 = vld [vmem:[#allocation5 + $0x120] ss:$8 sps:$4 sm:$0xff]   ;;  %v4045_v20 = vld [vmem:[#allocation5 + $0x134] ss:$8 sps:$4 sm:$0xff]  }
  0x99   :  { %2697 = vmatpush1.bf16.msra.mxu0 %v3970_v27  ;;  %2493 = vmatprep.subr.bf16.mxu1 %v3971_v28  ;;  %v4040_v19 = vld [vmem:[#allocation5 + $0x620] ss:$8 sps:$4 sm:$0xff]   ;;  %v4048_v21 = vld [vmem:[#allocation5 + $0x634] ss:$8 sps:$4 sm:$0xff]   ;;  %v4043_v22 = vld [vmem:[#allocation5 + $0x130] ss:$8 sps:$4 sm:$0xff]   ;;  %p4739_p4 = pnand %p4738_p3, %p4732_p0 }
  0x9a   :  { %2698 = vmatprep.subr.bf16.mxu0 %v3973_v29  ;;  %v4046_v23 = vld [vmem:[#allocation5 + $0x630] ss:$8 sps:$4 sm:$0xff]   ;;  %v4051_v24 = vld [vmem:[#allocation5 + $0x144] ss:$8 sps:$4 sm:$0xff]   ;;  %v4049_v26 = vld [vmem:[#allocation5 + $0x140] ss:$8 sps:$4 sm:$0xff]  }
  0x9b   :  { %v4054_v25 = vld [vmem:[#allocation5 + $0x644] ss:$8 sps:$4 sm:$0xff]   ;;  %v4052_v27 = vld [vmem:[#allocation5 + $0x640] ss:$8 sps:$4 sm:$0xff]   ;;  %v4057_v28 = vld [vmem:[#allocation5 + $0x154] ss:$8 sps:$4 sm:$0xff]  }
  0x9c   :  { %2494 = vmatpush1.bf16.msra.mxu1 %v3975_v30  ;;  %v4060_v29 = vld [vmem:[#allocation5 + $0x654] ss:$8 sps:$4 sm:$0xff]   ;;  %v4055_v30 = vld [vmem:[#allocation5 + $0x150] ss:$8 sps:$4 sm:$0xff]   ;;  %v4073_v46 = vld [vmem:[#allocation5 + $0x180] ss:$8 sps:$4 sm:$0xff]  }
  0x9d   :  { %2699 = vmatpush1.bf16.msra.mxu0 %v3976_v31  ;;  %2495 = vmatprep.subr.bf16.mxu1 %v3977_v32  ;;  %v4058_v31 = vld [vmem:[#allocation5 + $0x650] ss:$8 sps:$4 sm:$0xff]   ;;  %v4063_v32 = vld [vmem:[#allocation5 + $0x164] ss:$8 sps:$4 sm:$0xff]   ;;  %v4081_v48 = vld [vmem:[#allocation5 + $0x194] ss:$8 sps:$4 sm:$0xff]  }
  0x9e   :  { %2700 = vmatprep.subr.bf16.mxu0 %v3979_v33  ;;  %v4066_v33 = vld [vmem:[#allocation5 + $0x664] ss:$8 sps:$4 sm:$0xff]   ;;  %v4079_v50 = vld [vmem:[#allocation5 + $0x190] ss:$8 sps:$4 sm:$0xff]   ;;  %v4109_v6 = vld [vmem:[#allocation5 + $0x1e0] ss:$8 sps:$4 sm:$0xff]  }
  0x9f   :  { %v4090_v53 = vld [vmem:[#allocation5 + $0x6a4] ss:$8 sps:$4 sm:$0xff]  }
  0xa0   :  { %2496 = vmatpush1.bf16.msra.mxu1 %v3981_v34  ;;  %v118_v34 = vld [vmem:[#allocation2 + $0x18] sm:$0xff]  ;;  %v4114_v5 = vld [vmem:[#allocation5 + $0x6e4] ss:$8 sps:$4 sm:$0xff]  }
  0xa1   :  { %2701 = vmatpush1.bf16.msra.mxu0 %v3982_v35  ;;  %2497 = vmatprep.subr.bf16.mxu1 %v3983_v36  ;;  %v4061_v35 = vld [vmem:[#allocation5 + $0x160] ss:$8 sps:$4 sm:$0xff]   ;;  %v142_v36 = vpack.c.bf16 %v118_v34, %v118_v34  ;;  %v4139_v34 = vld [vmem:[#allocation5 + $0x230] ss:$8 sps:$4 sm:$0xff]  }
  0xa2   :  { %2702 = vmatprep.subr.bf16.mxu0 %v3985_v37  ;;  %v4064_v37 = vld [vmem:[#allocation5 + $0x660] ss:$8 sps:$4 sm:$0xff]  }
  0xa4   :  { %2498 = vmatpush1.bf16.msra.mxu1 %v3987_v38  ;;  %v128_v38 = vld [vmem:[#allocation2 + $0x68] sm:$0xff] }
  0xa5   :  { %2703 = vmatpush1.bf16.msra.mxu0 %v3988_v39  ;;  %2499 = vmatprep.subr.bf16.mxu1 %v3989_v40  ;;  %v4069_v39 = vld [vmem:[#allocation5 + $0x174] ss:$8 sps:$4 sm:$0xff]  }
  0xa6   :  { %2704 = vmatprep.subr.bf16.mxu0 %v3991_v41  ;;  %v4072_v40 = vld [vmem:[#allocation5 + $0x674] ss:$8 sps:$4 sm:$0xff]   ;;  %v152_v41 = vpack.c.bf16 %v128_v38, %v128_v38  ;;  %v4145_v38 = vld [vmem:[#allocation5 + $0x240] ss:$8 sps:$4 sm:$0xff]  }
  0xa8   :  { %2500 = vmatpush1.bf16.msra.mxu1 %v3993_v42  ;;  %v4067_v42 = vld [vmem:[#allocation5 + $0x170] ss:$8 sps:$4 sm:$0xff]  }
  0xa9   :  { %2705 = vmatpush1.bf16.msra.mxu0 %v3994_v43  ;;  %2501 = vmatprep.subr.bf16.mxu1 %v3995_v44  ;;  %v4070_v43 = vld [vmem:[#allocation5 + $0x670] ss:$8 sps:$4 sm:$0xff]   ;;  %v4075_v44 = vld [vmem:[#allocation5 + $0x184] ss:$8 sps:$4 sm:$0xff]  }
  0xaa   :  { %2706 = vmatprep.subr.bf16.mxu0 %v3997_v45  ;;  %v4078_v45 = vld [vmem:[#allocation5 + $0x684] ss:$8 sps:$4 sm:$0xff]  }
  0xac   :  { %2502 = vmatpush1.bf16.msra.mxu1 %v3999_v47  ;;  %v4076_v47 = vld [vmem:[#allocation5 + $0x680] ss:$8 sps:$4 sm:$0xff]  }
  0xad   :  { %2707 = vmatpush1.bf16.msra.mxu0 %v4000_v49  ;;  %2503 = vmatprep.subr.bf16.mxu1 %v4001_v51  ;;  %v4084_v49 = vld [vmem:[#allocation5 + $0x694] ss:$8 sps:$4 sm:$0xff]   ;;  %v4082_v51 = vld [vmem:[#allocation5 + $0x690] ss:$8 sps:$4 sm:$0xff]  }
  0xae   :  { %2708 = vmatprep.subr.bf16.mxu0 %v4003_v52  ;;  %v4087_v52 = vld [vmem:[#allocation5 + $0x1a4] ss:$8 sps:$4 sm:$0xff]  }
  0xb0   :  { %2504 = vmatpush1.bf16.msra.mxu1 %v4005_v54  ;;  %v4085_v54 = vld [vmem:[#allocation5 + $0x1a0] ss:$8 sps:$4 sm:$0xff]  }
  0xb1   :  { %2709 = vmatpush1.bf16.msra.mxu0 %v4006_v55  ;;  %2505 = vmatprep.subr.bf16.mxu1 %v4007_v56  ;;  %v4088_v55 = vld [vmem:[#allocation5 + $0x6a0] ss:$8 sps:$4 sm:$0xff]   ;;  %v4093_v56 = vld [vmem:[#allocation5 + $0x1b4] ss:$8 sps:$4 sm:$0xff]  }
  0xb2   :  { %2710 = vmatprep.subr.bf16.mxu0 %v4009_v57  ;;  %v4096_v57 = vld [vmem:[#allocation5 + $0x6b4] ss:$8 sps:$4 sm:$0xff]  }
  0xb4   :  { %2506 = vmatpush1.bf16.msra.mxu1 %v4011_v58  ;;  %v4091_v58 = vld [vmem:[#allocation5 + $0x1b0] ss:$8 sps:$4 sm:$0xff]  }
  0xb5   :  { %2711 = vmatpush1.bf16.msra.mxu0 %v4012_v59  ;;  %2507 = vmatprep.subr.bf16.mxu1 %v4013_v60  ;;  %v4094_v59 = vld [vmem:[#allocation5 + $0x6b0] ss:$8 sps:$4 sm:$0xff]   ;;  %v4099_v60 = vld [vmem:[#allocation5 + $0x1c4] ss:$8 sps:$4 sm:$0xff]  }
  0xb6   :  { %2712 = vmatprep.subr.bf16.mxu0 %v4015_v61  ;;  %v4102_v61 = vld [vmem:[#allocation5 + $0x6c4] ss:$8 sps:$4 sm:$0xff]  }
  0xb8   :  { %2508 = vmatpush1.bf16.msra.mxu1 %v4017_v62  ;;  %v4097_v62 = vld [vmem:[#allocation5 + $0x1c0] ss:$8 sps:$4 sm:$0xff]  }
  0xb9   :  { %2713 = vmatpush1.bf16.msra.mxu0 %v4018_v63  ;;  %2509 = vmatprep.subr.bf16.mxu1 %v4019_v0  ;;  %v4100_v63 = vld [vmem:[#allocation5 + $0x6c0] ss:$8 sps:$4 sm:$0xff]   ;;  %v4105_v0 = vld [vmem:[#allocation5 + $0x1d4] ss:$8 sps:$4 sm:$0xff]  }
  0xba   :  { %2714 = vmatprep.subr.bf16.mxu0 %v4021_v1  ;;  %v4108_v1 = vld [vmem:[#allocation5 + $0x6d4] ss:$8 sps:$4 sm:$0xff]  }
  0xbc   :  { %2510 = vmatpush1.bf16.msra.mxu1 %v4023_v2  ;;  %v4103_v2 = vld [vmem:[#allocation5 + $0x1d0] ss:$8 sps:$4 sm:$0xff]  }
  0xbd   :  { %2715 = vmatpush1.bf16.msra.mxu0 %v4024_v3  ;;  %2520 = vmatprep.subr.bf16.mxu1 %v4027_v4  ;;  %v4106_v3 = vld [vmem:[#allocation5 + $0x6d0] ss:$8 sps:$4 sm:$0xff]   ;;  %v4111_v4 = vld [vmem:[#allocation5 + $0x1e4] ss:$8 sps:$4 sm:$0xff]  }
  0xbe   :  { %2725 = vmatprep.subr.bf16.mxu0 %v4030_v7  ;;  %v4112_v7 = vld [vmem:[#allocation5 + $0x6e0] ss:$8 sps:$4 sm:$0xff]  }
  0xbf   :  { %2512 = vmatmul.mubr.bf16.vlgmr.msra.gmra.mrb[0].mxu1 %v139_v10  ;;  %v4115_v10 = vld [vmem:[#allocation5 + $0x1f0] ss:$8 sps:$4 sm:$0xff]  }
  0xc0   :  { %2717 = vmatmul.mubr.bf16.vlgmr.msra.gmra.mrb[0].mxu0 %v149_v11  ;;  %2521 = vmatpush1.bf16.msra.mxu1 %v4025_v8  ;;  %v4117_v8 = vld [vmem:[#allocation5 + $0x1f4] ss:$8 sps:$4 sm:$0xff]   ;;  %v4118_v11 = vld [vmem:[#allocation5 + $0x6f0] ss:$8 sps:$4 sm:$0xff]  }
  0xc1   :  { %2726 = vmatpush1.bf16.msra.mxu0 %v4028_v9  ;;  %2522 = vmatprep.subr.bf16.mxu1 %v4033_v12  ;;  %v4120_v9 = vld [vmem:[#allocation5 + $0x6f4] ss:$8 sps:$4 sm:$0xff]   ;;  %v4123_v12 = vld [vmem:[#allocation5 + $0x204] ss:$8 sps:$4 sm:$0xff]  }
  0xc2   :  { %2727 = vmatprep.subr.bf16.mxu0 %v4036_v13  ;;  %2552 = vmatprep.mubr.bf16.mxu1 %v142_v36  ;;  %v117_v13 = vld [vmem:[#allocation2 + $0x10] sm:$0xff]  ;;  %v4147_v36 = vld [vmem:[#allocation5 + $0x244] ss:$8 sps:$4 sm:$0xff]  }
  0xc3   :  { %2757 = vmatprep.mubr.bf16.mxu0 %v152_v41  ;;  %v4156_v41 = vld [vmem:[#allocation5 + $0x754] ss:$8 sps:$4 sm:$0xff]  }
  0xc4   :  { %2523 = vmatpush1.bf16.msra.mxu1 %v4031_v14  ;;  %v127_v14 = vld [vmem:[#allocation2 + $0x60] sm:$0xff] }
  0xc5   :  { %2728 = vmatpush1.bf16.msra.mxu0 %v4034_v15  ;;  %2524 = vmatprep.subr.bf16.mxu1 %v4039_v16  ;;  %v4126_v15 = vld [vmem:[#allocation5 + $0x704] ss:$8 sps:$4 sm:$0xff]   ;;  %v4121_v16 = vld [vmem:[#allocation5 + $0x200] ss:$8 sps:$4 sm:$0xff]  }
  0xc6   :  { %2729 = vmatprep.subr.bf16.mxu0 %v4042_v17  ;;  %v4124_v17 = vld [vmem:[#allocation5 + $0x700] ss:$8 sps:$4 sm:$0xff]  }
  0xc8   :  { %2525 = vmatpush1.bf16.msra.mxu1 %v4037_v18  ;;  %v141_v18 = vpack.c.bf16 %v117_v13, %v117_v13  ;;  %v4210_v13 = vld [vmem:[#allocation5 + $0x7e4] ss:$8 sps:$4 sm:$0xff]  }
  0xc9   :  { %2730 = vmatpush1.bf16.msra.mxu0 %v4040_v19  ;;  %2526 = vmatprep.subr.bf16.mxu1 %v4045_v20  ;;  %v151_v19 = vpack.c.bf16 %v127_v14, %v127_v14  ;;  %v4129_v20 = vld [vmem:[#allocation5 + $0x214] ss:$8 sps:$4 sm:$0xff]   ;;  %v4205_v14 = vld [vmem:[#allocation5 + $0x2e0] ss:$8 sps:$4 sm:$0xff]  }
  0xca   :  { %2731 = vmatprep.subr.bf16.mxu0 %v4048_v21  ;;  %v4132_v21 = vld [vmem:[#allocation5 + $0x714] ss:$8 sps:$4 sm:$0xff]  }
  0xcc   :  { %2527 = vmatpush1.bf16.msra.mxu1 %v4043_v22  ;;  %v120_v22 = vld [vmem:[#allocation2 + $0x28] sm:$0xff] }
  0xcd   :  { %2732 = vmatpush1.bf16.msra.mxu0 %v4046_v23  ;;  %2528 = vmatprep.subr.bf16.mxu1 %v4051_v24  ;;  %v4127_v23 = vld [vmem:[#allocation5 + $0x210] ss:$8 sps:$4 sm:$0xff]   ;;  %v144_v24 = vpack.c.bf16 %v120_v22, %v120_v22 }
  0xce   :  { %2733 = vmatprep.subr.bf16.mxu0 %v4054_v25  ;;  %v4130_v25 = vld [vmem:[#allocation5 + $0x710] ss:$8 sps:$4 sm:$0xff]  }
  0xcf   :  { %v129_v22 = vld [vmem:[#allocation2 + $0x70] sm:$0xff] }
  0xd0   :  { %2529 = vmatpush1.bf16.msra.mxu1 %v4049_v26  ;;  %v130_v26 = vld [vmem:[#allocation2 + $0x78] sm:$0xff] }
  0xd1   :  { %2734 = vmatpush1.bf16.msra.mxu0 %v4052_v27  ;;  %2530 = vmatprep.subr.bf16.mxu1 %v4057_v28  ;;  %v4135_v27 = vld [vmem:[#allocation5 + $0x224] ss:$8 sps:$4 sm:$0xff]  }
  0xd2   :  { %2735 = vmatprep.subr.bf16.mxu0 %v4060_v29  ;;  %v4138_v28 = vld [vmem:[#allocation5 + $0x724] ss:$8 sps:$4 sm:$0xff]   ;;  %v154_v29 = vpack.c.bf16 %v130_v26, %v130_v26 }
  0xd4   :  { %2531 = vmatpush1.bf16.msra.mxu1 %v4055_v30  ;;  %v4133_v30 = vld [vmem:[#allocation5 + $0x220] ss:$8 sps:$4 sm:$0xff]  }
  0xd5   :  { %2736 = vmatpush1.bf16.msra.mxu0 %v4058_v31  ;;  %2532 = vmatprep.subr.bf16.mxu1 %v4063_v32  ;;  %v4136_v31 = vld [vmem:[#allocation5 + $0x720] ss:$8 sps:$4 sm:$0xff]   ;;  %v4141_v32 = vld [vmem:[#allocation5 + $0x234] ss:$8 sps:$4 sm:$0xff]  }
  0xd6   :  { %2737 = vmatprep.subr.bf16.mxu0 %v4066_v33  ;;  %v4144_v33 = vld [vmem:[#allocation5 + $0x734] ss:$8 sps:$4 sm:$0xff]  }
  0xd8   :  { %2533 = vmatpush1.bf16.msra.mxu1 %v4061_v35  ;;  %v4142_v35 = vld [vmem:[#allocation5 + $0x730] ss:$8 sps:$4 sm:$0xff]  }
  0xd9   :  { %2738 = vmatpush1.bf16.msra.mxu0 %v4064_v37  ;;  %2534 = vmatprep.subr.bf16.mxu1 %v4069_v39  ;;  %v4150_v37 = vld [vmem:[#allocation5 + $0x744] ss:$8 sps:$4 sm:$0xff]   ;;  %v4148_v39 = vld [vmem:[#allocation5 + $0x740] ss:$8 sps:$4 sm:$0xff]  }
  0xda   :  { %2739 = vmatprep.subr.bf16.mxu0 %v4072_v40  ;;  %v4153_v40 = vld [vmem:[#allocation5 + $0x254] ss:$8 sps:$4 sm:$0xff]  }
  0xdc   :  { %2535 = vmatpush1.bf16.msra.mxu1 %v4067_v42  ;;  %v4151_v42 = vld [vmem:[#allocation5 + $0x250] ss:$8 sps:$4 sm:$0xff]  }
  0xdd   :  { %2740 = vmatpush1.bf16.msra.mxu0 %v4070_v43  ;;  %2536 = vmatprep.subr.bf16.mxu1 %v4075_v44  ;;  %v4154_v43 = vld [vmem:[#allocation5 + $0x750] ss:$8 sps:$4 sm:$0xff]   ;;  %v4159_v44 = vld [vmem:[#allocation5 + $0x264] ss:$8 sps:$4 sm:$0xff]  }
  0xde   :  { %2741 = vmatprep.subr.bf16.mxu0 %v4078_v45  ;;  %v4162_v45 = vld [vmem:[#allocation5 + $0x764] ss:$8 sps:$4 sm:$0xff]  }
  0xe0   :  { %2537 = vmatpush1.bf16.msra.mxu1 %v4073_v46  ;;  %v4157_v46 = vld [vmem:[#allocation5 + $0x260] ss:$8 sps:$4 sm:$0xff]  }
  0xe1   :  { %2742 = vmatpush1.bf16.msra.mxu0 %v4076_v47  ;;  %2538 = vmatprep.subr.bf16.mxu1 %v4081_v48  ;;  %v4160_v47 = vld [vmem:[#allocation5 + $0x760] ss:$8 sps:$4 sm:$0xff]   ;;  %v4165_v48 = vld [vmem:[#allocation5 + $0x274] ss:$8 sps:$4 sm:$0xff]  }
  0xe2   :  { %2743 = vmatprep.subr.bf16.mxu0 %v4084_v49  ;;  %v4168_v49 = vld [vmem:[#allocation5 + $0x774] ss:$8 sps:$4 sm:$0xff]  }
  0xe4   :  { %2539 = vmatpush1.bf16.msra.mxu1 %v4079_v50  ;;  %v4163_v50 = vld [vmem:[#allocation5 + $0x270] ss:$8 sps:$4 sm:$0xff]  }
  0xe5   :  { %2744 = vmatpush1.bf16.msra.mxu0 %v4082_v51  ;;  %2540 = vmatprep.subr.bf16.mxu1 %v4087_v52  ;;  %v4166_v51 = vld [vmem:[#allocation5 + $0x770] ss:$8 sps:$4 sm:$0xff]   ;;  %v4171_v52 = vld [vmem:[#allocation5 + $0x284] ss:$8 sps:$4 sm:$0xff]  }
  0xe6   :  { %2745 = vmatprep.subr.bf16.mxu0 %v4090_v53  ;;  %v4174_v53 = vld [vmem:[#allocation5 + $0x784] ss:$8 sps:$4 sm:$0xff]  }
  0xe8   :  { %2541 = vmatpush1.bf16.msra.mxu1 %v4085_v54  ;;  %v4169_v54 = vld [vmem:[#allocation5 + $0x280] ss:$8 sps:$4 sm:$0xff]  }
  0xe9   :  { %2746 = vmatpush1.bf16.msra.mxu0 %v4088_v55  ;;  %2542 = vmatprep.subr.bf16.mxu1 %v4093_v56  ;;  %v4172_v55 = vld [vmem:[#allocation5 + $0x780] ss:$8 sps:$4 sm:$0xff]   ;;  %v4177_v56 = vld [vmem:[#allocation5 + $0x294] ss:$8 sps:$4 sm:$0xff]  }
  0xea   :  { %2747 = vmatprep.subr.bf16.mxu0 %v4096_v57  ;;  %v4180_v57 = vld [vmem:[#allocation5 + $0x794] ss:$8 sps:$4 sm:$0xff]  }
  0xec   :  { %2543 = vmatpush1.bf16.msra.mxu1 %v4091_v58  ;;  %v4175_v58 = vld [vmem:[#allocation5 + $0x290] ss:$8 sps:$4 sm:$0xff]  }
  0xed   :  { %2748 = vmatpush1.bf16.msra.mxu0 %v4094_v59  ;;  %2544 = vmatprep.subr.bf16.mxu1 %v4099_v60  ;;  %v4178_v59 = vld [vmem:[#allocation5 + $0x790] ss:$8 sps:$4 sm:$0xff]   ;;  %v4183_v60 = vld [vmem:[#allocation5 + $0x2a4] ss:$8 sps:$4 sm:$0xff]  }
  0xee   :  { %2749 = vmatprep.subr.bf16.mxu0 %v4102_v61  ;;  %v4186_v61 = vld [vmem:[#allocation5 + $0x7a4] ss:$8 sps:$4 sm:$0xff]  }
  0xf0   :  { %2545 = vmatpush1.bf16.msra.mxu1 %v4097_v62  ;;  %v4181_v62 = vld [vmem:[#allocation5 + $0x2a0] ss:$8 sps:$4 sm:$0xff]  }
  0xf1   :  { %2750 = vmatpush1.bf16.msra.mxu0 %v4100_v63  ;;  %2546 = vmatprep.subr.bf16.mxu1 %v4105_v0  ;;  %v4184_v63 = vld [vmem:[#allocation5 + $0x7a0] ss:$8 sps:$4 sm:$0xff]   ;;  %v4189_v0 = vld [vmem:[#allocation5 + $0x2b4] ss:$8 sps:$4 sm:$0xff]  }
  0xf2   :  { %2751 = vmatprep.subr.bf16.mxu0 %v4108_v1  ;;  %v4192_v1 = vld [vmem:[#allocation5 + $0x7b4] ss:$8 sps:$4 sm:$0xff]  }
  0xf4   :  { %2547 = vmatpush1.bf16.msra.mxu1 %v4103_v2  ;;  %v4187_v2 = vld [vmem:[#allocation5 + $0x2b0] ss:$8 sps:$4 sm:$0xff]  }
  0xf5   :  { %2752 = vmatpush1.bf16.msra.mxu0 %v4106_v3  ;;  %2548 = vmatprep.subr.bf16.mxu1 %v4111_v4  ;;  %v4190_v3 = vld [vmem:[#allocation5 + $0x7b0] ss:$8 sps:$4 sm:$0xff]   ;;  %v4195_v4 = vld [vmem:[#allocation5 + $0x2c4] ss:$8 sps:$4 sm:$0xff]  }
  0xf6   :  { %2753 = vmatprep.subr.bf16.mxu0 %v4114_v5  ;;  %v4198_v5 = vld [vmem:[#allocation5 + $0x7c4] ss:$8 sps:$4 sm:$0xff]  }
  0xf8   :  { %2549 = vmatpush1.bf16.msra.mxu1 %v4109_v6  ;;  %v4193_v6 = vld [vmem:[#allocation5 + $0x2c0] ss:$8 sps:$4 sm:$0xff]  }
  0xf9   :  { %2754 = vmatpush1.bf16.msra.mxu0 %v4112_v7  ;;  %2550 = vmatprep.subr.bf16.mxu1 %v4117_v8  ;;  %v4196_v7 = vld [vmem:[#allocation5 + $0x7c0] ss:$8 sps:$4 sm:$0xff]   ;;  %v4201_v8 = vld [vmem:[#allocation5 + $0x2d4] ss:$8 sps:$4 sm:$0xff]  }
  0xfa   :  { %2755 = vmatprep.subr.bf16.mxu0 %v4120_v9  ;;  %v4204_v9 = vld [vmem:[#allocation5 + $0x7d4] ss:$8 sps:$4 sm:$0xff]  }
  0xfc   :  { %2551 = vmatpush1.bf16.msra.mxu1 %v4115_v10  ;;  %v4199_v10 = vld [vmem:[#allocation5 + $0x2d0] ss:$8 sps:$4 sm:$0xff]  }
  0xfd   :  { %2756 = vmatpush1.bf16.msra.mxu0 %v4118_v11  ;;  %2561 = vmatprep.subr.bf16.mxu1 %v4123_v12  ;;  %v4202_v11 = vld [vmem:[#allocation5 + $0x7d0] ss:$8 sps:$4 sm:$0xff]   ;;  %v4207_v12 = vld [vmem:[#allocation5 + $0x2e4] ss:$8 sps:$4 sm:$0xff]  }
  0xfe   :  { %2766 = vmatprep.subr.bf16.mxu0 %v4126_v15  ;;  %v4208_v15 = vld [vmem:[#allocation5 + $0x7e0] ss:$8 sps:$4 sm:$0xff]  }
  0xff   :  { %2553 = vmatmul.mubr.bf16.vlgmr.msra.gmra.mrb[0].mxu1 %v141_v18  ;;  %v4211_v18 = vld [vmem:[#allocation5 + $0x2f0] ss:$8 sps:$4 sm:$0xff]  }
 0x100   :  { %2758 = vmatmul.mubr.bf16.vlgmr.msra.gmra.mrb[0].mxu0 %v151_v19  ;;  %2562 = vmatpush1.bf16.msra.mxu1 %v4121_v16  ;;  %v4213_v16 = vld [vmem:[#allocation5 + $0x2f4] ss:$8 sps:$4 sm:$0xff]   ;;  %v4214_v19 = vld [vmem:[#allocation5 + $0x7f0] ss:$8 sps:$4 sm:$0xff]  }
 0x101   :  { %2767 = vmatpush1.bf16.msra.mxu0 %v4124_v17  ;;  %2563 = vmatprep.subr.bf16.mxu1 %v4129_v20  ;;  %v4216_v17 = vld [vmem:[#allocation5 + $0x7f4] ss:$8 sps:$4 sm:$0xff]   ;;  %v4219_v20 = vld [vmem:[#allocation5 + $0x304] ss:$8 sps:$4 sm:$0xff]  }
 0x102   :  { %2768 = vmatprep.subr.bf16.mxu0 %v4132_v21  ;;  %2593 = vmatprep.mubr.bf16.mxu1 %v144_v24  ;;  %v119_v21 = vld [vmem:[#allocation2 + $0x20] sm:$0xff] }
 0x103   :  { %2798 = vmatprep.mubr.bf16.mxu0 %v154_v29  ;;  %v4217_v24 = vld [vmem:[#allocation5 + $0x300] ss:$8 sps:$4 sm:$0xff]   ;;  %v143_v26 = vpack.c.bf16 %v119_v21, %v119_v21  ;;  %v4306_v21 = vld [vmem:[#allocation5 + $0x8e4] ss:$8 sps:$4 sm:$0xff]  }
 0x104   :  { %2564 = vmatpush1.bf16.msra.mxu1 %v4127_v23  ;;  %v4222_v23 = vld [vmem:[#allocation5 + $0x804] ss:$8 sps:$4 sm:$0xff]  }
 0x105   :  { %2769 = vmatpush1.bf16.msra.mxu0 %v4130_v25  ;;  %2565 = vmatprep.subr.bf16.mxu1 %v4135_v27  ;;  %v4220_v25 = vld [vmem:[#allocation5 + $0x800] ss:$8 sps:$4 sm:$0xff]   ;;  %v153_v27 = vpack.c.bf16 %v129_v22, %v129_v22 }
 0x106   :  { %2770 = vmatprep.subr.bf16.mxu0 %v4138_v28  ;;  %v122_v28 = vld [vmem:[#allocation2 + $0x38] sm:$0xff]  ;;  %v132_v29 = vld [vmem:[#allocation2 + $0x88] sm:$0xff] }
 0x107   :  { %v4301_v22 = vld [vmem:[#allocation5 + $0x3e0] ss:$8 sps:$4 sm:$0xff]  }
 0x108   :  { %2566 = vmatpush1.bf16.msra.mxu1 %v4133_v30  ;;  %v4225_v30 = vld [vmem:[#allocation5 + $0x314] ss:$8 sps:$4 sm:$0xff]  }
 0x109   :  { %2771 = vmatpush1.bf16.msra.mxu0 %v4136_v31  ;;  %2567 = vmatprep.subr.bf16.mxu1 %v4141_v32  ;;  %v4228_v31 = vld [vmem:[#allocation5 + $0x814] ss:$8 sps:$4 sm:$0xff]   ;;  %v146_v32 = vpack.c.bf16 %v122_v28, %v122_v28  ;;  %v4315_v28 = vld [vmem:[#allocation5 + $0x404] ss:$8 sps:$4 sm:$0xff]  }
 0x10a   :  { %2772 = vmatprep.subr.bf16.mxu0 %v4144_v33  ;;  %v156_v33 = vpack.c.bf16 %v132_v29, %v132_v29  ;;  %v4318_v29 = vld [vmem:[#allocation5 + $0x904] ss:$8 sps:$4 sm:$0xff]  }
 0x10c   :  { %2568 = vmatpush1.bf16.msra.mxu1 %v4139_v34  ;;  %v4223_v34 = vld [vmem:[#allocation5 + $0x310] ss:$8 sps:$4 sm:$0xff]  }
 0x10d   :  { %2773 = vmatpush1.bf16.msra.mxu0 %v4142_v35  ;;  %2569 = vmatprep.subr.bf16.mxu1 %v4147_v36  ;;  %v4226_v35 = vld [vmem:[#allocation5 + $0x810] ss:$8 sps:$4 sm:$0xff]   ;;  %v4231_v36 = vld [vmem:[#allocation5 + $0x324] ss:$8 sps:$4 sm:$0xff]  }
 0x10e   :  { %2774 = vmatprep.subr.bf16.mxu0 %v4150_v37  ;;  %v4234_v37 = vld [vmem:[#allocation5 + $0x824] ss:$8 sps:$4 sm:$0xff]  }
 0x110   :  { %2570 = vmatpush1.bf16.msra.mxu1 %v4145_v38  ;;  %v4229_v38 = vld [vmem:[#allocation5 + $0x320] ss:$8 sps:$4 sm:$0xff]  }
 0x111   :  { %2775 = vmatpush1.bf16.msra.mxu0 %v4148_v39  ;;  %2571 = vmatprep.subr.bf16.mxu1 %v4153_v40  ;;  %v4232_v39 = vld [vmem:[#allocation5 + $0x820] ss:$8 sps:$4 sm:$0xff]   ;;  %v4237_v40 = vld [vmem:[#allocation5 + $0x334] ss:$8 sps:$4 sm:$0xff]  }
 0x112   :  { %2776 = vmatprep.subr.bf16.mxu0 %v4156_v41  ;;  %v4240_v41 = vld [vmem:[#allocation5 + $0x834] ss:$8 sps:$4 sm:$0xff]  }
 0x114   :  { %2572 = vmatpush1.bf16.msra.mxu1 %v4151_v42  ;;  %v4235_v42 = vld [vmem:[#allocation5 + $0x330] ss:$8 sps:$4 sm:$0xff]  }
 0x115   :  { %2777 = vmatpush1.bf16.msra.mxu0 %v4154_v43  ;;  %2573 = vmatprep.subr.bf16.mxu1 %v4159_v44  ;;  %v4238_v43 = vld [vmem:[#allocation5 + $0x830] ss:$8 sps:$4 sm:$0xff]   ;;  %v4243_v44 = vld [vmem:[#allocation5 + $0x344] ss:$8 sps:$4 sm:$0xff]  }
 0x116   :  { %2778 = vmatprep.subr.bf16.mxu0 %v4162_v45  ;;  %v4246_v45 = vld [vmem:[#allocation5 + $0x844] ss:$8 sps:$4 sm:$0xff]  }
 0x118   :  { %2574 = vmatpush1.bf16.msra.mxu1 %v4157_v46  ;;  %v4241_v46 = vld [vmem:[#allocation5 + $0x340] ss:$8 sps:$4 sm:$0xff]  }
 0x119   :  { %2779 = vmatpush1.bf16.msra.mxu0 %v4160_v47  ;;  %2575 = vmatprep.subr.bf16.mxu1 %v4165_v48  ;;  %v4244_v47 = vld [vmem:[#allocation5 + $0x840] ss:$8 sps:$4 sm:$0xff]   ;;  %v4249_v48 = vld [vmem:[#allocation5 + $0x354] ss:$8 sps:$4 sm:$0xff]  }
 0x11a   :  { %2780 = vmatprep.subr.bf16.mxu0 %v4168_v49  ;;  %v4252_v49 = vld [vmem:[#allocation5 + $0x854] ss:$8 sps:$4 sm:$0xff]  }
 0x11c   :  { %2576 = vmatpush1.bf16.msra.mxu1 %v4163_v50  ;;  %v4247_v50 = vld [vmem:[#allocation5 + $0x350] ss:$8 sps:$4 sm:$0xff]  }
 0x11d   :  { %2781 = vmatpush1.bf16.msra.mxu0 %v4166_v51  ;;  %2577 = vmatprep.subr.bf16.mxu1 %v4171_v52  ;;  %v4250_v51 = vld [vmem:[#allocation5 + $0x850] ss:$8 sps:$4 sm:$0xff]   ;;  %v4255_v52 = vld [vmem:[#allocation5 + $0x364] ss:$8 sps:$4 sm:$0xff]  }
 0x11e   :  { %2782 = vmatprep.subr.bf16.mxu0 %v4174_v53  ;;  %v4258_v53 = vld [vmem:[#allocation5 + $0x864] ss:$8 sps:$4 sm:$0xff]  }
 0x120   :  { %2578 = vmatpush1.bf16.msra.mxu1 %v4169_v54  ;;  %v4253_v54 = vld [vmem:[#allocation5 + $0x360] ss:$8 sps:$4 sm:$0xff]  }
 0x121   :  { %2783 = vmatpush1.bf16.msra.mxu0 %v4172_v55  ;;  %2579 = vmatprep.subr.bf16.mxu1 %v4177_v56  ;;  %v4256_v55 = vld [vmem:[#allocation5 + $0x860] ss:$8 sps:$4 sm:$0xff]   ;;  %v4261_v56 = vld [vmem:[#allocation5 + $0x374] ss:$8 sps:$4 sm:$0xff]  }
 0x122   :  { %2784 = vmatprep.subr.bf16.mxu0 %v4180_v57  ;;  %v4264_v57 = vld [vmem:[#allocation5 + $0x874] ss:$8 sps:$4 sm:$0xff]  }
 0x124   :  { %2580 = vmatpush1.bf16.msra.mxu1 %v4175_v58  ;;  %v4259_v58 = vld [vmem:[#allocation5 + $0x370] ss:$8 sps:$4 sm:$0xff]  }
 0x125   :  { %2785 = vmatpush1.bf16.msra.mxu0 %v4178_v59  ;;  %2581 = vmatprep.subr.bf16.mxu1 %v4183_v60  ;;  %v4262_v59 = vld [vmem:[#allocation5 + $0x870] ss:$8 sps:$4 sm:$0xff]   ;;  %v4267_v60 = vld [vmem:[#allocation5 + $0x384] ss:$8 sps:$4 sm:$0xff]  }
 0x126   :  { %2786 = vmatprep.subr.bf16.mxu0 %v4186_v61  ;;  %v4270_v61 = vld [vmem:[#allocation5 + $0x884] ss:$8 sps:$4 sm:$0xff]  }
 0x128   :  { %2582 = vmatpush1.bf16.msra.mxu1 %v4181_v62  ;;  %v4265_v62 = vld [vmem:[#allocation5 + $0x380] ss:$8 sps:$4 sm:$0xff]  }
 0x129   :  { %2787 = vmatpush1.bf16.msra.mxu0 %v4184_v63  ;;  %2583 = vmatprep.subr.bf16.mxu1 %v4189_v0  ;;  %v4268_v63 = vld [vmem:[#allocation5 + $0x880] ss:$8 sps:$4 sm:$0xff]   ;;  %v4273_v0 = vld [vmem:[#allocation5 + $0x394] ss:$8 sps:$4 sm:$0xff]  }
 0x12a   :  { %2788 = vmatprep.subr.bf16.mxu0 %v4192_v1  ;;  %v4276_v1 = vld [vmem:[#allocation5 + $0x894] ss:$8 sps:$4 sm:$0xff]  }
 0x12c   :  { %2584 = vmatpush1.bf16.msra.mxu1 %v4187_v2  ;;  %v4271_v2 = vld [vmem:[#allocation5 + $0x390] ss:$8 sps:$4 sm:$0xff]  }
 0x12d   :  { %2789 = vmatpush1.bf16.msra.mxu0 %v4190_v3  ;;  %2585 = vmatprep.subr.bf16.mxu1 %v4195_v4  ;;  %v4274_v3 = vld [vmem:[#allocation5 + $0x890] ss:$8 sps:$4 sm:$0xff]   ;;  %v4279_v4 = vld [vmem:[#allocation5 + $0x3a4] ss:$8 sps:$4 sm:$0xff]  }
 0x12e   :  { %2790 = vmatprep.subr.bf16.mxu0 %v4198_v5  ;;  %v4282_v5 = vld [vmem:[#allocation5 + $0x8a4] ss:$8 sps:$4 sm:$0xff]  }
 0x130   :  { %2586 = vmatpush1.bf16.msra.mxu1 %v4193_v6  ;;  %v4277_v6 = vld [vmem:[#allocation5 + $0x3a0] ss:$8 sps:$4 sm:$0xff]  }
 0x131   :  { %2791 = vmatpush1.bf16.msra.mxu0 %v4196_v7  ;;  %2587 = vmatprep.subr.bf16.mxu1 %v4201_v8  ;;  %v4280_v7 = vld [vmem:[#allocation5 + $0x8a0] ss:$8 sps:$4 sm:$0xff]   ;;  %v4285_v8 = vld [vmem:[#allocation5 + $0x3b4] ss:$8 sps:$4 sm:$0xff]  }
 0x132   :  { %2792 = vmatprep.subr.bf16.mxu0 %v4204_v9  ;;  %v4288_v9 = vld [vmem:[#allocation5 + $0x8b4] ss:$8 sps:$4 sm:$0xff]  }
 0x134   :  { %2588 = vmatpush1.bf16.msra.mxu1 %v4199_v10  ;;  %v4283_v10 = vld [vmem:[#allocation5 + $0x3b0] ss:$8 sps:$4 sm:$0xff]  }
 0x135   :  { %2793 = vmatpush1.bf16.msra.mxu0 %v4202_v11  ;;  %2589 = vmatprep.subr.bf16.mxu1 %v4207_v12  ;;  %v4286_v11 = vld [vmem:[#allocation5 + $0x8b0] ss:$8 sps:$4 sm:$0xff]   ;;  %v4291_v12 = vld [vmem:[#allocation5 + $0x3c4] ss:$8 sps:$4 sm:$0xff]  }
 0x136   :  { %2794 = vmatprep.subr.bf16.mxu0 %v4210_v13  ;;  %v4294_v13 = vld [vmem:[#allocation5 + $0x8c4] ss:$8 sps:$4 sm:$0xff]  }
 0x138   :  { %2590 = vmatpush1.bf16.msra.mxu1 %v4205_v14  ;;  %v4289_v14 = vld [vmem:[#allocation5 + $0x3c0] ss:$8 sps:$4 sm:$0xff]  }
 0x139   :  { %2795 = vmatpush1.bf16.msra.mxu0 %v4208_v15  ;;  %2591 = vmatprep.subr.bf16.mxu1 %v4213_v16  ;;  %v4292_v15 = vld [vmem:[#allocation5 + $0x8c0] ss:$8 sps:$4 sm:$0xff]   ;;  %v4297_v16 = vld [vmem:[#allocation5 + $0x3d4] ss:$8 sps:$4 sm:$0xff]  }
 0x13a   :  { %2796 = vmatprep.subr.bf16.mxu0 %v4216_v17  ;;  %v4300_v17 = vld [vmem:[#allocation5 + $0x8d4] ss:$8 sps:$4 sm:$0xff]  }
 0x13c   :  { %2592 = vmatpush1.bf16.msra.mxu1 %v4211_v18  ;;  %v4295_v18 = vld [vmem:[#allocation5 + $0x3d0] ss:$8 sps:$4 sm:$0xff]  }
 0x13d   :  { %2797 = vmatpush1.bf16.msra.mxu0 %v4214_v19  ;;  %2602 = vmatprep.subr.bf16.mxu1 %v4219_v20  ;;  %v4298_v19 = vld [vmem:[#allocation5 + $0x8d0] ss:$8 sps:$4 sm:$0xff]   ;;  %v4303_v20 = vld [vmem:[#allocation5 + $0x3e4] ss:$8 sps:$4 sm:$0xff]  }
 0x13e   :  { %2807 = vmatprep.subr.bf16.mxu0 %v4222_v23  ;;  %v4304_v23 = vld [vmem:[#allocation5 + $0x8e0] ss:$8 sps:$4 sm:$0xff]  }
 0x13f   :  { %2594 = vmatmul.mubr.bf16.vlgmr.msra.gmra.mrb[0].mxu1 %v143_v26  ;;  %v4307_v26 = vld [vmem:[#allocation5 + $0x3f0] ss:$8 sps:$4 sm:$0xff]  }
 0x140   :  { %2799 = vmatmul.mubr.bf16.vlgmr.msra.gmra.mrb[0].mxu0 %v153_v27  ;;  %2603 = vmatpush1.bf16.msra.mxu1 %v4217_v24  ;;  %v4309_v24 = vld [vmem:[#allocation5 + $0x3f4] ss:$8 sps:$4 sm:$0xff]   ;;  %v4310_v27 = vld [vmem:[#allocation5 + $0x8f0] ss:$8 sps:$4 sm:$0xff]  }
 0x141   :  { %2808 = vmatpush1.bf16.msra.mxu0 %v4220_v25  ;;  %2604 = vmatprep.subr.bf16.mxu1 %v4225_v30  ;;  %v4312_v25 = vld [vmem:[#allocation5 + $0x8f4] ss:$8 sps:$4 sm:$0xff]  }
 0x142   :  { %2809 = vmatprep.subr.bf16.mxu0 %v4228_v31  ;;  %2634 = vmatprep.mubr.bf16.mxu1 %v146_v32  ;;  %v121_v30 = vld [vmem:[#allocation2 + $0x30] sm:$0xff]  ;;  %v131_v31 = vld [vmem:[#allocation2 + $0x80] sm:$0xff]  ;;  %v124_v32 = vld [vmem:[#allocation2 + $0x48] sm:$0xff] }
 0x143   :  { %2839 = vmatprep.mubr.bf16.mxu0 %v156_v33  ;;  %v134_v33 = vld [vmem:[#allocation2 + $0x98] sm:$0xff] }
 0x144   :  { %2605 = vmatpush1.bf16.msra.mxu1 %v4223_v34  ;;  %v145_v34 = vpack.c.bf16 %v121_v30, %v121_v30  ;;  %v4397_v30 = vld [vmem:[#allocation5 + $0x4e0] ss:$8 sps:$4 sm:$0xff]  }
 0x145   :  { %2810 = vmatpush1.bf16.msra.mxu0 %v4226_v35  ;;  %2606 = vmatprep.subr.bf16.mxu1 %v4231_v36  ;;  %v155_v35 = vpack.c.bf16 %v131_v31, %v131_v31  ;;  %v4313_v36 = vld [vmem:[#allocation5 + $0x400] ss:$8 sps:$4 sm:$0xff]  }
 0x146   :  { %2811 = vmatprep.subr.bf16.mxu0 %v4234_v37  ;;  %v4316_v37 = vld [vmem:[#allocation5 + $0x900] ss:$8 sps:$4 sm:$0xff]  }
 0x147   :  { %v4400_v31 = vld [vmem:[#allocation5 + $0x9e0] ss:$8 sps:$4 sm:$0xff]  }
 0x148   :  { %2607 = vmatpush1.bf16.msra.mxu1 %v4229_v38  ;;  %v4321_v38 = vld [vmem:[#allocation5 + $0x414] ss:$8 sps:$4 sm:$0xff]  }
 0x149   :  { %2812 = vmatpush1.bf16.msra.mxu0 %v4232_v39  ;;  %2608 = vmatprep.subr.bf16.mxu1 %v4237_v40  ;;  %v4324_v39 = vld [vmem:[#allocation5 + $0x914] ss:$8 sps:$4 sm:$0xff]   ;;  %v4319_v40 = vld [vmem:[#allocation5 + $0x410] ss:$8 sps:$4 sm:$0xff]  }
 0x14a   :  { %2813 = vmatprep.subr.bf16.mxu0 %v4240_v41  ;;  %v4322_v41 = vld [vmem:[#allocation5 + $0x910] ss:$8 sps:$4 sm:$0xff]  }
 0x14c   :  { %2609 = vmatpush1.bf16.msra.mxu1 %v4235_v42  ;;  %v148_v42 = vpack.c.bf16 %v124_v32, %v124_v32  ;;  %v4405_v32 = vld [vmem:[#allocation5 + $0x4f4] ss:$8 sps:$4 sm:$0xff]  }
 0x14d   :  { %2814 = vmatpush1.bf16.msra.mxu0 %v4238_v43  ;;  %2610 = vmatprep.subr.bf16.mxu1 %v4243_v44  ;;  %v158_v43 = vpack.c.bf16 %v134_v33, %v134_v33  ;;  %v4327_v44 = vld [vmem:[#allocation5 + $0x424] ss:$8 sps:$4 sm:$0xff]   ;;  %v4408_v33 = vld [vmem:[#allocation5 + $0x9f4] ss:$8 sps:$4 sm:$0xff]  }
 0x14e   :  { %2815 = vmatprep.subr.bf16.mxu0 %v4246_v45  ;;  %v4330_v45 = vld [vmem:[#allocation5 + $0x924] ss:$8 sps:$4 sm:$0xff]  }
 0x150   :  { %2611 = vmatpush1.bf16.msra.mxu1 %v4241_v46  ;;  %v4325_v46 = vld [vmem:[#allocation5 + $0x420] ss:$8 sps:$4 sm:$0xff]  }
 0x151   :  { %2816 = vmatpush1.bf16.msra.mxu0 %v4244_v47  ;;  %2612 = vmatprep.subr.bf16.mxu1 %v4249_v48  ;;  %v4328_v47 = vld [vmem:[#allocation5 + $0x920] ss:$8 sps:$4 sm:$0xff]   ;;  %v4333_v48 = vld [vmem:[#allocation5 + $0x434] ss:$8 sps:$4 sm:$0xff]  }
 0x152   :  { %2817 = vmatprep.subr.bf16.mxu0 %v4252_v49  ;;  %v4336_v49 = vld [vmem:[#allocation5 + $0x934] ss:$8 sps:$4 sm:$0xff]  }
 0x154   :  { %2613 = vmatpush1.bf16.msra.mxu1 %v4247_v50  ;;  %v4331_v50 = vld [vmem:[#allocation5 + $0x430] ss:$8 sps:$4 sm:$0xff]  }
 0x155   :  { %2818 = vmatpush1.bf16.msra.mxu0 %v4250_v51  ;;  %2614 = vmatprep.subr.bf16.mxu1 %v4255_v52  ;;  %v4334_v51 = vld [vmem:[#allocation5 + $0x930] ss:$8 sps:$4 sm:$0xff]   ;;  %v4339_v52 = vld [vmem:[#allocation5 + $0x444] ss:$8 sps:$4 sm:$0xff]  }
 0x156   :  { %2819 = vmatprep.subr.bf16.mxu0 %v4258_v53  ;;  %v4342_v53 = vld [vmem:[#allocation5 + $0x944] ss:$8 sps:$4 sm:$0xff]  }
 0x158   :  { %2615 = vmatpush1.bf16.msra.mxu1 %v4253_v54  ;;  %v4337_v54 = vld [vmem:[#allocation5 + $0x440] ss:$8 sps:$4 sm:$0xff]  }
 0x159   :  { %2820 = vmatpush1.bf16.msra.mxu0 %v4256_v55  ;;  %2616 = vmatprep.subr.bf16.mxu1 %v4261_v56  ;;  %v4340_v55 = vld [vmem:[#allocation5 + $0x940] ss:$8 sps:$4 sm:$0xff]   ;;  %v4345_v56 = vld [vmem:[#allocation5 + $0x454] ss:$8 sps:$4 sm:$0xff]  }
 0x15a   :  { %2821 = vmatprep.subr.bf16.mxu0 %v4264_v57  ;;  %v4348_v57 = vld [vmem:[#allocation5 + $0x954] ss:$8 sps:$4 sm:$0xff]  }
 0x15c   :  { %2617 = vmatpush1.bf16.msra.mxu1 %v4259_v58  ;;  %v4343_v58 = vld [vmem:[#allocation5 + $0x450] ss:$8 sps:$4 sm:$0xff]  }
 0x15d   :  { %2822 = vmatpush1.bf16.msra.mxu0 %v4262_v59  ;;  %2618 = vmatprep.subr.bf16.mxu1 %v4267_v60  ;;  %v4346_v59 = vld [vmem:[#allocation5 + $0x950] ss:$8 sps:$4 sm:$0xff]   ;;  %v4351_v60 = vld [vmem:[#allocation5 + $0x464] ss:$8 sps:$4 sm:$0xff]  }
 0x15e   :  { %2823 = vmatprep.subr.bf16.mxu0 %v4270_v61  ;;  %v4354_v61 = vld [vmem:[#allocation5 + $0x964] ss:$8 sps:$4 sm:$0xff]  }
 0x160   :  { %2619 = vmatpush1.bf16.msra.mxu1 %v4265_v62  ;;  %v4349_v62 = vld [vmem:[#allocation5 + $0x460] ss:$8 sps:$4 sm:$0xff]  }
 0x161   :  { %2824 = vmatpush1.bf16.msra.mxu0 %v4268_v63  ;;  %2620 = vmatprep.subr.bf16.mxu1 %v4273_v0  ;;  %v4352_v63 = vld [vmem:[#allocation5 + $0x960] ss:$8 sps:$4 sm:$0xff]   ;;  %v4357_v0 = vld [vmem:[#allocation5 + $0x474] ss:$8 sps:$4 sm:$0xff]  }
 0x162   :  { %2825 = vmatprep.subr.bf16.mxu0 %v4276_v1  ;;  %v4360_v1 = vld [vmem:[#allocation5 + $0x974] ss:$8 sps:$4 sm:$0xff]  }
 0x164   :  { %2621 = vmatpush1.bf16.msra.mxu1 %v4271_v2  ;;  %v4355_v2 = vld [vmem:[#allocation5 + $0x470] ss:$8 sps:$4 sm:$0xff]  }
 0x165   :  { %2826 = vmatpush1.bf16.msra.mxu0 %v4274_v3  ;;  %2622 = vmatprep.subr.bf16.mxu1 %v4279_v4  ;;  %v4358_v3 = vld [vmem:[#allocation5 + $0x970] ss:$8 sps:$4 sm:$0xff]   ;;  %v4363_v4 = vld [vmem:[#allocation5 + $0x484] ss:$8 sps:$4 sm:$0xff]  }
 0x166   :  { %2827 = vmatprep.subr.bf16.mxu0 %v4282_v5  ;;  %v4366_v5 = vld [vmem:[#allocation5 + $0x984] ss:$8 sps:$4 sm:$0xff]  }
 0x168   :  { %2623 = vmatpush1.bf16.msra.mxu1 %v4277_v6  ;;  %v4361_v6 = vld [vmem:[#allocation5 + $0x480] ss:$8 sps:$4 sm:$0xff]  }
 0x169   :  { %2828 = vmatpush1.bf16.msra.mxu0 %v4280_v7  ;;  %2624 = vmatprep.subr.bf16.mxu1 %v4285_v8  ;;  %v4364_v7 = vld [vmem:[#allocation5 + $0x980] ss:$8 sps:$4 sm:$0xff]   ;;  %v4369_v8 = vld [vmem:[#allocation5 + $0x494] ss:$8 sps:$4 sm:$0xff]  }
 0x16a   :  { %2829 = vmatprep.subr.bf16.mxu0 %v4288_v9  ;;  %v4372_v9 = vld [vmem:[#allocation5 + $0x994] ss:$8 sps:$4 sm:$0xff]  }
 0x16c   :  { %2625 = vmatpush1.bf16.msra.mxu1 %v4283_v10  ;;  %v4367_v10 = vld [vmem:[#allocation5 + $0x490] ss:$8 sps:$4 sm:$0xff]  }
 0x16d   :  { %2830 = vmatpush1.bf16.msra.mxu0 %v4286_v11  ;;  %2626 = vmatprep.subr.bf16.mxu1 %v4291_v12  ;;  %v4370_v11 = vld [vmem:[#allocation5 + $0x990] ss:$8 sps:$4 sm:$0xff]   ;;  %v4375_v12 = vld [vmem:[#allocation5 + $0x4a4] ss:$8 sps:$4 sm:$0xff]  }
 0x16e   :  { %2831 = vmatprep.subr.bf16.mxu0 %v4294_v13  ;;  %v4378_v13 = vld [vmem:[#allocation5 + $0x9a4] ss:$8 sps:$4 sm:$0xff]  }
 0x170   :  { %2627 = vmatpush1.bf16.msra.mxu1 %v4289_v14  ;;  %v4373_v14 = vld [vmem:[#allocation5 + $0x4a0] ss:$8 sps:$4 sm:$0xff]  }
 0x171   :  { %2832 = vmatpush1.bf16.msra.mxu0 %v4292_v15  ;;  %2628 = vmatprep.subr.bf16.mxu1 %v4297_v16  ;;  %v4376_v15 = vld [vmem:[#allocation5 + $0x9a0] ss:$8 sps:$4 sm:$0xff]   ;;  %v4381_v16 = vld [vmem:[#allocation5 + $0x4b4] ss:$8 sps:$4 sm:$0xff]  }
 0x172   :  { %2833 = vmatprep.subr.bf16.mxu0 %v4300_v17  ;;  %v4384_v17 = vld [vmem:[#allocation5 + $0x9b4] ss:$8 sps:$4 sm:$0xff]  }
 0x174   :  { %2629 = vmatpush1.bf16.msra.mxu1 %v4295_v18  ;;  %v4379_v18 = vld [vmem:[#allocation5 + $0x4b0] ss:$8 sps:$4 sm:$0xff]  }
 0x175   :  { %2834 = vmatpush1.bf16.msra.mxu0 %v4298_v19  ;;  %2630 = vmatprep.subr.bf16.mxu1 %v4303_v20  ;;  %v4382_v19 = vld [vmem:[#allocation5 + $0x9b0] ss:$8 sps:$4 sm:$0xff]   ;;  %v4387_v20 = vld [vmem:[#allocation5 + $0x4c4] ss:$8 sps:$4 sm:$0xff]  }
 0x176   :  { %2835 = vmatprep.subr.bf16.mxu0 %v4306_v21  ;;  %v4390_v21 = vld [vmem:[#allocation5 + $0x9c4] ss:$8 sps:$4 sm:$0xff]  }
 0x178   :  { %2631 = vmatpush1.bf16.msra.mxu1 %v4301_v22  ;;  %v4385_v22 = vld [vmem:[#allocation5 + $0x4c0] ss:$8 sps:$4 sm:$0xff]  }
 0x179   :  { %2836 = vmatpush1.bf16.msra.mxu0 %v4304_v23  ;;  %2632 = vmatprep.subr.bf16.mxu1 %v4309_v24  ;;  %v4388_v23 = vld [vmem:[#allocation5 + $0x9c0] ss:$8 sps:$4 sm:$0xff]   ;;  %v4393_v24 = vld [vmem:[#allocation5 + $0x4d4] ss:$8 sps:$4 sm:$0xff]  }
 0x17a   :  { %2837 = vmatprep.subr.bf16.mxu0 %v4312_v25  ;;  %v4396_v25 = vld [vmem:[#allocation5 + $0x9d4] ss:$8 sps:$4 sm:$0xff]  }
 0x17c   :  { %2633 = vmatpush1.bf16.msra.mxu1 %v4307_v26  ;;  %v4391_v26 = vld [vmem:[#allocation5 + $0x4d0] ss:$8 sps:$4 sm:$0xff]  }
 0x17d   :  { %2838 = vmatpush1.bf16.msra.mxu0 %v4310_v27  ;;  %2643 = vmatprep.subr.bf16.mxu1 %v4315_v28  ;;  %v4394_v27 = vld [vmem:[#allocation5 + $0x9d0] ss:$8 sps:$4 sm:$0xff]   ;;  %v4399_v28 = vld [vmem:[#allocation5 + $0x4e4] ss:$8 sps:$4 sm:$0xff]  }
 0x17e   :  { %2848 = vmatprep.subr.bf16.mxu0 %v4318_v29  ;;  %v4402_v29 = vld [vmem:[#allocation5 + $0x9e4] ss:$8 sps:$4 sm:$0xff]  }
 0x17f   :  { %2635 = vmatmul.mubr.bf16.vlgmr.msra.gmra.mrb[0].mxu1 %v145_v34  ;;  %v4403_v34 = vld [vmem:[#allocation5 + $0x4f0] ss:$8 sps:$4 sm:$0xff]  }
 0x180   :  { %2840 = vmatmul.mubr.bf16.vlgmr.msra.gmra.mrb[0].mxu0 %v155_v35  ;;  %2644 = vmatpush1.bf16.msra.mxu1 %v4313_v36  ;;  %v4406_v35 = vld [vmem:[#allocation5 + $0x9f0] ss:$8 sps:$4 sm:$0xff]   ;;  %v123_v36 = vld [vmem:[#allocation2 + $0x40] sm:$0xff] }
 0x181   :  { %2849 = vmatpush1.bf16.msra.mxu0 %v4316_v37  ;;  %2645 = vmatprep.subr.bf16.mxu1 %v4321_v38  ;;  %v133_v37 = vld [vmem:[#allocation2 + $0x90] sm:$0xff]  ;;  %v4411_v38 = vld [vmem:[#allocation5 + $0xa04] ss:$8 sps:$4 sm:$0xff]  }
 0x182   :  { %2850 = vmatprep.subr.bf16.mxu0 %v4324_v39  ;;  %2675 = vmatprep.mubr.bf16.mxu1 %v148_v42  ;;  %v136_v39 = vld [vmem:[#allocation2 + $0xa8] sm:$0xff] }
 0x183   :  { %2880 = vmatprep.mubr.bf16.mxu0 %v158_v43  ;;  %v4409_v42 = vld [vmem:[#allocation5 + $0xa00] ss:$8 sps:$4 sm:$0xff]   ;;  %v160_v43 = vpack.c.bf16 %v136_v39, %v136_v39 }
 0x184   :  { %2646 = vmatpush1.bf16.msra.mxu1 %v4319_v40  ;;  %v147_v40 = vpack.c.bf16 %v123_v36, %v123_v36  ;;  %v4481_v36 = vld [vmem:[#allocation5 + $0xb80] ss:$8 sps:$4 sm:$0xff]  }
 0x185   :  { %2851 = vmatpush1.bf16.msra.mxu0 %v4322_v41  ;;  %2647 = vmatprep.subr.bf16.mxu1 %v4327_v44  ;;  %v157_v41 = vpack.c.bf16 %v133_v37, %v133_v37  ;;  %v4414_v44 = vld [vmem:[#allocation5 + $0xa14] ss:$8 sps:$4 sm:$0xff]   ;;  %v4511_v37 = vld [vmem:[#allocation8 + $0x20] ss:$8 sps:$4 sm:$0xff]  }
 0x186   :  { %2852 = vmatprep.subr.bf16.mxu0 %v4330_v45  ;;  %v4412_v45 = vld [vmem:[#allocation5 + $0xa10] ss:$8 sps:$4 sm:$0xff]  }
 0x187   :  { %v4516_v39 = vld [vmem:[#allocation8 + $0x34] ss:$8 sps:$4 sm:$0xff]  }
 0x188   :  { %2648 = vmatpush1.bf16.msra.mxu1 %v4325_v46  ;;  %v4417_v46 = vld [vmem:[#allocation5 + $0xa24] ss:$8 sps:$4 sm:$0xff]  }
 0x189   :  { %2853 = vmatpush1.bf16.msra.mxu0 %v4328_v47  ;;  %2649 = vmatprep.subr.bf16.mxu1 %v4333_v48  ;;  %v4415_v47 = vld [vmem:[#allocation5 + $0xa20] ss:$8 sps:$4 sm:$0xff]   ;;  %v4420_v48 = vld [vmem:[#allocation5 + $0xa34] ss:$8 sps:$4 sm:$0xff]  }
 0x18a   :  { %2854 = vmatprep.subr.bf16.mxu0 %v4336_v49  ;;  %v4418_v49 = vld [vmem:[#allocation5 + $0xa30] ss:$8 sps:$4 sm:$0xff]  }
 0x18c   :  { %2650 = vmatpush1.bf16.msra.mxu1 %v4331_v50  ;;  %v4423_v50 = vld [vmem:[#allocation5 + $0xa44] ss:$8 sps:$4 sm:$0xff]  }
 0x18d   :  { %2855 = vmatpush1.bf16.msra.mxu0 %v4334_v51  ;;  %2651 = vmatprep.subr.bf16.mxu1 %v4339_v52  ;;  %v4421_v51 = vld [vmem:[#allocation5 + $0xa40] ss:$8 sps:$4 sm:$0xff]   ;;  %v4426_v52 = vld [vmem:[#allocation5 + $0xa54] ss:$8 sps:$4 sm:$0xff]  }
 0x18e   :  { %2856 = vmatprep.subr.bf16.mxu0 %v4342_v53  ;;  %v4424_v53 = vld [vmem:[#allocation5 + $0xa50] ss:$8 sps:$4 sm:$0xff]  }
 0x190   :  { %2652 = vmatpush1.bf16.msra.mxu1 %v4337_v54  ;;  %v4429_v54 = vld [vmem:[#allocation5 + $0xa64] ss:$8 sps:$4 sm:$0xff]  }
 0x191   :  { %2857 = vmatpush1.bf16.msra.mxu0 %v4340_v55  ;;  %2653 = vmatprep.subr.bf16.mxu1 %v4345_v56  ;;  %v4427_v55 = vld [vmem:[#allocation5 + $0xa60] ss:$8 sps:$4 sm:$0xff]   ;;  %v4432_v56 = vld [vmem:[#allocation5 + $0xa74] ss:$8 sps:$4 sm:$0xff]  }
 0x192   :  { %2858 = vmatprep.subr.bf16.mxu0 %v4348_v57  ;;  %v4430_v57 = vld [vmem:[#allocation5 + $0xa70] ss:$8 sps:$4 sm:$0xff]  }
 0x194   :  { %2654 = vmatpush1.bf16.msra.mxu1 %v4343_v58  ;;  %v4435_v58 = vld [vmem:[#allocation5 + $0xa84] ss:$8 sps:$4 sm:$0xff]  }
 0x195   :  { %2859 = vmatpush1.bf16.msra.mxu0 %v4346_v59  ;;  %2655 = vmatprep.subr.bf16.mxu1 %v4351_v60  ;;  %v4433_v59 = vld [vmem:[#allocation5 + $0xa80] ss:$8 sps:$4 sm:$0xff]   ;;  %v4438_v60 = vld [vmem:[#allocation5 + $0xa94] ss:$8 sps:$4 sm:$0xff]  }
 0x196   :  { %2860 = vmatprep.subr.bf16.mxu0 %v4354_v61  ;;  %v4436_v61 = vld [vmem:[#allocation5 + $0xa90] ss:$8 sps:$4 sm:$0xff]  }
 0x198   :  { %2656 = vmatpush1.bf16.msra.mxu1 %v4349_v62  ;;  %v4441_v62 = vld [vmem:[#allocation5 + $0xaa4] ss:$8 sps:$4 sm:$0xff]  }
 0x199   :  { %2861 = vmatpush1.bf16.msra.mxu0 %v4352_v63  ;;  %2657 = vmatprep.subr.bf16.mxu1 %v4357_v0  ;;  %v4439_v63 = vld [vmem:[#allocation5 + $0xaa0] ss:$8 sps:$4 sm:$0xff]   ;;  %v4444_v0 = vld [vmem:[#allocation5 + $0xab4] ss:$8 sps:$4 sm:$0xff]  }
 0x19a   :  { %2862 = vmatprep.subr.bf16.mxu0 %v4360_v1  ;;  %v4442_v1 = vld [vmem:[#allocation5 + $0xab0] ss:$8 sps:$4 sm:$0xff]  }
 0x19c   :  { %2658 = vmatpush1.bf16.msra.mxu1 %v4355_v2  ;;  %v4447_v2 = vld [vmem:[#allocation5 + $0xac4] ss:$8 sps:$4 sm:$0xff]  }
 0x19d   :  { %2863 = vmatpush1.bf16.msra.mxu0 %v4358_v3  ;;  %2659 = vmatprep.subr.bf16.mxu1 %v4363_v4  ;;  %v4445_v3 = vld [vmem:[#allocation5 + $0xac0] ss:$8 sps:$4 sm:$0xff]   ;;  %v4450_v4 = vld [vmem:[#allocation5 + $0xad4] ss:$8 sps:$4 sm:$0xff]  }
 0x19e   :  { %2864 = vmatprep.subr.bf16.mxu0 %v4366_v5  ;;  %v4448_v5 = vld [vmem:[#allocation5 + $0xad0] ss:$8 sps:$4 sm:$0xff]  }
 0x1a0   :  { %2660 = vmatpush1.bf16.msra.mxu1 %v4361_v6  ;;  %v4453_v6 = vld [vmem:[#allocation5 + $0xae4] ss:$8 sps:$4 sm:$0xff]  }
 0x1a1   :  { %2865 = vmatpush1.bf16.msra.mxu0 %v4364_v7  ;;  %2661 = vmatprep.subr.bf16.mxu1 %v4369_v8  ;;  %v4451_v7 = vld [vmem:[#allocation5 + $0xae0] ss:$8 sps:$4 sm:$0xff]   ;;  %v4456_v8 = vld [vmem:[#allocation5 + $0xaf4] ss:$8 sps:$4 sm:$0xff]  }
 0x1a2   :  { %2866 = vmatprep.subr.bf16.mxu0 %v4372_v9  ;;  %v4454_v9 = vld [vmem:[#allocation5 + $0xaf0] ss:$8 sps:$4 sm:$0xff]  }
 0x1a4   :  { %2662 = vmatpush1.bf16.msra.mxu1 %v4367_v10  ;;  %v135_v10 = vld [vmem:[#allocation2 + $0xa0] sm:$0xff] }
 0x1a5   :  { %2867 = vmatpush1.bf16.msra.mxu0 %v4370_v11  ;;  %2663 = vmatprep.subr.bf16.mxu1 %v4375_v12  ;;  %v4459_v11 = vld [vmem:[#allocation5 + $0xb04] ss:$8 sps:$4 sm:$0xff]   ;;  %v138_v12 = vld [vmem:[#allocation2 + $0xb8] sm:$0xff] }
 0x1a6   :  { %2868 = vmatprep.subr.bf16.mxu0 %v4378_v13  ;;  %v159_v13 = vpack.c.bf16 %v135_v10, %v135_v10 }
 0x1a8   :  { %2664 = vmatpush1.bf16.msra.mxu1 %v4373_v14  ;;  %v4457_v14 = vld [vmem:[#allocation5 + $0xb00] ss:$8 sps:$4 sm:$0xff]  }
 0x1a9   :  { %2869 = vmatpush1.bf16.msra.mxu0 %v4376_v15  ;;  %2665 = vmatprep.subr.bf16.mxu1 %v4381_v16  ;;  %v162_v15 = vpack.c.bf16 %v138_v12, %v138_v12  ;;  %v4462_v16 = vld [vmem:[#allocation5 + $0xb14] ss:$8 sps:$4 sm:$0xff]  }
 0x1aa   :  { %2870 = vmatprep.subr.bf16.mxu0 %v4384_v17  ;;  %v4460_v17 = vld [vmem:[#allocation5 + $0xb10] ss:$8 sps:$4 sm:$0xff]  }
 0x1ac   :  { %2666 = vmatpush1.bf16.msra.mxu1 %v4379_v18  ;;  %v4465_v18 = vld [vmem:[#allocation5 + $0xb24] ss:$8 sps:$4 sm:$0xff]  }
 0x1ad   :  { %2871 = vmatpush1.bf16.msra.mxu0 %v4382_v19  ;;  %2667 = vmatprep.subr.bf16.mxu1 %v4387_v20  ;;  %v4463_v19 = vld [vmem:[#allocation5 + $0xb20] ss:$8 sps:$4 sm:$0xff]   ;;  %v4468_v20 = vld [vmem:[#allocation5 + $0xb34] ss:$8 sps:$4 sm:$0xff]  }
 0x1ae   :  { %2872 = vmatprep.subr.bf16.mxu0 %v4390_v21  ;;  %v4466_v21 = vld [vmem:[#allocation5 + $0xb30] ss:$8 sps:$4 sm:$0xff]  }
 0x1b0   :  { %2668 = vmatpush1.bf16.msra.mxu1 %v4385_v22  ;;  %v4471_v22 = vld [vmem:[#allocation5 + $0xb44] ss:$8 sps:$4 sm:$0xff]  }
 0x1b1   :  { %2873 = vmatpush1.bf16.msra.mxu0 %v4388_v23  ;;  %2669 = vmatprep.subr.bf16.mxu1 %v4393_v24  ;;  %v4469_v23 = vld [vmem:[#allocation5 + $0xb40] ss:$8 sps:$4 sm:$0xff]   ;;  %v4474_v24 = vld [vmem:[#allocation5 + $0xb54] ss:$8 sps:$4 sm:$0xff]  }
 0x1b2   :  { %2874 = vmatprep.subr.bf16.mxu0 %v4396_v25  ;;  %v4472_v25 = vld [vmem:[#allocation5 + $0xb50] ss:$8 sps:$4 sm:$0xff]  }
 0x1b4   :  { %2670 = vmatpush1.bf16.msra.mxu1 %v4391_v26  ;;  %v4477_v26 = vld [vmem:[#allocation5 + $0xb64] ss:$8 sps:$4 sm:$0xff]  }
 0x1b5   :  { %2875 = vmatpush1.bf16.msra.mxu0 %v4394_v27  ;;  %2671 = vmatprep.subr.bf16.mxu1 %v4399_v28  ;;  %v4475_v27 = vld [vmem:[#allocation5 + $0xb60] ss:$8 sps:$4 sm:$0xff]   ;;  %v4480_v28 = vld [vmem:[#allocation5 + $0xb74] ss:$8 sps:$4 sm:$0xff]  }
 0x1b6   :  { %2876 = vmatprep.subr.bf16.mxu0 %v4402_v29  ;;  %v4505_v29 = vld [vmem:[#allocation8] ss:$8 sps:$4 sm:$0xff]  }
 0x1b8   :  { %2672 = vmatpush1.bf16.msra.mxu1 %v4397_v30  ;;  %v4507_v30 = vld [vmem:[#allocation8 + $0x4] ss:$8 sps:$4 sm:$0xff]  }
 0x1b9   :  { %2877 = vmatpush1.bf16.msra.mxu0 %v4400_v31  ;;  %2673 = vmatprep.subr.bf16.mxu1 %v4405_v32  ;;  %v4510_v31 = vld [vmem:[#allocation8 + $0x14] ss:$8 sps:$4 sm:$0xff]  }
 0x1ba   :  { %2878 = vmatprep.subr.bf16.mxu0 %v4408_v33  ;;  %v4478_v32 = vld [vmem:[#allocation5 + $0xb70] ss:$8 sps:$4 sm:$0xff]  }
 0x1bb   :  { %v4508_v33 = vld [vmem:[#allocation8 + $0x10] ss:$8 sps:$4 sm:$0xff]  }
 0x1bc   :  { %2674 = vmatpush1.bf16.msra.mxu1 %v4403_v34  ;;  %v4483_v34 = vld [vmem:[#allocation5 + $0xb84] ss:$8 sps:$4 sm:$0xff]  }
 0x1bd   :  { %2879 = vmatpush1.bf16.msra.mxu0 %v4406_v35  ;;  %3179 = vmatprep.subr.bf16.mxu1 %v4507_v30  ;;  %v4513_v35 = vld [vmem:[#allocation8 + $0x24] ss:$8 sps:$4 sm:$0xff]  }
 0x1be   :  { %2889 = vmatprep.subr.bf16.mxu0 %v4411_v38  ;;  %v4486_v38 = vld [vmem:[#allocation5 + $0xb94] ss:$8 sps:$4 sm:$0xff]  }
 0x1bf   :  { %2676 = vmatmul.mubr.bf16.vlgmr.msra.gmra.mrb[0].mxu1 %v147_v40  ;;  %v4484_v40 = vld [vmem:[#allocation5 + $0xb90] ss:$8 sps:$4 sm:$0xff]  }
 0x1c0   :  { %2881 = vmatmul.mubr.bf16.vlgmr.msra.gmra.mrb[0].mxu0 %v157_v41  ;;  %3180 = vmatpush1.bf16.msra.mxu1 %v4505_v29  ;;  %v4514_v41 = vld [vmem:[#allocation8 + $0x30] ss:$8 sps:$4 sm:$0xff]  }
 0x1c1   :  { %2890 = vmatpush1.bf16.msra.mxu0 %v4409_v42  ;;  %2921 = vmatprep.mubr.bf16.mxu0 %v160_v43  ;;  %v4489_v42 = vld [vmem:[#allocation5 + $0xba4] ss:$8 sps:$4 sm:$0xff]  }
 0x1c2   :  { %2891 = vmatprep.subr.bf16.mxu0 %v4414_v44  ;;  %3181 = vmatprep.subr.bf16.mxu1 %v4510_v31  ;;  %v4519_v43 = vld [vmem:[#allocation8 + $0x44] ss:$8 sps:$4 sm:$0xff]  }
 0x1c3   :  { %v4487_v44 = vld [vmem:[#allocation5 + $0xba0] ss:$8 sps:$4 sm:$0xff]  }
 0x1c4   :  { %3182 = vmatpush1.bf16.msra.mxu1 %v4508_v33 }
 0x1c5   :  { %2892 = vmatpush1.bf16.msra.mxu0 %v4412_v45  ;;  %3183 = vmatprep.subr.bf16.mxu1 %v4513_v35  ;;  %v4517_v45 = vld [vmem:[#allocation8 + $0x40] ss:$8 sps:$4 sm:$0xff]  }
 0x1c6   :  { %2893 = vmatprep.subr.bf16.mxu0 %v4417_v46  ;;  %v4492_v46 = vld [vmem:[#allocation5 + $0xbb4] ss:$8 sps:$4 sm:$0xff]  }
 0x1c8   :  { %3184 = vmatpush1.bf16.msra.mxu1 %v4511_v37 }
 0x1c9   :  { %2894 = vmatpush1.bf16.msra.mxu0 %v4415_v47  ;;  %3185 = vmatprep.subr.bf16.mxu1 %v4516_v39  ;;  %v4522_v47 = vld [vmem:[#allocation8 + $0x54] ss:$8 sps:$4 sm:$0xff]   ;;  %v4554_v39 = vld [vmem:[#allocation11] sm:$0xff]  }
 0x1ca   :  { %2895 = vmatprep.subr.bf16.mxu0 %v4420_v48  ;;  %v4490_v48 = vld [vmem:[#allocation5 + $0xbb0] ss:$8 sps:$4 sm:$0xff]  }
 0x1cc   :  { %3186 = vmatpush1.bf16.msra.mxu1 %v4514_v41  ;;  %v4555_v41 = vld [vmem:[#allocation11 + $0x48] sm:$0xff]  }
 0x1cd   :  { %2896 = vmatpush1.bf16.msra.mxu0 %v4418_v49  ;;  %3187 = vmatprep.subr.bf16.mxu1 %v4519_v43  ;;  %v4520_v49 = vld [vmem:[#allocation8 + $0x50] ss:$8 sps:$4 sm:$0xff]  }
 0x1ce   :  { %2897 = vmatprep.subr.bf16.mxu0 %v4423_v50  ;;  %v4495_v50 = vld [vmem:[#allocation5 + $0xbc4] ss:$8 sps:$4 sm:$0xff]   ;;  %v4557_v43 = vld [vmem:[#allocation11 + $0x50] sm:$0xff]  }
 0x1d0   :  { %3188 = vmatpush1.bf16.msra.mxu1 %v4517_v45  ;;  %v4559_v45 = vld [vmem:[#allocation11 + $0x58] sm:$0xff]  }
 0x1d1   :  { %2898 = vmatpush1.bf16.msra.mxu0 %v4421_v51  ;;  %3189 = vmatprep.subr.bf16.mxu1 %v4522_v47  ;;  %v4525_v51 = vld [vmem:[#allocation8 + $0x64] ss:$8 sps:$4 sm:$0xff]  }
 0x1d2   :  { %2899 = vmatprep.subr.bf16.mxu0 %v4426_v52  ;;  %v4493_v52 = vld [vmem:[#allocation5 + $0xbc0] ss:$8 sps:$4 sm:$0xff]  }
 0x1d3   :  { %v4561_v47 = vld [vmem:[#allocation11 + $0x60] sm:$0xff]  }
 0x1d4   :  { %3190 = vmatpush1.bf16.msra.mxu1 %v4520_v49  ;;  %v4563_v49 = vld [vmem:[#allocation11 + $0x68] sm:$0xff]  }
 0x1d5   :  { %2900 = vmatpush1.bf16.msra.mxu0 %v4424_v53  ;;  %v4523_v53 = vld [vmem:[#allocation8 + $0x60] ss:$8 sps:$4 sm:$0xff]   ;;  %3191 = vmatprep.subr.bf16.mxu1 %v4525_v51  ;;  %v4565_v51 = vld [vmem:[#allocation11 + $0x70] sm:$0xff]  }
 0x1d6   :  { %2901 = vmatprep.subr.bf16.mxu0 %v4429_v54  ;;  %v4498_v54 = vld [vmem:[#allocation5 + $0xbd4] ss:$8 sps:$4 sm:$0xff]  }
 0x1d8   :  { %3192 = vmatpush1.bf16.msra.mxu1 %v4523_v53  ;;  %v4567_v53 = vld [vmem:[#allocation11 + $0x78] sm:$0xff]  }
 0x1d9   :  { %2902 = vmatpush1.bf16.msra.mxu0 %v4427_v55  ;;  %v4528_v55 = vld [vmem:[#allocation8 + $0x74] ss:$8 sps:$4 sm:$0xff]  }
 0x1da   :  { %2903 = vmatprep.subr.bf16.mxu0 %v4432_v56  ;;  %v4496_v56 = vld [vmem:[#allocation5 + $0xbd0] ss:$8 sps:$4 sm:$0xff]   ;;  %3193 = vmatprep.subr.bf16.mxu1 %v4528_v55  ;;  %v3007_v55 = vld [vmem:[#allocation10] sm:$0x3] }
 0x1dd   :  { %2904 = vmatpush1.bf16.msra.mxu0 %v4430_v57  ;;  %v4526_v57 = vld [vmem:[#allocation8 + $0x70] ss:$8 sps:$4 sm:$0xff]  }
 0x1de   :  { %2905 = vmatprep.subr.bf16.mxu0 %v4435_v58  ;;  %v4501_v58 = vld [vmem:[#allocation5 + $0xbe4] ss:$8 sps:$4 sm:$0xff]   ;;  %3194 = vmatpush1.bf16.msra.mxu1 %v4526_v57 }
 0x1e1   :  { %2906 = vmatpush1.bf16.msra.mxu0 %v4433_v59  ;;  %v4531_v59 = vld [vmem:[#allocation8 + $0x84] ss:$8 sps:$4 sm:$0xff]  }
 0x1e2   :  { %2907 = vmatprep.subr.bf16.mxu0 %v4438_v60  ;;  %v4499_v60 = vld [vmem:[#allocation5 + $0xbe0] ss:$8 sps:$4 sm:$0xff]   ;;  %3195 = vmatprep.subr.bf16.mxu1 %v4531_v59 }
 0x1e5   :  { %2908 = vmatpush1.bf16.msra.mxu0 %v4436_v61  ;;  %v4529_v61 = vld [vmem:[#allocation8 + $0x80] ss:$8 sps:$4 sm:$0xff]  }
 0x1e6   :  { %2909 = vmatprep.subr.bf16.mxu0 %v4441_v62  ;;  %v4504_v62 = vld [vmem:[#allocation5 + $0xbf4] ss:$8 sps:$4 sm:$0xff]   ;;  %3196 = vmatpush1.bf16.msra.mxu1 %v4529_v61 }
 0x1e9   :  { %2910 = vmatpush1.bf16.msra.mxu0 %v4439_v63  ;;  %v4534_v63 = vld [vmem:[#allocation8 + $0x94] ss:$8 sps:$4 sm:$0xff]  }
 0x1ea   :  { %2911 = vmatprep.subr.bf16.mxu0 %v4444_v0  ;;  %v4502_v0 = vld [vmem:[#allocation5 + $0xbf0] ss:$8 sps:$4 sm:$0xff]   ;;  %3197 = vmatprep.subr.bf16.mxu1 %v4534_v63 }
 0x1ed   :  { %2912 = vmatpush1.bf16.msra.mxu0 %v4442_v1  ;;  %v137_v1 = vld [vmem:[#allocation2 + $0xb0] sm:$0xff] }
 0x1ee   :  { %2913 = vmatprep.subr.bf16.mxu0 %v4447_v2  ;;  %v4532_v2 = vld [vmem:[#allocation8 + $0x90] ss:$8 sps:$4 sm:$0xff]  }
 0x1ef   :  { %3198 = vmatpush1.bf16.msra.mxu1 %v4532_v2 }
 0x1f1   :  { %2914 = vmatpush1.bf16.msra.mxu0 %v4445_v3  ;;  %v4537_v3 = vld [vmem:[#allocation8 + $0xa4] ss:$8 sps:$4 sm:$0xff]  }
 0x1f2   :  { %2915 = vmatprep.subr.bf16.mxu0 %v4450_v4  ;;  %v161_v4 = vpack.c.bf16 %v137_v1, %v137_v1  ;;  %3199 = vmatprep.subr.bf16.mxu1 %v4537_v3 }
 0x1f5   :  { %2916 = vmatpush1.bf16.msra.mxu0 %v4448_v5  ;;  %v4535_v5 = vld [vmem:[#allocation8 + $0xa0] ss:$8 sps:$4 sm:$0xff]  }
 0x1f6   :  { %2917 = vmatprep.subr.bf16.mxu0 %v4453_v6  ;;  %v4540_v6 = vld [vmem:[#allocation8 + $0xb4] ss:$8 sps:$4 sm:$0xff]   ;;  %3200 = vmatpush1.bf16.msra.mxu1 %v4535_v5  ;;  %v3834_v5 = vld [vmem:[#allocation13] ss:$0 sm:$0xff] }
 0x1f7   :  { %3201 = vmatprep.subr.bf16.mxu1 %v4540_v6 }
 0x1f9   :  { %2918 = vmatpush1.bf16.msra.mxu0 %v4451_v7  ;;  %v4538_v7 = vld [vmem:[#allocation8 + $0xb0] ss:$8 sps:$4 sm:$0xff]  }
 0x1fa   :  { %2919 = vmatprep.subr.bf16.mxu0 %v4456_v8  ;;  %3202 = vmatpush1.bf16.msra.mxu1 %v4538_v7 }
 0x1fd   :  { %2920 = vmatpush1.bf16.msra.mxu0 %v4454_v9  ;;  %v4543_v9 = vld [vmem:[#allocation8 + $0xc4] ss:$8 sps:$4 sm:$0xff]  }
 0x1fe   :  { %2930 = vmatprep.subr.bf16.mxu0 %v4459_v11  ;;  %v4541_v11 = vld [vmem:[#allocation8 + $0xc0] ss:$8 sps:$4 sm:$0xff]   ;;  %3203 = vmatprep.subr.bf16.mxu1 %v4543_v9 }
 0x1ff   :  { %3204 = vmatpush1.bf16.msra.mxu1 %v4541_v11 }
 0x200   :  { %2922 = vmatmul.mubr.bf16.vlgmr.msra.gmra.mrb[0].mxu0 %v159_v13 }
 0x201   :  { %2931 = vmatpush1.bf16.msra.mxu0 %v4457_v14  ;;  %2962 = vmatprep.mubr.bf16.mxu0 %v162_v15  ;;  %v4546_v14 = vld [vmem:[#allocation8 + $0xd4] ss:$8 sps:$4 sm:$0xff]   ;;  %v4544_v15 = vld [vmem:[#allocation8 + $0xd0] ss:$8 sps:$4 sm:$0xff]  }
 0x202   :  { %2932 = vmatprep.subr.bf16.mxu0 %v4462_v16  ;;  %3205 = vmatprep.subr.bf16.mxu1 %v4546_v14  ;;  %v4549_v16 = vld [vmem:[#allocation8 + $0xe4] ss:$8 sps:$4 sm:$0xff]  }
 0x203   :  { %3206 = vmatpush1.bf16.msra.mxu1 %v4544_v15 }
 0x204   :  { %3207 = vmatprep.subr.bf16.mxu1 %v4549_v16 }
 0x205   :  { %2933 = vmatpush1.bf16.msra.mxu0 %v4460_v17  ;;  %v4547_v17 = vld [vmem:[#allocation8 + $0xe0] ss:$8 sps:$4 sm:$0xff]  }
 0x206   :  { %2934 = vmatprep.subr.bf16.mxu0 %v4465_v18  ;;  %v4552_v18 = vld [vmem:[#allocation8 + $0xf4] ss:$8 sps:$4 sm:$0xff]  }
 0x207   :  { %3208 = vmatpush1.bf16.msra.mxu1 %v4547_v17 }
 0x208   :  { %3209 = vmatprep.subr.bf16.mxu1 %v4552_v18 }
 0x209   :  { %2935 = vmatpush1.bf16.msra.mxu0 %v4463_v19  ;;  %v4550_v19 = vld [vmem:[#allocation8 + $0xf0] ss:$8 sps:$4 sm:$0xff]  }
 0x20a   :  { %2936 = vmatprep.subr.bf16.mxu0 %v4468_v20  ;;  %v4553_v20 = vld [vmem:[#allocation11 + $0x40] sm:$0xff]  }
 0x20b   :  { %3210 = vmatpush1.bf16.msra.mxu1 %v4550_v19 }
 0x20c   :  { %3851 = vmatprep.subr.bf16.mxu1 %v4553_v20 }
 0x20d   :  { %2937 = vmatpush1.bf16.msra.mxu0 %v4466_v21  ;;  %v549_v21 = vlaneseq }
 0x20e   :  { %2938 = vmatprep.subr.bf16.mxu0 %v4471_v22 }
 0x20f   :  { %v550_v22 = vshrl.u32 %v549_v21, 7 }
 0x211   :  { %2939 = vmatpush1.bf16.msra.mxu0 %v4469_v23  ;;  %v551_v23 = vsub.s32 0, %v550_v22 }
 0x212   :  { %2940 = vmatprep.subr.bf16.mxu0 %v4474_v24  ;;  %v547_v24 = vld [vmem:[#allocation7] sm:$0x3] }
 0x215   :  { %2941 = vmatpush1.bf16.msra.mxu0 %v4472_v25  ;;  %v555_v25 = vsub.s32 1, %v550_v22 }
 0x216   :  { %2942 = vmatprep.subr.bf16.mxu0 %v4477_v26  ;;  %v552_v26 = vrot.slane %v547_v24, %v551_v23 }
 0x217   :  { %v3016_v57 = vrot.slane %v3007_v55, %v555_v25 }
 0x219   :  { %2943 = vmatpush1.bf16.msra.mxu0 %v4475_v27  ;;  %v556_v27 = vrot.slane %v547_v24, %v555_v25 }
 0x21a   :  { %2944 = vmatprep.subr.bf16.mxu0 %v4480_v28 }
 0x21d   :  { %2945 = vmatpush1.bf16.msra.mxu0 %v4478_v32 }
 0x21e   :  { %2946 = vmatprep.subr.bf16.mxu0 %v4483_v34 }
 0x221   :  { %2947 = vmatpush1.bf16.msra.mxu0 %v4481_v36 }
 0x222   :  { %2948 = vmatprep.subr.bf16.mxu0 %v4486_v38 }
 0x225   :  { %2949 = vmatpush1.bf16.msra.mxu0 %v4484_v40 }
 0x226   :  { %2950 = vmatprep.subr.bf16.mxu0 %v4489_v42  ;;  %v4556_v42 = vld [vmem:[#allocation11 + $0x8] sm:$0xff]  }
 0x229   :  { %2951 = vmatpush1.bf16.msra.mxu0 %v4487_v44  ;;  %v4558_v44 = vld [vmem:[#allocation11 + $0x10] sm:$0xff]  }
 0x22a   :  { %2952 = vmatprep.subr.bf16.mxu0 %v4492_v46  ;;  %v4560_v46 = vld [vmem:[#allocation11 + $0x18] sm:$0xff]  }
 0x22d   :  { %2953 = vmatpush1.bf16.msra.mxu0 %v4490_v48  ;;  %v4562_v48 = vld [vmem:[#allocation11 + $0x20] sm:$0xff]  }
 0x22e   :  { %2954 = vmatprep.subr.bf16.mxu0 %v4495_v50  ;;  %v4564_v50 = vld [vmem:[#allocation11 + $0x28] sm:$0xff]  }
 0x231   :  { %2955 = vmatpush1.bf16.msra.mxu0 %v4493_v52  ;;  %v4566_v52 = vld [vmem:[#allocation11 + $0x30] sm:$0xff]  }
 0x232   :  { %2956 = vmatprep.subr.bf16.mxu0 %v4498_v54  ;;  %v4568_v54 = vld [vmem:[#allocation11 + $0x38] sm:$0xff]  }
 0x235   :  { %2957 = vmatpush1.bf16.msra.mxu0 %v4496_v56  ;;  %v3012_v56 = vrot.slane %v3007_v55, %v551_v23 }
 0x236   :  { %2958 = vmatprep.subr.bf16.mxu0 %v4501_v58 }
 0x239   :  { %2959 = vmatpush1.bf16.msra.mxu0 %v4499_v60 }
 0x23a   :  { %2960 = vmatprep.subr.bf16.mxu0 %v4504_v62 }
 0x23d   :  { %2961 = vmatpush1.bf16.msra.mxu0 %v4502_v0 }
 0x240   :  { %2963 = vmatmul.mubr.bf16.vlgmr.msra.gmra.mrb[0].mxu0 %v161_v4 }
 0x292   :  { %v2677_v8 = vpop.f32.mrb[0].mxu1 }
 0x293   :  { %v2679_v10 = vpop.f32.mrb[1].mxu1  ;;  %v3873_v28 = vadd.f32 %v2677_v8, %v552_v26 }
 0x294   :  { %v2681_v12 = vpop.f32.mrb[2].mxu1  ;;  %v3875_v29 = vadd.f32 %v2679_v10, %v556_v27 }
 0x295   :  { %v2682_v13 = vpop.f32.mrb[3].mxu1 }
 0x313   :  { %v2964_v30 = vpop.f32.mrb[0].mxu0 }
 0x314   :  { %v3874_v31 = vadd.f32 %v3873_v28, %v2964_v30  ;;  %v2966_v32 = vpop.f32.mrb[1].mxu0 }
 0x315   :  { %v3876_v33 = vadd.f32 %v3875_v29, %v2966_v32  ;;  %v2968_v34 = vpop.f32.mrb[2].mxu0 }
 0x316   :  { %4569 = vtanh.f32 %v3874_v31  ;;  %v2969_v35 = vpop.f32.mrb[3].mxu0 }
 0x317   :  { %4571 = vtanh.f32 %v3876_v33 }
 0x320   :  { %v4570_v36 = vpop.eup %4569 }
 0x321   :  { %v4572_v37 = vpop.eup %4571  ;;  %v2973_v40 = vpack.c.bf16 %v4570_v36, %v4570_v36 }
 0x322   :  { %v2974_v38 = vpack.c.bf16 %v4572_v37, %v4572_v37 }
 0x324   :  { %3211 = vmatprep.mubr.bf16.mxu1 %v2974_v38 }
 0x325   :  { %3212 = vmatmul.mubr.bf16.vlgmr.msra.gmra.mrb[4].mxu1 %v2973_v40 }
 0x326   :  { %3852 = vmatpush3.bf16.msra.mxu1 %v4554_v39 }
 0x327   :  { %3853 = vmatprep.subr.bf16.mxu1 %v4555_v41 }
 0x32a   :  { %3854 = vmatpush3.bf16.msra.mxu1 %v4556_v42 }
 0x32b   :  { %3855 = vmatprep.subr.bf16.mxu1 %v4557_v43 }
 0x32e   :  { %3856 = vmatpush3.bf16.msra.mxu1 %v4558_v44 }
 0x32f   :  { %3857 = vmatprep.subr.bf16.mxu1 %v4559_v45 }
 0x332   :  { %3858 = vmatpush3.bf16.msra.mxu1 %v4560_v46 }
 0x333   :  { %3859 = vmatprep.subr.bf16.mxu1 %v4561_v47 }
 0x336   :  { %3860 = vmatpush3.bf16.msra.mxu1 %v4562_v48 }
 0x337   :  { %3861 = vmatprep.subr.bf16.mxu1 %v4563_v49 }
 0x33a   :  { %3862 = vmatpush3.bf16.msra.mxu1 %v4564_v50 }
 0x33b   :  { %3863 = vmatprep.subr.bf16.mxu1 %v4565_v51 }
 0x33e   :  { %3864 = vmatpush3.bf16.msra.mxu1 %v4566_v52 }
 0x33f   :  { %3865 = vmatprep.subr.bf16.mxu1 %v4567_v53 }
 0x342   :  { %3866 = vmatpush3.bf16.msra.mxu1 %v4568_v54 }
 0x3f8   :  { %v3213_v58 = vpop.f32.mrb[4].mxu1 }
 0x3f9   :  { %v3214_v59 = vadd.f32 %v3213_v58, %v3012_v56  ;;  %v3215_v60 = vpop.f32.mrb[5].mxu1 }
 0x3fa   :  { %v3216_v61 = vadd.f32 %v3215_v60, %v3016_v57  ;;  %v3217_v62 = vpop.f32.mrb[6].mxu1 }
 0x3fb   :  { %4573 = vtanh.f32 %v3214_v59  ;;  %v3218_v63 = vpop.f32.mrb[7].mxu1 }
 0x3fc   :  { %4575 = vtanh.f32 %v3216_v61 }
 0x405   :  { %v4574_v0 = vpop.eup %4573 }
 0x406   :  { %v4576_v1 = vpop.eup %4575  ;;  %v3222_v3 = vpack.c.bf16 %v4574_v0, %v4574_v0 }
 0x407   :  { %v3223_v2 = vpack.c.bf16 %v4576_v1, %v4576_v1 }
 0x409   :  { %3391 = vmatprep.mubr.bf16.mxu1 %v3223_v2 }
 0x40a   :  { %3392 = vmatmul.mubr.bf16.vlgmr.msra.gmra.mrb[8].mxu1 %v3222_v3 }
 0x4dd   :  { %v3867_v4 = vpop.f32.mrb[8].mxu1 }
 0x4de   :  { %v3868_v6 = vpop.f32.mrb[9].mxu1 }
 0x4df   :  { %v3869_v7 = vadd.f32 %v3868_v6, %v3867_v4  ;;  %v3870_v8 = vpop.f32.mrb[10].mxu1 }
 0x4e0   :  { %v3871_v9 = vpop.f32.mrb[11].mxu1 }
 0x4e1   :  { %v3394_v10 = vadd.f32 %v3869_v7, %v3834_v5 }
 0x4e3   :  { %3399 = vst [vmem:[#allocation14] sm:$0xff] %v3394_v10 }
 0x4e4   :  { %4742 = shalt.err (!%p4739_p4)
}
 0x4e5   :  { %s4743_s11 = scalar_lea.hbm %s4918_s7, 128 }
 0x4e6   :  { %p4744_p5 = scmp.ne.s32.totalorder %s4918_s7, %s4743_s11  ;;  %p4747_p6 = scmp.lt.u32.totalorder %s4743_s11, %s4918_s7 }
 0x4e8   :  { %p4749_p7 = pnand %p4747_p6, %p4744_p5 }
 0x4ea   :  { %4752 = shalt.err (!%p4749_p7)
}
 0x4eb   :  { %3409 = dma.vmem_to_hbm [thread:$0]  %s3407_s13, 128, %s4918_s7, [#allocation4]  }
 0x4ec   :  { %4761 = dma.done.wait [#allocation4], 128  }
 0x4ed   :  { %4762 = vsyncadd [#allocation4], 4294967168 }
 0x4ee   :  { %3413 = vsyncpa [#allocation3], 1 }
 0x4ef   :  { %3414 = vsyncpa [#allocation6], 1 }
 0x4f0   :  { %3415 = vsyncpa [#allocation9], 1 }
 0x4f1   :  { %3416 = vsyncpa [#allocation12], 1 }
 0x4f2   :  { %3417 = vsyncpa [#allocation4], 1 }

// kernel: tpu_custom_call.1
= control target key start
LH: loop header
LB: loop body
LE: loop exit
PB: predicated region body
PF: predicated region fallthrough
CT: control target
= control target key end

     0   :  { %12 = vsyncpa [#allocation3], 0  ;;  %s4911_s0 = inlined_call_operand.hbm [shape: f32[8,3072], index: 0, kind: input, shape index: {}]   ;;  %s4912_s1 = inlined_call_operand.hbm [shape: bf16[3072,256], index: 1, kind: input, shape index: {}]   ;;  %s4913_s2 = inlined_call_operand.hbm [shape: f32[1,256], index: 2, kind: input, shape index: {}]   ;;  %s4914_s3 = inlined_call_operand.hbm [shape: bf16[256,256], index: 3, kind: input, shape index: {}]   ;;  %s4915_s4 = inlined_call_operand.hbm [shape: f32[1,256], index: 4, kind: input, shape index: {}]   ;;  %s4916_s5 = inlined_call_operand.hbm [shape: bf16[256,128], index: 5, kind: input, shape index: {}]   ;;  %s4917_s6 = inlined_call_operand.hbm [shape: f32[1,128], index: 6, kind: input, shape index: {}]   ;;  %s4918_s7 = inlined_call_operand.hbm [shape: f32[8,128], index: 7, kind: output, shape index: {}]  }
   0x1   :  { %13 = vsyncpa [#allocation6], 0 }
   0x2   :  { %14 = vsyncpa [#allocation9], 0 }
   0x3   :  { %15 = vsyncpa [#allocation12], 0 }
   0x4   :  { %16 = vsyncpa [#allocation4], 0  ;;  %s4763_s24 = smov [#allocation5]   ;;  %s4577_s28 = scalar_lea.hbm %s4912_s1, 49152 }
   0x5   :  { %s32_s25 = sshll.u32 %s4763_s24, 4  ;;  %p4578_p0 = scmp.ne.s32.totalorder %s4912_s1, %s4577_s28  ;;  %s33_s25 = int_to_ptr.vmem [resolvable:$true] %s32_s25 }
   0x6   :  { %p4581_p1 = scmp.lt.u32.totalorder %s4577_s28, %s4912_s1 }
   0x8   :  { %p4583_p2 = pnand %p4581_p1, %p4578_p0 }
   0xa   :  { %4586 = shalt.err (!%p4583_p2)
}
   0xb   :  { %s4587_s10 = scalar_lea.vmem %s33_s25, 49152  ;;  %p4592_p4 = scmp.lt.s32.totalorder %s33_s25, %s33_s25 }
   0xc   :  { %p4588_p3 = scmp.ne.s32.totalorder %s33_s25, %s4587_s10  ;;  %p4593_p5 = scmp.lt.s32.totalorder %s4587_s10, %s4587_s10 }
   0xe   :  { %p4594_p6 = por %p4593_p5, %p4592_p4 }
  0x10   :  { %p4595_p7 = pnand %p4594_p6, %p4588_p3 }
  0x12   :  { %4598 = shalt.err (!%p4595_p7)
}
  0x13   :  { %s4764_s11 = smov 128   ;;  %s4765_s12 = smov 8  }
  0x14   :  { %38 = dma.hbm_to_vmem [thread:$0]  %s4912_s1, 49152, %s33_s25, [#allocation6], %s4764_s11, %s4764_s11, %s4765_s12  }
  0x15   :  { %s4766_s15 = smov [#allocation8]   ;;  %s4767_s17 = smov [#allocation11]  }
  0x16   :  { %s54_s16 = sshll.u32 %s4766_s15, 4  ;;  %s76_s18 = sshll.u32 %s4767_s17, 4  ;;  %s55_s16 = int_to_ptr.vmem [resolvable:$true] %s54_s16  ;;  %s77_s18 = int_to_ptr.vmem [resolvable:$true] %s76_s18 }
  0x17   :  { %s4599_s21 = scalar_lea.hbm %s4914_s3, 4096 }
  0x18   :  { %p4600_p8 = scmp.ne.s32.totalorder %s4914_s3, %s4599_s21  ;;  %p4603_p9 = scmp.lt.u32.totalorder %s4599_s21, %s4914_s3 }
  0x1a   :  { %p4605_p10 = pnand %p4603_p9, %p4600_p8 }
  0x1c   :  { %4608 = shalt.err (!%p4605_p10)
}
  0x1d   :  { %s4609_s1 = scalar_lea.vmem %s55_s16, 4096  ;;  %p4614_p12 = scmp.lt.s32.totalorder %s55_s16, %s55_s16 }
  0x1e   :  { %p4610_p11 = scmp.ne.s32.totalorder %s55_s16, %s4609_s1  ;;  %p4615_p13 = scmp.lt.s32.totalorder %s4609_s1, %s4609_s1 }
  0x20   :  { %p4616_p0 = por %p4615_p13, %p4614_p12 }
  0x22   :  { %p4617_p1 = pnand %p4616_p0, %p4610_p11 }
  0x24   :  { %4620 = shalt.err (!%p4617_p1)
}
  0x25   :  { %60 = dma.hbm_to_vmem [thread:$0]  %s4914_s3, 4096, %s55_s16, [#allocation9], %s4764_s11, %s4764_s11, %s4765_s12  }
  0x26   :  { %s4621_s30 = scalar_lea.hbm %s4916_s5, 2048 }
  0x27   :  { %p4622_p2 = scmp.ne.s32.totalorder %s4916_s5, %s4621_s30  ;;  %p4625_p3 = scmp.lt.u32.totalorder %s4621_s30, %s4916_s5 }
  0x29   :  { %p4627_p4 = pnand %p4625_p3, %p4622_p2 }
  0x2b   :  { %4630 = shalt.err (!%p4627_p4)
}
  0x2c   :  { %s4631_s14 = scalar_lea.vmem %s77_s18, 2048  ;;  %p4636_p6 = scmp.lt.s32.totalorder %s77_s18, %s77_s18 }
  0x2d   :  { %p4632_p5 = scmp.ne.s32.totalorder %s77_s18, %s4631_s14  ;;  %p4637_p7 = scmp.lt.s32.totalorder %s4631_s14, %s4631_s14 }
  0x2f   :  { %p4638_p8 = por %p4637_p7, %p4636_p6 }
  0x31   :  { %p4639_p9 = pnand %p4638_p8, %p4632_p5 }
  0x33   :  { %4642 = shalt.err (!%p4639_p9)
}
  0x34   :  { %s4768_s3 = smov 64   ;;  %s4769_s11 = smov 4  }
  0x35   :  { %82 = dma.hbm_to_vmem [thread:$0]  %s4916_s5, 2048, %s77_s18, [#allocation12], %s4768_s3, %s4768_s3, %s4769_s11  }
  0x36   :  { %s4770_s16 = smov [#allocation2]   ;;  %s4771_s19 = smov [#allocation7]  }
  0x37   :  { %s23_s17 = sshll.u32 %s4770_s16, 4  ;;  %s45_s20 = sshll.u32 %s4771_s19, 4  ;;  %s24_s17 = int_to_ptr.vmem [resolvable:$true] %s23_s17  ;;  %s46_s20 = int_to_ptr.vmem [resolvable:$true] %s45_s20 }
  0x38   :  { %s4643_s23 = scalar_lea.hbm %s4911_s0, 3072 }
  0x39   :  { %p4644_p10 = scmp.ne.s32.totalorder %s4911_s0, %s4643_s23  ;;  %p4647_p11 = scmp.lt.u32.totalorder %s4643_s23, %s4911_s0 }
  0x3b   :  { %p4649_p12 = pnand %p4647_p11, %p4644_p10 }
  0x3d   :  { %4652 = shalt.err (!%p4649_p12)
}
  0x3e   :  { %s4653_s5 = scalar_lea.vmem %s24_s17, 3072  ;;  %p4658_p0 = scmp.lt.s32.totalorder %s24_s17, %s24_s17 }
  0x3f   :  { %p4654_p13 = scmp.ne.s32.totalorder %s24_s17, %s4653_s5  ;;  %p4659_p1 = scmp.lt.s32.totalorder %s4653_s5, %s4653_s5 }
  0x41   :  { %p4660_p2 = por %p4659_p1, %p4658_p0 }
  0x43   :  { %p4661_p3 = pnand %p4660_p2, %p4654_p13 }
  0x45   :  { %4664 = shalt.err (!%p4661_p3)
}
  0x46   :  { %26 = dma.hbm_to_vmem [thread:$0]  %s4911_s0, 3072, %s24_s17, [#allocation3]  }
  0x47   :  { %s4665_s30 = scalar_lea.hbm %s4913_s2, 32 }
  0x48   :  { %p4666_p4 = scmp.ne.s32.totalorder %s4913_s2, %s4665_s30  ;;  %p4669_p5 = scmp.lt.u32.totalorder %s4665_s30, %s4913_s2 }
  0x4a   :  { %p4671_p6 = pnand %p4669_p5, %p4666_p4 }
  0x4c   :  { %4674 = shalt.err (!%p4671_p6)
}
  0x4d   :  { %s4675_s14 = scalar_lea.vmem %s46_s20, 32  ;;  %p4680_p8 = scmp.lt.s32.totalorder %s46_s20, %s46_s20 }
  0x4e   :  { %p4676_p7 = scmp.ne.s32.totalorder %s46_s20, %s4675_s14  ;;  %p4681_p9 = scmp.lt.s32.totalorder %s4675_s14, %s4675_s14 }
  0x50   :  { %p4682_p10 = por %p4681_p9, %p4680_p8 }
  0x52   :  { %p4683_p11 = pnand %p4682_p10, %p4676_p7 }
  0x54   :  { %4686 = shalt.err (!%p4683_p11)
}
  0x55   :  { %48 = dma.hbm_to_vmem [thread:$0]  %s4913_s2, 32, %s46_s20, [#allocation6]  }
  0x56   :  { %s4772_s11 = smov [#allocation10]   ;;  %s4773_s15 = smov [#allocation13]  }
  0x57   :  { %s67_s12 = sshll.u32 %s4772_s11, 4  ;;  %s89_s16 = sshll.u32 %s4773_s15, 4  ;;  %s68_s12 = int_to_ptr.vmem [resolvable:$true] %s67_s12  ;;  %s90_s16 = int_to_ptr.vmem [resolvable:$true] %s89_s16 }
  0x58   :  { %s4687_s21 = scalar_lea.hbm %s4915_s4, 32 }
  0x59   :  { %p4688_p12 = scmp.ne.s32.totalorder %s4915_s4, %s4687_s21  ;;  %p4691_p13 = scmp.lt.u32.totalorder %s4687_s21, %s4915_s4 }
  0x5b   :  { %p4693_p0 = pnand %p4691_p13, %p4688_p12 }
  0x5d   :  { %4696 = shalt.err (!%p4693_p0)
}
  0x5e   :  { %s4697_s2 = scalar_lea.vmem %s68_s12, 32  ;;  %p4702_p2 = scmp.lt.s32.totalorder %s68_s12, %s68_s12 }
  0x5f   :  { %p4698_p1 = scmp.ne.s32.totalorder %s68_s12, %s4697_s2  ;;  %p4703_p3 = scmp.lt.s32.totalorder %s4697_s2, %s4697_s2 }
  0x61   :  { %p4704_p4 = por %p4703_p3, %p4702_p2 }
  0x63   :  { %p4705_p5 = pnand %p4704_p4, %p4698_p1 }
  0x65   :  { %4708 = shalt.err (!%p4705_p5)
}
  0x66   :  { %70 = dma.hbm_to_vmem [thread:$0]  %s4915_s4, 32, %s68_s12, [#allocation9]  }
  0x67   :  { %s4709_s18 = scalar_lea.hbm %s4917_s6, 16 }
  0x68   :  { %p4710_p6 = scmp.ne.s32.totalorder %s4917_s6, %s4709_s18  ;;  %p4713_p7 = scmp.lt.u32.totalorder %s4709_s18, %s4917_s6 }
  0x6a   :  { %p4715_p8 = pnand %p4713_p7, %p4710_p6 }
  0x6c   :  { %4718 = shalt.err (!%p4715_p8)
}
  0x6d   :  { %s4719_s8 = scalar_lea.vmem %s90_s16, 16  ;;  %s4723_s9 = scalar_lea.vmem %s90_s16, 32 }
  0x6e   :  { %p4720_p9 = scmp.ne.s32.totalorder %s90_s16, %s4719_s8  ;;  %p4724_p10 = scmp.lt.s32.totalorder %s90_s16, %s90_s16 }
  0x6f   :  { %p4725_p11 = scmp.lt.s32.totalorder %s4723_s9, %s4719_s8 }
  0x71   :  { %p4726_p12 = por %p4725_p11, %p4724_p10 }
  0x73   :  { %p4727_p13 = pnand %p4726_p12, %p4720_p9 }
  0x75   :  { %4730 = shalt.err (!%p4727_p13)
}
  0x76   :  { %92 = dma.hbm_to_vmem [thread:$0]  %s4917_s6, 16, %s90_s16, [#allocation12]  }
  0x77   :  { %4753 = dma.done.wait [#allocation3], 3072  }
  0x78   :  { %4754 = vsyncadd [#allocation3], 4294964224 }
  0x79   :  { %4755 = dma.done.wait [#allocation6], 49184  }
  0x7a   :  { %4756 = vsyncadd [#allocation6], 4294918112 }
  0x7b   :  { %4757 = dma.done.wait [#allocation9], 4128  }
  0x7c   :  { %4758 = vsyncadd [#allocation9], 4294963168 }
  0x7d   :  { %4759 = dma.done.wait [#allocation12], 2064  }
  0x7e   :  { %4760 = vsyncadd [#allocation12], 4294965232  ;;  %v3929_v0 = vld [vmem:[#allocation5 + $0x4] ss:$8 sps:$4 sm:$0xff]   ;;  %v3933_v2 = vld [vmem:[#allocation5] ss:$8 sps:$4 sm:$0xff]  }
  0x7f   :  { %v3931_v1 = vld [vmem:[#allocation5 + $0x504] ss:$8 sps:$4 sm:$0xff]   ;;  %2479 = vmatprep.subr.bf16.mxu1 %v3929_v0  ;;  %v3934_v3 = vld [vmem:[#allocation5 + $0x500] ss:$8 sps:$4 sm:$0xff]   ;;  %v3935_v4 = vld [vmem:[#allocation5 + $0x14] ss:$8 sps:$4 sm:$0xff]  }
  0x80   :  { %2684 = vmatprep.subr.bf16.mxu0 %v3931_v1  ;;  %2480 = vmatpush1.bf16.msra.mxu1 %v3933_v2  ;;  %v3937_v5 = vld [vmem:[#allocation5 + $0x514] ss:$8 sps:$4 sm:$0xff]   ;;  %v3939_v6 = vld [vmem:[#allocation5 + $0x10] ss:$8 sps:$4 sm:$0xff]   ;;  %v3941_v8 = vld [vmem:[#allocation5 + $0x24] ss:$8 sps:$4 sm:$0xff]  }
  0x81   :  { %2685 = vmatpush1.bf16.msra.mxu0 %v3934_v3  ;;  %2481 = vmatprep.subr.bf16.mxu1 %v3935_v4  ;;  %v3940_v7 = vld [vmem:[#allocation5 + $0x510] ss:$8 sps:$4 sm:$0xff]   ;;  %v3943_v9 = vld [vmem:[#allocation5 + $0x524] ss:$8 sps:$4 sm:$0xff]   ;;  %v3945_v10 = vld [vmem:[#allocation5 + $0x20] ss:$8 sps:$4 sm:$0xff]  }
  0x82   :  { %2686 = vmatprep.subr.bf16.mxu0 %v3937_v5  ;;  %v3946_v11 = vld [vmem:[#allocation5 + $0x520] ss:$8 sps:$4 sm:$0xff]   ;;  %v3947_v12 = vld [vmem:[#allocation5 + $0x34] ss:$8 sps:$4 sm:$0xff]   ;;  %v3951_v14 = vld [vmem:[#allocation5 + $0x30] ss:$8 sps:$4 sm:$0xff]  }
  0x83   :  { %v3949_v13 = vld [vmem:[#allocation5 + $0x534] ss:$8 sps:$4 sm:$0xff]   ;;  %v3952_v15 = vld [vmem:[#allocation5 + $0x530] ss:$8 sps:$4 sm:$0xff]   ;;  %v3953_v16 = vld [vmem:[#allocation5 + $0x44] ss:$8 sps:$4 sm:$0xff]  }
  0x84   :  { %2482 = vmatpush1.bf16.msra.mxu1 %v3939_v6  ;;  %v3955_v17 = vld [vmem:[#allocation5 + $0x544] ss:$8 sps:$4 sm:$0xff]   ;;  %v3957_v18 = vld [vmem:[#allocation5 + $0x40] ss:$8 sps:$4 sm:$0xff]   ;;  %v3959_v20 = vld [vmem:[#allocation5 + $0x54] ss:$8 sps:$4 sm:$0xff]  }
  0x85   :  { %2687 = vmatpush1.bf16.msra.mxu0 %v3940_v7  ;;  %2483 = vmatprep.subr.bf16.mxu1 %v3941_v8  ;;  %v3958_v19 = vld [vmem:[#allocation5 + $0x540] ss:$8 sps:$4 sm:$0xff]   ;;  %v3961_v21 = vld [vmem:[#allocation5 + $0x554] ss:$8 sps:$4 sm:$0xff]   ;;  %v3963_v22 = vld [vmem:[#allocation5 + $0x50] ss:$8 sps:$4 sm:$0xff]  }
  0x86   :  { %2688 = vmatprep.subr.bf16.mxu0 %v3943_v9  ;;  %v3964_v23 = vld [vmem:[#allocation5 + $0x550] ss:$8 sps:$4 sm:$0xff]   ;;  %v3965_v24 = vld [vmem:[#allocation5 + $0x64] ss:$8 sps:$4 sm:$0xff]   ;;  %v3969_v26 = vld [vmem:[#allocation5 + $0x60] ss:$8 sps:$4 sm:$0xff]  }
  0x87   :  { %v3967_v25 = vld [vmem:[#allocation5 + $0x564] ss:$8 sps:$4 sm:$0xff]   ;;  %v3970_v27 = vld [vmem:[#allocation5 + $0x560] ss:$8 sps:$4 sm:$0xff]   ;;  %v3971_v28 = vld [vmem:[#allocation5 + $0x74] ss:$8 sps:$4 sm:$0xff]  }
  0x88   :  { %2484 = vmatpush1.bf16.msra.mxu1 %v3945_v10  ;;  %v3973_v29 = vld [vmem:[#allocation5 + $0x574] ss:$8 sps:$4 sm:$0xff]   ;;  %v3975_v30 = vld [vmem:[#allocation5 + $0x70] ss:$8 sps:$4 sm:$0xff]   ;;  %v3977_v32 = vld [vmem:[#allocation5 + $0x84] ss:$8 sps:$4 sm:$0xff]  }
  0x89   :  { %2689 = vmatpush1.bf16.msra.mxu0 %v3946_v11  ;;  %2485 = vmatprep.subr.bf16.mxu1 %v3947_v12  ;;  %v3976_v31 = vld [vmem:[#allocation5 + $0x570] ss:$8 sps:$4 sm:$0xff]   ;;  %v3979_v33 = vld [vmem:[#allocation5 + $0x584] ss:$8 sps:$4 sm:$0xff]   ;;  %v3981_v34 = vld [vmem:[#allocation5 + $0x80] ss:$8 sps:$4 sm:$0xff]  }
  0x8a   :  { %2690 = vmatprep.subr.bf16.mxu0 %v3949_v13  ;;  %v3982_v35 = vld [vmem:[#allocation5 + $0x580] ss:$8 sps:$4 sm:$0xff]   ;;  %v3983_v36 = vld [vmem:[#allocation5 + $0x94] ss:$8 sps:$4 sm:$0xff]   ;;  %v3987_v38 = vld [vmem:[#allocation5 + $0x90] ss:$8 sps:$4 sm:$0xff]  }
  0x8b   :  { %v3985_v37 = vld [vmem:[#allocation5 + $0x594] ss:$8 sps:$4 sm:$0xff]   ;;  %v3988_v39 = vld [vmem:[#allocation5 + $0x590] ss:$8 sps:$4 sm:$0xff]   ;;  %v3989_v40 = vld [vmem:[#allocation5 + $0xa4] ss:$8 sps:$4 sm:$0xff]  }
  0x8c   :  { %2486 = vmatpush1.bf16.msra.mxu1 %v3951_v14  ;;  %v3991_v41 = vld [vmem:[#allocation5 + $0x5a4] ss:$8 sps:$4 sm:$0xff]   ;;  %v3993_v42 = vld [vmem:[#allocation5 + $0xa0] ss:$8 sps:$4 sm:$0xff]   ;;  %v3995_v44 = vld [vmem:[#allocation5 + $0xb4] ss:$8 sps:$4 sm:$0xff]  }
  0x8d   :  { %2691 = vmatpush1.bf16.msra.mxu0 %v3952_v15  ;;  %2487 = vmatprep.subr.bf16.mxu1 %v3953_v16  ;;  %v3994_v43 = vld [vmem:[#allocation5 + $0x5a0] ss:$8 sps:$4 sm:$0xff]   ;;  %v3997_v45 = vld [vmem:[#allocation5 + $0x5b4] ss:$8 sps:$4 sm:$0xff]   ;;  %v3999_v47 = vld [vmem:[#allocation5 + $0xb0] ss:$8 sps:$4 sm:$0xff]  }
  0x8e   :  { %2692 = vmatprep.subr.bf16.mxu0 %v3955_v17  ;;  %v116_v46 = vld [vmem:[#allocation2 + $0x8] sm:$0xff]  ;;  %v4000_v49 = vld [vmem:[#allocation5 + $0x5b0] ss:$8 sps:$4 sm:$0xff]   ;;  %v4007_v56 = vld [vmem:[#allocation5 + $0xd4] ss:$8 sps:$4 sm:$0xff]   ;;  %s4774_s6 = smov [#allocation14]  }
  0x8f   :  { %v140_v48 = vpack.c.bf16 %v116_v46, %v116_v46  ;;  %v126_v50 = vld [vmem:[#allocation2 + $0x58] sm:$0xff]  ;;  %v4001_v51 = vld [vmem:[#allocation5 + $0xc4] ss:$8 sps:$4 sm:$0xff]   ;;  %v4005_v54 = vld [vmem:[#allocation5 + $0xc0] ss:$8 sps:$4 sm:$0xff]   ;;  %s3406_s13 = sshll.u32 %s4774_s6, 4  ;;  %s3407_s13 = int_to_ptr.vmem [resolvable:$true] %s3406_s13 }
  0x90   :  { %2488 = vmatpush1.bf16.msra.mxu1 %v3957_v18  ;;  %v4003_v52 = vld [vmem:[#allocation5 + $0x5c4] ss:$8 sps:$4 sm:$0xff]   ;;  %v150_v53 = vpack.c.bf16 %v126_v50, %v126_v50  ;;  %v4006_v55 = vld [vmem:[#allocation5 + $0x5c0] ss:$8 sps:$4 sm:$0xff]   ;;  %v4009_v57 = vld [vmem:[#allocation5 + $0x5d4] ss:$8 sps:$4 sm:$0xff]   ;;  %p4736_p1 = scmp.lt.s32.totalorder %s3407_s13, %s3407_s13 }
  0x91   :  { %2693 = vmatpush1.bf16.msra.mxu0 %v3958_v19  ;;  %2489 = vmatprep.subr.bf16.mxu1 %v3959_v20  ;;  %v4011_v58 = vld [vmem:[#allocation5 + $0xd0] ss:$8 sps:$4 sm:$0xff]   ;;  %v4013_v60 = vld [vmem:[#allocation5 + $0xe4] ss:$8 sps:$4 sm:$0xff]   ;;  %v4017_v62 = vld [vmem:[#allocation5 + $0xe0] ss:$8 sps:$4 sm:$0xff]  }
  0x92   :  { %2694 = vmatprep.subr.bf16.mxu0 %v3961_v21  ;;  %2511 = vmatprep.mubr.bf16.mxu1 %v140_v48  ;;  %v4012_v59 = vld [vmem:[#allocation5 + $0x5d0] ss:$8 sps:$4 sm:$0xff]   ;;  %v4015_v61 = vld [vmem:[#allocation5 + $0x5e4] ss:$8 sps:$4 sm:$0xff]   ;;  %v4018_v63 = vld [vmem:[#allocation5 + $0x5e0] ss:$8 sps:$4 sm:$0xff]  }
  0x93   :  { %2716 = vmatprep.mubr.bf16.mxu0 %v150_v53  ;;  %v4019_v0 = vld [vmem:[#allocation5 + $0xf4] ss:$8 sps:$4 sm:$0xff]   ;;  %v4023_v2 = vld [vmem:[#allocation5 + $0xf0] ss:$8 sps:$4 sm:$0xff]   ;;  %v4027_v4 = vld [vmem:[#allocation5 + $0x104] ss:$8 sps:$4 sm:$0xff]  }
  0x94   :  { %2490 = vmatpush1.bf16.msra.mxu1 %v3963_v22  ;;  %v4021_v1 = vld [vmem:[#allocation5 + $0x5f4] ss:$8 sps:$4 sm:$0xff]   ;;  %v4024_v3 = vld [vmem:[#allocation5 + $0x5f0] ss:$8 sps:$4 sm:$0xff]   ;;  %v115_v5 = vld [vmem:[#allocation2] sm:$0xff]  ;;  %s4731_s14 = scalar_lea.vmem %s3407_s13, 128 }
  0x95   :  { %2695 = vmatpush1.bf16.msra.mxu0 %v3964_v23  ;;  %2491 = vmatprep.subr.bf16.mxu1 %v3965_v24  ;;  %v125_v6 = vld [vmem:[#allocation2 + $0x50] sm:$0xff]  ;;  %v4030_v7 = vld [vmem:[#allocation5 + $0x604] ss:$8 sps:$4 sm:$0xff]   ;;  %v4025_v8 = vld [vmem:[#allocation5 + $0x100] ss:$8 sps:$4 sm:$0xff]   ;;  %v139_v10 = vpack.c.bf16 %v115_v5, %v115_v5  ;;  %p4732_p0 = scmp.ne.s32.totalorder %s3407_s13, %s4731_s14  ;;  %p4737_p2 = scmp.lt.s32.totalorder %s4731_s14, %s4731_s14 }
  0x96   :  { %2696 = vmatprep.subr.bf16.mxu0 %v3967_v25  ;;  %v4028_v9 = vld [vmem:[#allocation5 + $0x600] ss:$8 sps:$4 sm:$0xff]   ;;  %v149_v11 = vpack.c.bf16 %v125_v6, %v125_v6  ;;  %v4033_v12 = vld [vmem:[#allocation5 + $0x114] ss:$8 sps:$4 sm:$0xff]   ;;  %v4031_v14 = vld [vmem:[#allocation5 + $0x110] ss:$8 sps:$4 sm:$0xff]  }
  0x97   :  { %v4036_v13 = vld [vmem:[#allocation5 + $0x614] ss:$8 sps:$4 sm:$0xff]   ;;  %v4034_v15 = vld [vmem:[#allocation5 + $0x610] ss:$8 sps:$4 sm:$0xff]   ;;  %v4039_v16 = vld [vmem:[#allocation5 + $0x124] ss:$8 sps:$4 sm:$0xff]   ;;  %p4738_p3 = por %p4737_p2, %p4736_p1 }
  0x98   :  { %2492 = vmatpush1.bf16.msra.mxu1 %v3969_v26  ;;  %v4042_v17 = vld [vmem:[#allocation5 + $0x624] ss:$8 sps:$4 sm:$0xff]   ;;  %v4037_v18 = vld [vmem:[#allocation5 + $0x120] ss:$8 sps:$4 sm:$0xff]   ;;  %v4045_v20 = vld [vmem:[#allocation5 + $0x134] ss:$8 sps:$4 sm:$0xff]  }
  0x99   :  { %2697 = vmatpush1.bf16.msra.mxu0 %v3970_v27  ;;  %2493 = vmatprep.subr.bf16.mxu1 %v3971_v28  ;;  %v4040_v19 = vld [vmem:[#allocation5 + $0x620] ss:$8 sps:$4 sm:$0xff]   ;;  %v4048_v21 = vld [vmem:[#allocation5 + $0x634] ss:$8 sps:$4 sm:$0xff]   ;;  %v4043_v22 = vld [vmem:[#allocation5 + $0x130] ss:$8 sps:$4 sm:$0xff]   ;;  %p4739_p4 = pnand %p4738_p3, %p4732_p0 }
  0x9a   :  { %2698 = vmatprep.subr.bf16.mxu0 %v3973_v29  ;;  %v4046_v23 = vld [vmem:[#allocation5 + $0x630] ss:$8 sps:$4 sm:$0xff]   ;;  %v4051_v24 = vld [vmem:[#allocation5 + $0x144] ss:$8 sps:$4 sm:$0xff]   ;;  %v4049_v26 = vld [vmem:[#allocation5 + $0x140] ss:$8 sps:$4 sm:$0xff]  }
  0x9b   :  { %v4054_v25 = vld [vmem:[#allocation5 + $0x644] ss:$8 sps:$4 sm:$0xff]   ;;  %v4052_v27 = vld [vmem:[#allocation5 + $0x640] ss:$8 sps:$4 sm:$0xff]   ;;  %v4057_v28 = vld [vmem:[#allocation5 + $0x154] ss:$8 sps:$4 sm:$0xff]  }
  0x9c   :  { %2494 = vmatpush1.bf16.msra.mxu1 %v3975_v30  ;;  %v4060_v29 = vld [vmem:[#allocation5 + $0x654] ss:$8 sps:$4 sm:$0xff]   ;;  %v4055_v30 = vld [vmem:[#allocation5 + $0x150] ss:$8 sps:$4 sm:$0xff]   ;;  %v4073_v46 = vld [vmem:[#allocation5 + $0x180] ss:$8 sps:$4 sm:$0xff]  }
  0x9d   :  { %2699 = vmatpush1.bf16.msra.mxu0 %v3976_v31  ;;  %2495 = vmatprep.subr.bf16.mxu1 %v3977_v32  ;;  %v4058_v31 = vld [vmem:[#allocation5 + $0x650] ss:$8 sps:$4 sm:$0xff]   ;;  %v4063_v32 = vld [vmem:[#allocation5 + $0x164] ss:$8 sps:$4 sm:$0xff]   ;;  %v4081_v48 = vld [vmem:[#allocation5 + $0x194] ss:$8 sps:$4 sm:$0xff]  }
  0x9e   :  { %2700 = vmatprep.subr.bf16.mxu0 %v3979_v33  ;;  %v4066_v33 = vld [vmem:[#allocation5 + $0x664] ss:$8 sps:$4 sm:$0xff]   ;;  %v4079_v50 = vld [vmem:[#allocation5 + $0x190] ss:$8 sps:$4 sm:$0xff]   ;;  %v4109_v6 = vld [vmem:[#allocation5 + $0x1e0] ss:$8 sps:$4 sm:$0xff]  }
  0x9f   :  { %v4090_v53 = vld [vmem:[#allocation5 + $0x6a4] ss:$8 sps:$4 sm:$0xff]  }
  0xa0   :  { %2496 = vmatpush1.bf16.msra.mxu1 %v3981_v34  ;;  %v118_v34 = vld [vmem:[#allocation2 + $0x18] sm:$0xff]  ;;  %v4114_v5 = vld [vmem:[#allocation5 + $0x6e4] ss:$8 sps:$4 sm:$0xff]  }
  0xa1   :  { %2701 = vmatpush1.bf16.msra.mxu0 %v3982_v35  ;;  %2497 = vmatprep.subr.bf16.mxu1 %v3983_v36  ;;  %v4061_v35 = vld [vmem:[#allocation5 + $0x160] ss:$8 sps:$4 sm:$0xff]   ;;  %v142_v36 = vpack.c.bf16 %v118_v34, %v118_v34  ;;  %v4139_v34 = vld [vmem:[#allocation5 + $0x230] ss:$8 sps:$4 sm:$0xff]  }
  0xa2   :  { %2702 = vmatprep.subr.bf16.mxu0 %v3985_v37  ;;  %v4064_v37 = vld [vmem:[#allocation5 + $0x660] ss:$8 sps:$4 sm:$0xff]  }
  0xa4   :  { %2498 = vmatpush1.bf16.msra.mxu1 %v3987_v38  ;;  %v128_v38 = vld [vmem:[#allocation2 + $0x68] sm:$0xff] }
  0xa5   :  { %2703 = vmatpush1.bf16.msra.mxu0 %v3988_v39  ;;  %2499 = vmatprep.subr.bf16.mxu1 %v3989_v40  ;;  %v4069_v39 = vld [vmem:[#allocation5 + $0x174] ss:$8 sps:$4 sm:$0xff]  }
  0xa6   :  { %2704 = vmatprep.subr.bf16.mxu0 %v3991_v41  ;;  %v4072_v40 = vld [vmem:[#allocation5 + $0x674] ss:$8 sps:$4 sm:$0xff]   ;;  %v152_v41 = vpack.c.bf16 %v128_v38, %v128_v38  ;;  %v4145_v38 = vld [vmem:[#allocation5 + $0x240] ss:$8 sps:$4 sm:$0xff]  }
  0xa8   :  { %2500 = vmatpush1.bf16.msra.mxu1 %v3993_v42  ;;  %v4067_v42 = vld [vmem:[#allocation5 + $0x170] ss:$8 sps:$4 sm:$0xff]  }
  0xa9   :  { %2705 = vmatpush1.bf16.msra.mxu0 %v3994_v43  ;;  %2501 = vmatprep.subr.bf16.mxu1 %v3995_v44  ;;  %v4070_v43 = vld [vmem:[#allocation5 + $0x670] ss:$8 sps:$4 sm:$0xff]   ;;  %v4075_v44 = vld [vmem:[#allocation5 + $0x184] ss:$8 sps:$4 sm:$0xff]  }
  0xaa   :  { %2706 = vmatprep.subr.bf16.mxu0 %v3997_v45  ;;  %v4078_v45 = vld [vmem:[#allocation5 + $0x684] ss:$8 sps:$4 sm:$0xff]  }
  0xac   :  { %2502 = vmatpush1.bf16.msra.mxu1 %v3999_v47  ;;  %v4076_v47 = vld [vmem:[#allocation5 + $0x680] ss:$8 sps:$4 sm:$0xff]  }
  0xad   :  { %2707 = vmatpush1.bf16.msra.mxu0 %v4000_v49  ;;  %2503 = vmatprep.subr.bf16.mxu1 %v4001_v51  ;;  %v4084_v49 = vld [vmem:[#allocation5 + $0x694] ss:$8 sps:$4 sm:$0xff]   ;;  %v4082_v51 = vld [vmem:[#allocation5 + $0x690] ss:$8 sps:$4 sm:$0xff]  }
  0xae   :  { %2708 = vmatprep.subr.bf16.mxu0 %v4003_v52  ;;  %v4087_v52 = vld [vmem:[#allocation5 + $0x1a4] ss:$8 sps:$4 sm:$0xff]  }
  0xb0   :  { %2504 = vmatpush1.bf16.msra.mxu1 %v4005_v54  ;;  %v4085_v54 = vld [vmem:[#allocation5 + $0x1a0] ss:$8 sps:$4 sm:$0xff]  }
  0xb1   :  { %2709 = vmatpush1.bf16.msra.mxu0 %v4006_v55  ;;  %2505 = vmatprep.subr.bf16.mxu1 %v4007_v56  ;;  %v4088_v55 = vld [vmem:[#allocation5 + $0x6a0] ss:$8 sps:$4 sm:$0xff]   ;;  %v4093_v56 = vld [vmem:[#allocation5 + $0x1b4] ss:$8 sps:$4 sm:$0xff]  }
  0xb2   :  { %2710 = vmatprep.subr.bf16.mxu0 %v4009_v57  ;;  %v4096_v57 = vld [vmem:[#allocation5 + $0x6b4] ss:$8 sps:$4 sm:$0xff]  }
  0xb4   :  { %2506 = vmatpush1.bf16.msra.mxu1 %v4011_v58  ;;  %v4091_v58 = vld [vmem:[#allocation5 + $0x1b0] ss:$8 sps:$4 sm:$0xff]  }
  0xb5   :  { %2711 = vmatpush1.bf16.msra.mxu0 %v4012_v59  ;;  %2507 = vmatprep.subr.bf16.mxu1 %v4013_v60  ;;  %v4094_v59 = vld [vmem:[#allocation5 + $0x6b0] ss:$8 sps:$4 sm:$0xff]   ;;  %v4099_v60 = vld [vmem:[#allocation5 + $0x1c4] ss:$8 sps:$4 sm:$0xff]  }
  0xb6   :  { %2712 = vmatprep.subr.bf16.mxu0 %v4015_v61  ;;  %v4102_v61 = vld [vmem:[#allocation5 + $0x6c4] ss:$8 sps:$4 sm:$0xff]  }
  0xb8   :  { %2508 = vmatpush1.bf16.msra.mxu1 %v4017_v62  ;;  %v4097_v62 = vld [vmem:[#allocation5 + $0x1c0] ss:$8 sps:$4 sm:$0xff]  }
  0xb9   :  { %2713 = vmatpush1.bf16.msra.mxu0 %v4018_v63  ;;  %2509 = vmatprep.subr.bf16.mxu1 %v4019_v0  ;;  %v4100_v63 = vld [vmem:[#allocation5 + $0x6c0] ss:$8 sps:$4 sm:$0xff]   ;;  %v4105_v0 = vld [vmem:[#allocation5 + $0x1d4] ss:$8 sps:$4 sm:$0xff]  }
  0xba   :  { %2714 = vmatprep.subr.bf16.mxu0 %v4021_v1  ;;  %v4108_v1 = vld [vmem:[#allocation5 + $0x6d4] ss:$8 sps:$4 sm:$0xff]  }
  0xbc   :  { %2510 = vmatpush1.bf16.msra.mxu1 %v4023_v2  ;;  %v4103_v2 = vld [vmem:[#allocation5 + $0x1d0] ss:$8 sps:$4 sm:$0xff]  }
  0xbd   :  { %2715 = vmatpush1.bf16.msra.mxu0 %v4024_v3  ;;  %2520 = vmatprep.subr.bf16.mxu1 %v4027_v4  ;;  %v4106_v3 = vld [vmem:[#allocation5 + $0x6d0] ss:$8 sps:$4 sm:$0xff]   ;;  %v4111_v4 = vld [vmem:[#allocation5 + $0x1e4] ss:$8 sps:$4 sm:$0xff]  }
  0xbe   :  { %2725 = vmatprep.subr.bf16.mxu0 %v4030_v7  ;;  %v4112_v7 = vld [vmem:[#allocation5 + $0x6e0] ss:$8 sps:$4 sm:$0xff]  }
  0xbf   :  { %2512 = vmatmul.mubr.bf16.vlgmr.msra.gmra.mrb[0].mxu1 %v139_v10  ;;  %v4115_v10 = vld [vmem:[#allocation5 + $0x1f0] ss:$8 sps:$4 sm:$0xff]  }
  0xc0   :  { %2717 = vmatmul.mubr.bf16.vlgmr.msra.gmra.mrb[0].mxu0 %v149_v11  ;;  %2521 = vmatpush1.bf16.msra.mxu1 %v4025_v8  ;;  %v4117_v8 = vld [vmem:[#allocation5 + $0x1f4] ss:$8 sps:$4 sm:$0xff]   ;;  %v4118_v11 = vld [vmem:[#allocation5 + $0x6f0] ss:$8 sps:$4 sm:$0xff]  }
  0xc1   :  { %2726 = vmatpush1.bf16.msra.mxu0 %v4028_v9  ;;  %2522 = vmatprep.subr.bf16.mxu1 %v4033_v12  ;;  %v4120_v9 = vld [vmem:[#allocation5 + $0x6f4] ss:$8 sps:$4 sm:$0xff]   ;;  %v4123_v12 = vld [vmem:[#allocation5 + $0x204] ss:$8 sps:$4 sm:$0xff]  }
  0xc2   :  { %2727 = vmatprep.subr.bf16.mxu0 %v4036_v13  ;;  %2552 = vmatprep.mubr.bf16.mxu1 %v142_v36  ;;  %v117_v13 = vld [vmem:[#allocation2 + $0x10] sm:$0xff]  ;;  %v4147_v36 = vld [vmem:[#allocation5 + $0x244] ss:$8 sps:$4 sm:$0xff]  }
  0xc3   :  { %2757 = vmatprep.mubr.bf16.mxu0 %v152_v41  ;;  %v4156_v41 = vld [vmem:[#allocation5 + $0x754] ss:$8 sps:$4 sm:$0xff]  }
  0xc4   :  { %2523 = vmatpush1.bf16.msra.mxu1 %v4031_v14  ;;  %v127_v14 = vld [vmem:[#allocation2 + $0x60] sm:$0xff] }
  0xc5   :  { %2728 = vmatpush1.bf16.msra.mxu0 %v4034_v15  ;;  %2524 = vmatprep.subr.bf16.mxu1 %v4039_v16  ;;  %v4126_v15 = vld [vmem:[#allocation5 + $0x704] ss:$8 sps:$4 sm:$0xff]   ;;  %v4121_v16 = vld [vmem:[#allocation5 + $0x200] ss:$8 sps:$4 sm:$0xff]  }
  0xc6   :  { %2729 = vmatprep.subr.bf16.mxu0 %v4042_v17  ;;  %v4124_v17 = vld [vmem:[#allocation5 + $0x700] ss:$8 sps:$4 sm:$0xff]  }
  0xc8   :  { %2525 = vmatpush1.bf16.msra.mxu1 %v4037_v18  ;;  %v141_v18 = vpack.c.bf16 %v117_v13, %v117_v13  ;;  %v4210_v13 = vld [vmem:[#allocation5 + $0x7e4] ss:$8 sps:$4 sm:$0xff]  }
  0xc9   :  { %2730 = vmatpush1.bf16.msra.mxu0 %v4040_v19  ;;  %2526 = vmatprep.subr.bf16.mxu1 %v4045_v20  ;;  %v151_v19 = vpack.c.bf16 %v127_v14, %v127_v14  ;;  %v4129_v20 = vld [vmem:[#allocation5 + $0x214] ss:$8 sps:$4 sm:$0xff]   ;;  %v4205_v14 = vld [vmem:[#allocation5 + $0x2e0] ss:$8 sps:$4 sm:$0xff]  }
  0xca   :  { %2731 = vmatprep.subr.bf16.mxu0 %v4048_v21  ;;  %v4132_v21 = vld [vmem:[#allocation5 + $0x714] ss:$8 sps:$4 sm:$0xff]  }
  0xcc   :  { %2527 = vmatpush1.bf16.msra.mxu1 %v4043_v22  ;;  %v120_v22 = vld [vmem:[#allocation2 + $0x28] sm:$0xff] }
  0xcd   :  { %2732 = vmatpush1.bf16.msra.mxu0 %v4046_v23  ;;  %2528 = vmatprep.subr.bf16.mxu1 %v4051_v24  ;;  %v4127_v23 = vld [vmem:[#allocation5 + $0x210] ss:$8 sps:$4 sm:$0xff]   ;;  %v144_v24 = vpack.c.bf16 %v120_v22, %v120_v22 }
  0xce   :  { %2733 = vmatprep.subr.bf16.mxu0 %v4054_v25  ;;  %v4130_v25 = vld [vmem:[#allocation5 + $0x710] ss:$8 sps:$4 sm:$0xff]  }
  0xcf   :  { %v129_v22 = vld [vmem:[#allocation2 + $0x70] sm:$0xff] }
  0xd0   :  { %2529 = vmatpush1.bf16.msra.mxu1 %v4049_v26  ;;  %v130_v26 = vld [vmem:[#allocation2 + $0x78] sm:$0xff] }
  0xd1   :  { %2734 = vmatpush1.bf16.msra.mxu0 %v4052_v27  ;;  %2530 = vmatprep.subr.bf16.mxu1 %v4057_v28  ;;  %v4135_v27 = vld [vmem:[#allocation5 + $0x224] ss:$8 sps:$4 sm:$0xff]  }
  0xd2   :  { %2735 = vmatprep.subr.bf16.mxu0 %v4060_v29  ;;  %v4138_v28 = vld [vmem:[#allocation5 + $0x724] ss:$8 sps:$4 sm:$0xff]   ;;  %v154_v29 = vpack.c.bf16 %v130_v26, %v130_v26 }
  0xd4   :  { %2531 = vmatpush1.bf16.msra.mxu1 %v4055_v30  ;;  %v4133_v30 = vld [vmem:[#allocation5 + $0x220] ss:$8 sps:$4 sm:$0xff]  }
  0xd5   :  { %2736 = vmatpush1.bf16.msra.mxu0 %v4058_v31  ;;  %2532 = vmatprep.subr.bf16.mxu1 %v4063_v32  ;;  %v4136_v31 = vld [vmem:[#allocation5 + $0x720] ss:$8 sps:$4 sm:$0xff]   ;;  %v4141_v32 = vld [vmem:[#allocation5 + $0x234] ss:$8 sps:$4 sm:$0xff]  }
  0xd6   :  { %2737 = vmatprep.subr.bf16.mxu0 %v4066_v33  ;;  %v4144_v33 = vld [vmem:[#allocation5 + $0x734] ss:$8 sps:$4 sm:$0xff]  }
  0xd8   :  { %2533 = vmatpush1.bf16.msra.mxu1 %v4061_v35  ;;  %v4142_v35 = vld [vmem:[#allocation5 + $0x730] ss:$8 sps:$4 sm:$0xff]  }
  0xd9   :  { %2738 = vmatpush1.bf16.msra.mxu0 %v4064_v37  ;;  %2534 = vmatprep.subr.bf16.mxu1 %v4069_v39  ;;  %v4150_v37 = vld [vmem:[#allocation5 + $0x744] ss:$8 sps:$4 sm:$0xff]   ;;  %v4148_v39 = vld [vmem:[#allocation5 + $0x740] ss:$8 sps:$4 sm:$0xff]  }
  0xda   :  { %2739 = vmatprep.subr.bf16.mxu0 %v4072_v40  ;;  %v4153_v40 = vld [vmem:[#allocation5 + $0x254] ss:$8 sps:$4 sm:$0xff]  }
  0xdc   :  { %2535 = vmatpush1.bf16.msra.mxu1 %v4067_v42  ;;  %v4151_v42 = vld [vmem:[#allocation5 + $0x250] ss:$8 sps:$4 sm:$0xff]  }
  0xdd   :  { %2740 = vmatpush1.bf16.msra.mxu0 %v4070_v43  ;;  %2536 = vmatprep.subr.bf16.mxu1 %v4075_v44  ;;  %v4154_v43 = vld [vmem:[#allocation5 + $0x750] ss:$8 sps:$4 sm:$0xff]   ;;  %v4159_v44 = vld [vmem:[#allocation5 + $0x264] ss:$8 sps:$4 sm:$0xff]  }
  0xde   :  { %2741 = vmatprep.subr.bf16.mxu0 %v4078_v45  ;;  %v4162_v45 = vld [vmem:[#allocation5 + $0x764] ss:$8 sps:$4 sm:$0xff]  }
  0xe0   :  { %2537 = vmatpush1.bf16.msra.mxu1 %v4073_v46  ;;  %v4157_v46 = vld [vmem:[#allocation5 + $0x260] ss:$8 sps:$4 sm:$0xff]  }
  0xe1   :  { %2742 = vmatpush1.bf16.msra.mxu0 %v4076_v47  ;;  %2538 = vmatprep.subr.bf16.mxu1 %v4081_v48  ;;  %v4160_v47 = vld [vmem:[#allocation5 + $0x760] ss:$8 sps:$4 sm:$0xff]   ;;  %v4165_v48 = vld [vmem:[#allocation5 + $0x274] ss:$8 sps:$4 sm:$0xff]  }
  0xe2   :  { %2743 = vmatprep.subr.bf16.mxu0 %v4084_v49  ;;  %v4168_v49 = vld [vmem:[#allocation5 + $0x774] ss:$8 sps:$4 sm:$0xff]  }
  0xe4   :  { %2539 = vmatpush1.bf16.msra.mxu1 %v4079_v50  ;;  %v4163_v50 = vld [vmem:[#allocation5 + $0x270] ss:$8 sps:$4 sm:$0xff]  }
  0xe5   :  { %2744 = vmatpush1.bf16.msra.mxu0 %v4082_v51  ;;  %2540 = vmatprep.subr.bf16.mxu1 %v4087_v52  ;;  %v4166_v51 = vld [vmem:[#allocation5 + $0x770] ss:$8 sps:$4 sm:$0xff]   ;;  %v4171_v52 = vld [vmem:[#allocation5 + $0x284] ss:$8 sps:$4 sm:$0xff]  }
  0xe6   :  { %2745 = vmatprep.subr.bf16.mxu0 %v4090_v53  ;;  %v4174_v53 = vld [vmem:[#allocation5 + $0x784] ss:$8 sps:$4 sm:$0xff]  }
  0xe8   :  { %2541 = vmatpush1.bf16.msra.mxu1 %v4085_v54  ;;  %v4169_v54 = vld [vmem:[#allocation5 + $0x280] ss:$8 sps:$4 sm:$0xff]  }
  0xe9   :  { %2746 = vmatpush1.bf16.msra.mxu0 %v4088_v55  ;;  %2542 = vmatprep.subr.bf16.mxu1 %v4093_v56  ;;  %v4172_v55 = vld [vmem:[#allocation5 + $0x780] ss:$8 sps:$4 sm:$0xff]   ;;  %v4177_v56 = vld [vmem:[#allocation5 + $0x294] ss:$8 sps:$4 sm:$0xff]  }
  0xea   :  { %2747 = vmatprep.subr.bf16.mxu0 %v4096_v57  ;;  %v4180_v57 = vld [vmem:[#allocation5 + $0x794] ss:$8 sps:$4 sm:$0xff]  }
  0xec   :  { %2543 = vmatpush1.bf16.msra.mxu1 %v4091_v58  ;;  %v4175_v58 = vld [vmem:[#allocation5 + $0x290] ss:$8 sps:$4 sm:$0xff]  }
  0xed   :  { %2748 = vmatpush1.bf16.msra.mxu0 %v4094_v59  ;;  %2544 = vmatprep.subr.bf16.mxu1 %v4099_v60  ;;  %v4178_v59 = vld [vmem:[#allocation5 + $0x790] ss:$8 sps:$4 sm:$0xff]   ;;  %v4183_v60 = vld [vmem:[#allocation5 + $0x2a4] ss:$8 sps:$4 sm:$0xff]  }
  0xee   :  { %2749 = vmatprep.subr.bf16.mxu0 %v4102_v61  ;;  %v4186_v61 = vld [vmem:[#allocation5 + $0x7a4] ss:$8 sps:$4 sm:$0xff]  }
  0xf0   :  { %2545 = vmatpush1.bf16.msra.mxu1 %v4097_v62  ;;  %v4181_v62 = vld [vmem:[#allocation5 + $0x2a0] ss:$8 sps:$4 sm:$0xff]  }
  0xf1   :  { %2750 = vmatpush1.bf16.msra.mxu0 %v4100_v63  ;;  %2546 = vmatprep.subr.bf16.mxu1 %v4105_v0  ;;  %v4184_v63 = vld [vmem:[#allocation5 + $0x7a0] ss:$8 sps:$4 sm:$0xff]   ;;  %v4189_v0 = vld [vmem:[#allocation5 + $0x2b4] ss:$8 sps:$4 sm:$0xff]  }
  0xf2   :  { %2751 = vmatprep.subr.bf16.mxu0 %v4108_v1  ;;  %v4192_v1 = vld [vmem:[#allocation5 + $0x7b4] ss:$8 sps:$4 sm:$0xff]  }
  0xf4   :  { %2547 = vmatpush1.bf16.msra.mxu1 %v4103_v2  ;;  %v4187_v2 = vld [vmem:[#allocation5 + $0x2b0] ss:$8 sps:$4 sm:$0xff]  }
  0xf5   :  { %2752 = vmatpush1.bf16.msra.mxu0 %v4106_v3  ;;  %2548 = vmatprep.subr.bf16.mxu1 %v4111_v4  ;;  %v4190_v3 = vld [vmem:[#allocation5 + $0x7b0] ss:$8 sps:$4 sm:$0xff]   ;;  %v4195_v4 = vld [vmem:[#allocation5 + $0x2c4] ss:$8 sps:$4 sm:$0xff]  }
  0xf6   :  { %2753 = vmatprep.subr.bf16.mxu0 %v4114_v5  ;;  %v4198_v5 = vld [vmem:[#allocation5 + $0x7c4] ss:$8 sps:$4 sm:$0xff]  }
  0xf8   :  { %2549 = vmatpush1.bf16.msra.mxu1 %v4109_v6  ;;  %v4193_v6 = vld [vmem:[#allocation5 + $0x2c0] ss:$8 sps:$4 sm:$0xff]  }
  0xf9   :  { %2754 = vmatpush1.bf16.msra.mxu0 %v4112_v7  ;;  %2550 = vmatprep.subr.bf16.mxu1 %v4117_v8  ;;  %v4196_v7 = vld [vmem:[#allocation5 + $0x7c0] ss:$8 sps:$4 sm:$0xff]   ;;  %v4201_v8 = vld [vmem:[#allocation5 + $0x2d4] ss:$8 sps:$4 sm:$0xff]  }
  0xfa   :  { %2755 = vmatprep.subr.bf16.mxu0 %v4120_v9  ;;  %v4204_v9 = vld [vmem:[#allocation5 + $0x7d4] ss:$8 sps:$4 sm:$0xff]  }
  0xfc   :  { %2551 = vmatpush1.bf16.msra.mxu1 %v4115_v10  ;;  %v4199_v10 = vld [vmem:[#allocation5 + $0x2d0] ss:$8 sps:$4 sm:$0xff]  }
  0xfd   :  { %2756 = vmatpush1.bf16.msra.mxu0 %v4118_v11  ;;  %2561 = vmatprep.subr.bf16.mxu1 %v4123_v12  ;;  %v4202_v11 = vld [vmem:[#allocation5 + $0x7d0] ss:$8 sps:$4 sm:$0xff]   ;;  %v4207_v12 = vld [vmem:[#allocation5 + $0x2e4] ss:$8 sps:$4 sm:$0xff]  }
  0xfe   :  { %2766 = vmatprep.subr.bf16.mxu0 %v4126_v15  ;;  %v4208_v15 = vld [vmem:[#allocation5 + $0x7e0] ss:$8 sps:$4 sm:$0xff]  }
  0xff   :  { %2553 = vmatmul.mubr.bf16.vlgmr.msra.gmra.mrb[0].mxu1 %v141_v18  ;;  %v4211_v18 = vld [vmem:[#allocation5 + $0x2f0] ss:$8 sps:$4 sm:$0xff]  }
 0x100   :  { %2758 = vmatmul.mubr.bf16.vlgmr.msra.gmra.mrb[0].mxu0 %v151_v19  ;;  %2562 = vmatpush1.bf16.msra.mxu1 %v4121_v16  ;;  %v4213_v16 = vld [vmem:[#allocation5 + $0x2f4] ss:$8 sps:$4 sm:$0xff]   ;;  %v4214_v19 = vld [vmem:[#allocation5 + $0x7f0] ss:$8 sps:$4 sm:$0xff]  }
 0x101   :  { %2767 = vmatpush1.bf16.msra.mxu0 %v4124_v17  ;;  %2563 = vmatprep.subr.bf16.mxu1 %v4129_v20  ;;  %v4216_v17 = vld [vmem:[#allocation5 + $0x7f4] ss:$8 sps:$4 sm:$0xff]   ;;  %v4219_v20 = vld [vmem:[#allocation5 + $0x304] ss:$8 sps:$4 sm:$0xff]  }
 0x102   :  { %2768 = vmatprep.subr.bf16.mxu0 %v4132_v21  ;;  %2593 = vmatprep.mubr.bf16.mxu1 %v144_v24  ;;  %v119_v21 = vld [vmem:[#allocation2 + $0x20] sm:$0xff] }
 0x103   :  { %2798 = vmatprep.mubr.bf16.mxu0 %v154_v29  ;;  %v4217_v24 = vld [vmem:[#allocation5 + $0x300] ss:$8 sps:$4 sm:$0xff]   ;;  %v143_v26 = vpack.c.bf16 %v119_v21, %v119_v21  ;;  %v4306_v21 = vld [vmem:[#allocation5 + $0x8e4] ss:$8 sps:$4 sm:$0xff]  }
 0x104   :  { %2564 = vmatpush1.bf16.msra.mxu1 %v4127_v23  ;;  %v4222_v23 = vld [vmem:[#allocation5 + $0x804] ss:$8 sps:$4 sm:$0xff]  }
 0x105   :  { %2769 = vmatpush1.bf16.msra.mxu0 %v4130_v25  ;;  %2565 = vmatprep.subr.bf16.mxu1 %v4135_v27  ;;  %v4220_v25 = vld [vmem:[#allocation5 + $0x800] ss:$8 sps:$4 sm:$0xff]   ;;  %v153_v27 = vpack.c.bf16 %v129_v22, %v129_v22 }
 0x106   :  { %2770 = vmatprep.subr.bf16.mxu0 %v4138_v28  ;;  %v122_v28 = vld [vmem:[#allocation2 + $0x38] sm:$0xff]  ;;  %v132_v29 = vld [vmem:[#allocation2 + $0x88] sm:$0xff] }
 0x107   :  { %v4301_v22 = vld [vmem:[#allocation5 + $0x3e0] ss:$8 sps:$4 sm:$0xff]  }
 0x108   :  { %2566 = vmatpush1.bf16.msra.mxu1 %v4133_v30  ;;  %v4225_v30 = vld [vmem:[#allocation5 + $0x314] ss:$8 sps:$4 sm:$0xff]  }
 0x109   :  { %2771 = vmatpush1.bf16.msra.mxu0 %v4136_v31  ;;  %2567 = vmatprep.subr.bf16.mxu1 %v4141_v32  ;;  %v4228_v31 = vld [vmem:[#allocation5 + $0x814] ss:$8 sps:$4 sm:$0xff]   ;;  %v146_v32 = vpack.c.bf16 %v122_v28, %v122_v28  ;;  %v4315_v28 = vld [vmem:[#allocation5 + $0x404] ss:$8 sps:$4 sm:$0xff]  }
 0x10a   :  { %2772 = vmatprep.subr.bf16.mxu0 %v4144_v33  ;;  %v156_v33 = vpack.c.bf16 %v132_v29, %v132_v29  ;;  %v4318_v29 = vld [vmem:[#allocation5 + $0x904] ss:$8 sps:$4 sm:$0xff]  }
 0x10c   :  { %2568 = vmatpush1.bf16.msra.mxu1 %v4139_v34  ;;  %v4223_v34 = vld [vmem:[#allocation5 + $0x310] ss:$8 sps:$4 sm:$0xff]  }
 0x10d   :  { %2773 = vmatpush1.bf16.msra.mxu0 %v4142_v35  ;;  %2569 = vmatprep.subr.bf16.mxu1 %v4147_v36  ;;  %v4226_v35 = vld [vmem:[#allocation5 + $0x810] ss:$8 sps:$4 sm:$0xff]   ;;  %v4231_v36 = vld [vmem:[#allocation5 + $0x324] ss:$8 sps:$4 sm:$0xff]  }
 0x10e   :  { %2774 = vmatprep.subr.bf16.mxu0 %v4150_v37  ;;  %v4234_v37 = vld [vmem:[#allocation5 + $0x824] ss:$8 sps:$4 sm:$0xff]  }
 0x110   :  { %2570 = vmatpush1.bf16.msra.mxu1 %v4145_v38  ;;  %v4229_v38 = vld [vmem:[#allocation5 + $0x320] ss:$8 sps:$4 sm:$0xff]  }
 0x111   :  { %2775 = vmatpush1.bf16.msra.mxu0 %v4148_v39  ;;  %2571 = vmatprep.subr.bf16.mxu1 %v4153_v40  ;;  %v4232_v39 = vld [vmem:[#allocation5 + $0x820] ss:$8 sps:$4 sm:$0xff]   ;;  %v4237_v40 = vld [vmem:[#allocation5 + $0x334] ss:$8 sps:$4 sm:$0xff]  }
 0x112   :  { %2776 = vmatprep.subr.bf16.mxu0 %v4156_v41  ;;  %v4240_v41 = vld [vmem:[#allocation5 + $0x834] ss:$8 sps:$4 sm:$0xff]  }
 0x114   :  { %2572 = vmatpush1.bf16.msra.mxu1 %v4151_v42  ;;  %v4235_v42 = vld [vmem:[#allocation5 + $0x330] ss:$8 sps:$4 sm:$0xff]  }
 0x115   :  { %2777 = vmatpush1.bf16.msra.mxu0 %v4154_v43  ;;  %2573 = vmatprep.subr.bf16.mxu1 %v4159_v44  ;;  %v4238_v43 = vld [vmem:[#allocation5 + $0x830] ss:$8 sps:$4 sm:$0xff]   ;;  %v4243_v44 = vld [vmem:[#allocation5 + $0x344] ss:$8 sps:$4 sm:$0xff]  }
 0x116   :  { %2778 = vmatprep.subr.bf16.mxu0 %v4162_v45  ;;  %v4246_v45 = vld [vmem:[#allocation5 + $0x844] ss:$8 sps:$4 sm:$0xff]  }
 0x118   :  { %2574 = vmatpush1.bf16.msra.mxu1 %v4157_v46  ;;  %v4241_v46 = vld [vmem:[#allocation5 + $0x340] ss:$8 sps:$4 sm:$0xff]  }
 0x119   :  { %2779 = vmatpush1.bf16.msra.mxu0 %v4160_v47  ;;  %2575 = vmatprep.subr.bf16.mxu1 %v4165_v48  ;;  %v4244_v47 = vld [vmem:[#allocation5 + $0x840] ss:$8 sps:$4 sm:$0xff]   ;;  %v4249_v48 = vld [vmem:[#allocation5 + $0x354] ss:$8 sps:$4 sm:$0xff]  }
 0x11a   :  { %2780 = vmatprep.subr.bf16.mxu0 %v4168_v49  ;;  %v4252_v49 = vld [vmem:[#allocation5 + $0x854] ss:$8 sps:$4 sm:$0xff]  }
 0x11c   :  { %2576 = vmatpush1.bf16.msra.mxu1 %v4163_v50  ;;  %v4247_v50 = vld [vmem:[#allocation5 + $0x350] ss:$8 sps:$4 sm:$0xff]  }
 0x11d   :  { %2781 = vmatpush1.bf16.msra.mxu0 %v4166_v51  ;;  %2577 = vmatprep.subr.bf16.mxu1 %v4171_v52  ;;  %v4250_v51 = vld [vmem:[#allocation5 + $0x850] ss:$8 sps:$4 sm:$0xff]   ;;  %v4255_v52 = vld [vmem:[#allocation5 + $0x364] ss:$8 sps:$4 sm:$0xff]  }
 0x11e   :  { %2782 = vmatprep.subr.bf16.mxu0 %v4174_v53  ;;  %v4258_v53 = vld [vmem:[#allocation5 + $0x864] ss:$8 sps:$4 sm:$0xff]  }
 0x120   :  { %2578 = vmatpush1.bf16.msra.mxu1 %v4169_v54  ;;  %v4253_v54 = vld [vmem:[#allocation5 + $0x360] ss:$8 sps:$4 sm:$0xff]  }
 0x121   :  { %2783 = vmatpush1.bf16.msra.mxu0 %v4172_v55  ;;  %2579 = vmatprep.subr.bf16.mxu1 %v4177_v56  ;;  %v4256_v55 = vld [vmem:[#allocation5 + $0x860] ss:$8 sps:$4 sm:$0xff]   ;;  %v4261_v56 = vld [vmem:[#allocation5 + $0x374] ss:$8 sps:$4 sm:$0xff]  }
 0x122   :  { %2784 = vmatprep.subr.bf16.mxu0 %v4180_v57  ;;  %v4264_v57 = vld [vmem:[#allocation5 + $0x874] ss:$8 sps:$4 sm:$0xff]  }
 0x124   :  { %2580 = vmatpush1.bf16.msra.mxu1 %v4175_v58  ;;  %v4259_v58 = vld [vmem:[#allocation5 + $0x370] ss:$8 sps:$4 sm:$0xff]  }
 0x125   :  { %2785 = vmatpush1.bf16.msra.mxu0 %v4178_v59  ;;  %2581 = vmatprep.subr.bf16.mxu1 %v4183_v60  ;;  %v4262_v59 = vld [vmem:[#allocation5 + $0x870] ss:$8 sps:$4 sm:$0xff]   ;;  %v4267_v60 = vld [vmem:[#allocation5 + $0x384] ss:$8 sps:$4 sm:$0xff]  }
 0x126   :  { %2786 = vmatprep.subr.bf16.mxu0 %v4186_v61  ;;  %v4270_v61 = vld [vmem:[#allocation5 + $0x884] ss:$8 sps:$4 sm:$0xff]  }
 0x128   :  { %2582 = vmatpush1.bf16.msra.mxu1 %v4181_v62  ;;  %v4265_v62 = vld [vmem:[#allocation5 + $0x380] ss:$8 sps:$4 sm:$0xff]  }
 0x129   :  { %2787 = vmatpush1.bf16.msra.mxu0 %v4184_v63  ;;  %2583 = vmatprep.subr.bf16.mxu1 %v4189_v0  ;;  %v4268_v63 = vld [vmem:[#allocation5 + $0x880] ss:$8 sps:$4 sm:$0xff]   ;;  %v4273_v0 = vld [vmem:[#allocation5 + $0x394] ss:$8 sps:$4 sm:$0xff]  }
 0x12a   :  { %2788 = vmatprep.subr.bf16.mxu0 %v4192_v1  ;;  %v4276_v1 = vld [vmem:[#allocation5 + $0x894] ss:$8 sps:$4 sm:$0xff]  }
 0x12c   :  { %2584 = vmatpush1.bf16.msra.mxu1 %v4187_v2  ;;  %v4271_v2 = vld [vmem:[#allocation5 + $0x390] ss:$8 sps:$4 sm:$0xff]  }
 0x12d   :  { %2789 = vmatpush1.bf16.msra.mxu0 %v4190_v3  ;;  %2585 = vmatprep.subr.bf16.mxu1 %v4195_v4  ;;  %v4274_v3 = vld [vmem:[#allocation5 + $0x890] ss:$8 sps:$4 sm:$0xff]   ;;  %v4279_v4 = vld [vmem:[#allocation5 + $0x3a4] ss:$8 sps:$4 sm:$0xff]  }
 0x12e   :  { %2790 = vmatprep.subr.bf16.mxu0 %v4198_v5  ;;  %v4282_v5 = vld [vmem:[#allocation5 + $0x8a4] ss:$8 sps:$4 sm:$0xff]  }
 0x130   :  { %2586 = vmatpush1.bf16.msra.mxu1 %v4193_v6  ;;  %v4277_v6 = vld [vmem:[#allocation5 + $0x3a0] ss:$8 sps:$4 sm:$0xff]  }
 0x131   :  { %2791 = vmatpush1.bf16.msra.mxu0 %v4196_v7  ;;  %2587 = vmatprep.subr.bf16.mxu1 %v4201_v8  ;;  %v4280_v7 = vld [vmem:[#allocation5 + $0x8a0] ss:$8 sps:$4 sm:$0xff]   ;;  %v4285_v8 = vld [vmem:[#allocation5 + $0x3b4] ss:$8 sps:$4 sm:$0xff]  }
 0x132   :  { %2792 = vmatprep.subr.bf16.mxu0 %v4204_v9  ;;  %v4288_v9 = vld [vmem:[#allocation5 + $0x8b4] ss:$8 sps:$4 sm:$0xff]  }
 0x134   :  { %2588 = vmatpush1.bf16.msra.mxu1 %v4199_v10  ;;  %v4283_v10 = vld [vmem:[#allocation5 + $0x3b0] ss:$8 sps:$4 sm:$0xff]  }
 0x135   :  { %2793 = vmatpush1.bf16.msra.mxu0 %v4202_v11  ;;  %2589 = vmatprep.subr.bf16.mxu1 %v4207_v12  ;;  %v4286_v11 = vld [vmem:[#allocation5 + $0x8b0] ss:$8 sps:$4 sm:$0xff]   ;;  %v4291_v12 = vld [vmem:[#allocation5 + $0x3c4] ss:$8 sps:$4 sm:$0xff]  }
 0x136   :  { %2794 = vmatprep.subr.bf16.mxu0 %v4210_v13  ;;  %v4294_v13 = vld [vmem:[#allocation5 + $0x8c4] ss:$8 sps:$4 sm:$0xff]  }
 0x138   :  { %2590 = vmatpush1.bf16.msra.mxu1 %v4205_v14  ;;  %v4289_v14 = vld [vmem:[#allocation5 + $0x3c0] ss:$8 sps:$4 sm:$0xff]  }
 0x139   :  { %2795 = vmatpush1.bf16.msra.mxu0 %v4208_v15  ;;  %2591 = vmatprep.subr.bf16.mxu1 %v4213_v16  ;;  %v4292_v15 = vld [vmem:[#allocation5 + $0x8c0] ss:$8 sps:$4 sm:$0xff]   ;;  %v4297_v16 = vld [vmem:[#allocation5 + $0x3d4] ss:$8 sps:$4 sm:$0xff]  }
 0x13a   :  { %2796 = vmatprep.subr.bf16.mxu0 %v4216_v17  ;;  %v4300_v17 = vld [vmem:[#allocation5 + $0x8d4] ss:$8 sps:$4 sm:$0xff]  }
 0x13c   :  { %2592 = vmatpush1.bf16.msra.mxu1 %v4211_v18  ;;  %v4295_v18 = vld [vmem:[#allocation5 + $0x3d0] ss:$8 sps:$4 sm:$0xff]  }
 0x13d   :  { %2797 = vmatpush1.bf16.msra.mxu0 %v4214_v19  ;;  %2602 = vmatprep.subr.bf16.mxu1 %v4219_v20  ;;  %v4298_v19 = vld [vmem:[#allocation5 + $0x8d0] ss:$8 sps:$4 sm:$0xff]   ;;  %v4303_v20 = vld [vmem:[#allocation5 + $0x3e4] ss:$8 sps:$4 sm:$0xff]  }
 0x13e   :  { %2807 = vmatprep.subr.bf16.mxu0 %v4222_v23  ;;  %v4304_v23 = vld [vmem:[#allocation5 + $0x8e0] ss:$8 sps:$4 sm:$0xff]  }
 0x13f   :  { %2594 = vmatmul.mubr.bf16.vlgmr.msra.gmra.mrb[0].mxu1 %v143_v26  ;;  %v4307_v26 = vld [vmem:[#allocation5 + $0x3f0] ss:$8 sps:$4 sm:$0xff]  }
 0x140   :  { %2799 = vmatmul.mubr.bf16.vlgmr.msra.gmra.mrb[0].mxu0 %v153_v27  ;;  %2603 = vmatpush1.bf16.msra.mxu1 %v4217_v24  ;;  %v4309_v24 = vld [vmem:[#allocation5 + $0x3f4] ss:$8 sps:$4 sm:$0xff]   ;;  %v4310_v27 = vld [vmem:[#allocation5 + $0x8f0] ss:$8 sps:$4 sm:$0xff]  }
 0x141   :  { %2808 = vmatpush1.bf16.msra.mxu0 %v4220_v25  ;;  %2604 = vmatprep.subr.bf16.mxu1 %v4225_v30  ;;  %v4312_v25 = vld [vmem:[#allocation5 + $0x8f4] ss:$8 sps:$4 sm:$0xff]  }
 0x142   :  { %2809 = vmatprep.subr.bf16.mxu0 %v4228_v31  ;;  %2634 = vmatprep.mubr.bf16.mxu1 %v146_v32  ;;  %v121_v30 = vld [vmem:[#allocation2 + $0x30] sm:$0xff]  ;;  %v131_v31 = vld [vmem:[#allocation2 + $0x80] sm:$0xff]  ;;  %v124_v32 = vld [vmem:[#allocation2 + $0x48] sm:$0xff] }
 0x143   :  { %2839 = vmatprep.mubr.bf16.mxu0 %v156_v33  ;;  %v134_v33 = vld [vmem:[#allocation2 + $0x98] sm:$0xff] }
 0x144   :  { %2605 = vmatpush1.bf16.msra.mxu1 %v4223_v34  ;;  %v145_v34 = vpack.c.bf16 %v121_v30, %v121_v30  ;;  %v4397_v30 = vld [vmem:[#allocation5 + $0x4e0] ss:$8 sps:$4 sm:$0xff]  }
 0x145   :  { %2810 = vmatpush1.bf16.msra.mxu0 %v4226_v35  ;;  %2606 = vmatprep.subr.bf16.mxu1 %v4231_v36  ;;  %v155_v35 = vpack.c.bf16 %v131_v31, %v131_v31  ;;  %v4313_v36 = vld [vmem:[#allocation5 + $0x400] ss:$8 sps:$4 sm:$0xff]  }
 0x146   :  { %2811 = vmatprep.subr.bf16.mxu0 %v4234_v37  ;;  %v4316_v37 = vld [vmem:[#allocation5 + $0x900] ss:$8 sps:$4 sm:$0xff]  }
 0x147   :  { %v4400_v31 = vld [vmem:[#allocation5 + $0x9e0] ss:$8 sps:$4 sm:$0xff]  }
 0x148   :  { %2607 = vmatpush1.bf16.msra.mxu1 %v4229_v38  ;;  %v4321_v38 = vld [vmem:[#allocation5 + $0x414] ss:$8 sps:$4 sm:$0xff]  }
 0x149   :  { %2812 = vmatpush1.bf16.msra.mxu0 %v4232_v39  ;;  %2608 = vmatprep.subr.bf16.mxu1 %v4237_v40  ;;  %v4324_v39 = vld [vmem:[#allocation5 + $0x914] ss:$8 sps:$4 sm:$0xff]   ;;  %v4319_v40 = vld [vmem:[#allocation5 + $0x410] ss:$8 sps:$4 sm:$0xff]  }
 0x14a   :  { %2813 = vmatprep.subr.bf16.mxu0 %v4240_v41  ;;  %v4322_v41 = vld [vmem:[#allocation5 + $0x910] ss:$8 sps:$4 sm:$0xff]  }
 0x14c   :  { %2609 = vmatpush1.bf16.msra.mxu1 %v4235_v42  ;;  %v148_v42 = vpack.c.bf16 %v124_v32, %v124_v32  ;;  %v4405_v32 = vld [vmem:[#allocation5 + $0x4f4] ss:$8 sps:$4 sm:$0xff]  }
 0x14d   :  { %2814 = vmatpush1.bf16.msra.mxu0 %v4238_v43  ;;  %2610 = vmatprep.subr.bf16.mxu1 %v4243_v44  ;;  %v158_v43 = vpack.c.bf16 %v134_v33, %v134_v33  ;;  %v4327_v44 = vld [vmem:[#allocation5 + $0x424] ss:$8 sps:$4 sm:$0xff]   ;;  %v4408_v33 = vld [vmem:[#allocation5 + $0x9f4] ss:$8 sps:$4 sm:$0xff]  }
 0x14e   :  { %2815 = vmatprep.subr.bf16.mxu0 %v4246_v45  ;;  %v4330_v45 = vld [vmem:[#allocation5 + $0x924] ss:$8 sps:$4 sm:$0xff]  }
 0x150   :  { %2611 = vmatpush1.bf16.msra.mxu1 %v4241_v46  ;;  %v4325_v46 = vld [vmem:[#allocation5 + $0x420] ss:$8 sps:$4 sm:$0xff]  }
 0x151   :  { %2816 = vmatpush1.bf16.msra.mxu0 %v4244_v47  ;;  %2612 = vmatprep.subr.bf16.mxu1 %v4249_v48  ;;  %v4328_v47 = vld [vmem:[#allocation5 + $0x920] ss:$8 sps:$4 sm:$0xff]   ;;  %v4333_v48 = vld [vmem:[#allocation5 + $0x434] ss:$8 sps:$4 sm:$0xff]  }
 0x152   :  { %2817 = vmatprep.subr.bf16.mxu0 %v4252_v49  ;;  %v4336_v49 = vld [vmem:[#allocation5 + $0x934] ss:$8 sps:$4 sm:$0xff]  }
 0x154   :  { %2613 = vmatpush1.bf16.msra.mxu1 %v4247_v50  ;;  %v4331_v50 = vld [vmem:[#allocation5 + $0x430] ss:$8 sps:$4 sm:$0xff]  }
 0x155   :  { %2818 = vmatpush1.bf16.msra.mxu0 %v4250_v51  ;;  %2614 = vmatprep.subr.bf16.mxu1 %v4255_v52  ;;  %v4334_v51 = vld [vmem:[#allocation5 + $0x930] ss:$8 sps:$4 sm:$0xff]   ;;  %v4339_v52 = vld [vmem:[#allocation5 + $0x444] ss:$8 sps:$4 sm:$0xff]  }
 0x156   :  { %2819 = vmatprep.subr.bf16.mxu0 %v4258_v53  ;;  %v4342_v53 = vld [vmem:[#allocation5 + $0x944] ss:$8 sps:$4 sm:$0xff]  }
 0x158   :  { %2615 = vmatpush1.bf16.msra.mxu1 %v4253_v54  ;;  %v4337_v54 = vld [vmem:[#allocation5 + $0x440] ss:$8 sps:$4 sm:$0xff]  }
 0x159   :  { %2820 = vmatpush1.bf16.msra.mxu0 %v4256_v55  ;;  %2616 = vmatprep.subr.bf16.mxu1 %v4261_v56  ;;  %v4340_v55 = vld [vmem:[#allocation5 + $0x940] ss:$8 sps:$4 sm:$0xff]   ;;  %v4345_v56 = vld [vmem:[#allocation5 + $0x454] ss:$8 sps:$4 sm:$0xff]  }
 0x15a   :  { %2821 = vmatprep.subr.bf16.mxu0 %v4264_v57  ;;  %v4348_v57 = vld [vmem:[#allocation5 + $0x954] ss:$8 sps:$4 sm:$0xff]  }
 0x15c   :  { %2617 = vmatpush1.bf16.msra.mxu1 %v4259_v58  ;;  %v4343_v58 = vld [vmem:[#allocation5 + $0x450] ss:$8 sps:$4 sm:$0xff]  }
 0x15d   :  { %2822 = vmatpush1.bf16.msra.mxu0 %v4262_v59  ;;  %2618 = vmatprep.subr.bf16.mxu1 %v4267_v60  ;;  %v4346_v59 = vld [vmem:[#allocation5 + $0x950] ss:$8 sps:$4 sm:$0xff]   ;;  %v4351_v60 = vld [vmem:[#allocation5 + $0x464] ss:$8 sps:$4 sm:$0xff]  }
 0x15e   :  { %2823 = vmatprep.subr.bf16.mxu0 %v4270_v61  ;;  %v4354_v61 = vld [vmem:[#allocation5 + $0x964] ss:$8 sps:$4 sm:$0xff]  }
 0x160   :  { %2619 = vmatpush1.bf16.msra.mxu1 %v4265_v62  ;;  %v4349_v62 = vld [vmem:[#allocation5 + $0x460] ss:$8 sps:$4 sm:$0xff]  }
 0x161   :  { %2824 = vmatpush1.bf16.msra.mxu0 %v4268_v63  ;;  %2620 = vmatprep.subr.bf16.mxu1 %v4273_v0  ;;  %v4352_v63 = vld [vmem:[#allocation5 + $0x960] ss:$8 sps:$4 sm:$0xff]   ;;  %v4357_v0 = vld [vmem:[#allocation5 + $0x474] ss:$8 sps:$4 sm:$0xff]  }
 0x162   :  { %2825 = vmatprep.subr.bf16.mxu0 %v4276_v1  ;;  %v4360_v1 = vld [vmem:[#allocation5 + $0x974] ss:$8 sps:$4 sm:$0xff]  }
 0x164   :  { %2621 = vmatpush1.bf16.msra.mxu1 %v4271_v2  ;;  %v4355_v2 = vld [vmem:[#allocation5 + $0x470] ss:$8 sps:$4 sm:$0xff]  }
 0x165   :  { %2826 = vmatpush1.bf16.msra.mxu0 %v4274_v3  ;;  %2622 = vmatprep.subr.bf16.mxu1 %v4279_v4  ;;  %v4358_v3 = vld [vmem:[#allocation5 + $0x970] ss:$8 sps:$4 sm:$0xff]   ;;  %v4363_v4 = vld [vmem:[#allocation5 + $0x484] ss:$8 sps:$4 sm:$0xff]  }
 0x166   :  { %2827 = vmatprep.subr.bf16.mxu0 %v4282_v5  ;;  %v4366_v5 = vld [vmem:[#allocation5 + $0x984] ss:$8 sps:$4 sm:$0xff]  }
 0x168   :  { %2623 = vmatpush1.bf16.msra.mxu1 %v4277_v6  ;;  %v4361_v6 = vld [vmem:[#allocation5 + $0x480] ss:$8 sps:$4 sm:$0xff]  }
 0x169   :  { %2828 = vmatpush1.bf16.msra.mxu0 %v4280_v7  ;;  %2624 = vmatprep.subr.bf16.mxu1 %v4285_v8  ;;  %v4364_v7 = vld [vmem:[#allocation5 + $0x980] ss:$8 sps:$4 sm:$0xff]   ;;  %v4369_v8 = vld [vmem:[#allocation5 + $0x494] ss:$8 sps:$4 sm:$0xff]  }
 0x16a   :  { %2829 = vmatprep.subr.bf16.mxu0 %v4288_v9  ;;  %v4372_v9 = vld [vmem:[#allocation5 + $0x994] ss:$8 sps:$4 sm:$0xff]  }
 0x16c   :  { %2625 = vmatpush1.bf16.msra.mxu1 %v4283_v10  ;;  %v4367_v10 = vld [vmem:[#allocation5 + $0x490] ss:$8 sps:$4 sm:$0xff]  }
 0x16d   :  { %2830 = vmatpush1.bf16.msra.mxu0 %v4286_v11  ;;  %2626 = vmatprep.subr.bf16.mxu1 %v4291_v12  ;;  %v4370_v11 = vld [vmem:[#allocation5 + $0x990] ss:$8 sps:$4 sm:$0xff]   ;;  %v4375_v12 = vld [vmem:[#allocation5 + $0x4a4] ss:$8 sps:$4 sm:$0xff]  }
 0x16e   :  { %2831 = vmatprep.subr.bf16.mxu0 %v4294_v13  ;;  %v4378_v13 = vld [vmem:[#allocation5 + $0x9a4] ss:$8 sps:$4 sm:$0xff]  }
 0x170   :  { %2627 = vmatpush1.bf16.msra.mxu1 %v4289_v14  ;;  %v4373_v14 = vld [vmem:[#allocation5 + $0x4a0] ss:$8 sps:$4 sm:$0xff]  }
 0x171   :  { %2832 = vmatpush1.bf16.msra.mxu0 %v4292_v15  ;;  %2628 = vmatprep.subr.bf16.mxu1 %v4297_v16  ;;  %v4376_v15 = vld [vmem:[#allocation5 + $0x9a0] ss:$8 sps:$4 sm:$0xff]   ;;  %v4381_v16 = vld [vmem:[#allocation5 + $0x4b4] ss:$8 sps:$4 sm:$0xff]  }
 0x172   :  { %2833 = vmatprep.subr.bf16.mxu0 %v4300_v17  ;;  %v4384_v17 = vld [vmem:[#allocation5 + $0x9b4] ss:$8 sps:$4 sm:$0xff]  }
 0x174   :  { %2629 = vmatpush1.bf16.msra.mxu1 %v4295_v18  ;;  %v4379_v18 = vld [vmem:[#allocation5 + $0x4b0] ss:$8 sps:$4 sm:$0xff]  }
 0x175   :  { %2834 = vmatpush1.bf16.msra.mxu0 %v4298_v19  ;;  %2630 = vmatprep.subr.bf16.mxu1 %v4303_v20  ;;  %v4382_v19 = vld [vmem:[#allocation5 + $0x9b0] ss:$8 sps:$4 sm:$0xff]   ;;  %v4387_v20 = vld [vmem:[#allocation5 + $0x4c4] ss:$8 sps:$4 sm:$0xff]  }
 0x176   :  { %2835 = vmatprep.subr.bf16.mxu0 %v4306_v21  ;;  %v4390_v21 = vld [vmem:[#allocation5 + $0x9c4] ss:$8 sps:$4 sm:$0xff]  }
 0x178   :  { %2631 = vmatpush1.bf16.msra.mxu1 %v4301_v22  ;;  %v4385_v22 = vld [vmem:[#allocation5 + $0x4c0] ss:$8 sps:$4 sm:$0xff]  }
 0x179   :  { %2836 = vmatpush1.bf16.msra.mxu0 %v4304_v23  ;;  %2632 = vmatprep.subr.bf16.mxu1 %v4309_v24  ;;  %v4388_v23 = vld [vmem:[#allocation5 + $0x9c0] ss:$8 sps:$4 sm:$0xff]   ;;  %v4393_v24 = vld [vmem:[#allocation5 + $0x4d4] ss:$8 sps:$4 sm:$0xff]  }
 0x17a   :  { %2837 = vmatprep.subr.bf16.mxu0 %v4312_v25  ;;  %v4396_v25 = vld [vmem:[#allocation5 + $0x9d4] ss:$8 sps:$4 sm:$0xff]  }
 0x17c   :  { %2633 = vmatpush1.bf16.msra.mxu1 %v4307_v26  ;;  %v4391_v26 = vld [vmem:[#allocation5 + $0x4d0] ss:$8 sps:$4 sm:$0xff]  }
 0x17d   :  { %2838 = vmatpush1.bf16.msra.mxu0 %v4310_v27  ;;  %2643 = vmatprep.subr.bf16.mxu1 %v4315_v28  ;;  %v4394_v27 = vld [vmem:[#allocation5 + $0x9d0] ss:$8 sps:$4 sm:$0xff]   ;;  %v4399_v28 = vld [vmem:[#allocation5 + $0x4e4] ss:$8 sps:$4 sm:$0xff]  }
 0x17e   :  { %2848 = vmatprep.subr.bf16.mxu0 %v4318_v29  ;;  %v4402_v29 = vld [vmem:[#allocation5 + $0x9e4] ss:$8 sps:$4 sm:$0xff]  }
 0x17f   :  { %2635 = vmatmul.mubr.bf16.vlgmr.msra.gmra.mrb[0].mxu1 %v145_v34  ;;  %v4403_v34 = vld [vmem:[#allocation5 + $0x4f0] ss:$8 sps:$4 sm:$0xff]  }
 0x180   :  { %2840 = vmatmul.mubr.bf16.vlgmr.msra.gmra.mrb[0].mxu0 %v155_v35  ;;  %2644 = vmatpush1.bf16.msra.mxu1 %v4313_v36  ;;  %v4406_v35 = vld [vmem:[#allocation5 + $0x9f0] ss:$8 sps:$4 sm:$0xff]   ;;  %v123_v36 = vld [vmem:[#allocation2 + $0x40] sm:$0xff] }
 0x181   :  { %2849 = vmatpush1.bf16.msra.mxu0 %v4316_v37  ;;  %2645 = vmatprep.subr.bf16.mxu1 %v4321_v38  ;;  %v133_v37 = vld [vmem:[#allocation2 + $0x90] sm:$0xff]  ;;  %v4411_v38 = vld [vmem:[#allocation5 + $0xa04] ss:$8 sps:$4 sm:$0xff]  }
 0x182   :  { %2850 = vmatprep.subr.bf16.mxu0 %v4324_v39  ;;  %2675 = vmatprep.mubr.bf16.mxu1 %v148_v42  ;;  %v136_v39 = vld [vmem:[#allocation2 + $0xa8] sm:$0xff] }
 0x183   :  { %2880 = vmatprep.mubr.bf16.mxu0 %v158_v43  ;;  %v4409_v42 = vld [vmem:[#allocation5 + $0xa00] ss:$8 sps:$4 sm:$0xff]   ;;  %v160_v43 = vpack.c.bf16 %v136_v39, %v136_v39 }
 0x184   :  { %2646 = vmatpush1.bf16.msra.mxu1 %v4319_v40  ;;  %v147_v40 = vpack.c.bf16 %v123_v36, %v123_v36  ;;  %v4481_v36 = vld [vmem:[#allocation5 + $0xb80] ss:$8 sps:$4 sm:$0xff]  }
 0x185   :  { %2851 = vmatpush1.bf16.msra.mxu0 %v4322_v41  ;;  %2647 = vmatprep.subr.bf16.mxu1 %v4327_v44  ;;  %v157_v41 = vpack.c.bf16 %v133_v37, %v133_v37  ;;  %v4414_v44 = vld [vmem:[#allocation5 + $0xa14] ss:$8 sps:$4 sm:$0xff]   ;;  %v4511_v37 = vld [vmem:[#allocation8 + $0x20] ss:$8 sps:$4 sm:$0xff]  }
 0x186   :  { %2852 = vmatprep.subr.bf16.mxu0 %v4330_v45  ;;  %v4412_v45 = vld [vmem:[#allocation5 + $0xa10] ss:$8 sps:$4 sm:$0xff]  }
 0x187   :  { %v4516_v39 = vld [vmem:[#allocation8 + $0x34] ss:$8 sps:$4 sm:$0xff]  }
 0x188   :  { %2648 = vmatpush1.bf16.msra.mxu1 %v4325_v46  ;;  %v4417_v46 = vld [vmem:[#allocation5 + $0xa24] ss:$8 sps:$4 sm:$0xff]  }
 0x189   :  { %2853 = vmatpush1.bf16.msra.mxu0 %v4328_v47  ;;  %2649 = vmatprep.subr.bf16.mxu1 %v4333_v48  ;;  %v4415_v47 = vld [vmem:[#allocation5 + $0xa20] ss:$8 sps:$4 sm:$0xff]   ;;  %v4420_v48 = vld [vmem:[#allocation5 + $0xa34] ss:$8 sps:$4 sm:$0xff]  }
 0x18a   :  { %2854 = vmatprep.subr.bf16.mxu0 %v4336_v49  ;;  %v4418_v49 = vld [vmem:[#allocation5 + $0xa30] ss:$8 sps:$4 sm:$0xff]  }
 0x18c   :  { %2650 = vmatpush1.bf16.msra.mxu1 %v4331_v50  ;;  %v4423_v50 = vld [vmem:[#allocation5 + $0xa44] ss:$8 sps:$4 sm:$0xff]  }
 0x18d   :  { %2855 = vmatpush1.bf16.msra.mxu0 %v4334_v51  ;;  %2651 = vmatprep.subr.bf16.mxu1 %v4339_v52  ;;  %v4421_v51 = vld [vmem:[#allocation5 + $0xa40] ss:$8 sps:$4 sm:$0xff]   ;;  %v4426_v52 = vld [vmem:[#allocation5 + $0xa54] ss:$8 sps:$4 sm:$0xff]  }
 0x18e   :  { %2856 = vmatprep.subr.bf16.mxu0 %v4342_v53  ;;  %v4424_v53 = vld [vmem:[#allocation5 + $0xa50] ss:$8 sps:$4 sm:$0xff]  }
 0x190   :  { %2652 = vmatpush1.bf16.msra.mxu1 %v4337_v54  ;;  %v4429_v54 = vld [vmem:[#allocation5 + $0xa64] ss:$8 sps:$4 sm:$0xff]  }
 0x191   :  { %2857 = vmatpush1.bf16.msra.mxu0 %v4340_v55  ;;  %2653 = vmatprep.subr.bf16.mxu1 %v4345_v56  ;;  %v4427_v55 = vld [vmem:[#allocation5 + $0xa60] ss:$8 sps:$4 sm:$0xff]   ;;  %v4432_v56 = vld [vmem:[#allocation5 + $0xa74] ss:$8 sps:$4 sm:$0xff]  }
 0x192   :  { %2858 = vmatprep.subr.bf16.mxu0 %v4348_v57  ;;  %v4430_v57 = vld [vmem:[#allocation5 + $0xa70] ss:$8 sps:$4 sm:$0xff]  }
 0x194   :  { %2654 = vmatpush1.bf16.msra.mxu1 %v4343_v58  ;;  %v4435_v58 = vld [vmem:[#allocation5 + $0xa84] ss:$8 sps:$4 sm:$0xff]  }
 0x195   :  { %2859 = vmatpush1.bf16.msra.mxu0 %v4346_v59  ;;  %2655 = vmatprep.subr.bf16.mxu1 %v4351_v60  ;;  %v4433_v59 = vld [vmem:[#allocation5 + $0xa80] ss:$8 sps:$4 sm:$0xff]   ;;  %v4438_v60 = vld [vmem:[#allocation5 + $0xa94] ss:$8 sps:$4 sm:$0xff]  }
 0x196   :  { %2860 = vmatprep.subr.bf16.mxu0 %v4354_v61  ;;  %v4436_v61 = vld [vmem:[#allocation5 + $0xa90] ss:$8 sps:$4 sm:$0xff]  }
 0x198   :  { %2656 = vmatpush1.bf16.msra.mxu1 %v4349_v62  ;;  %v4441_v62 = vld [vmem:[#allocation5 + $0xaa4] ss:$8 sps:$4 sm:$0xff]  }
 0x199   :  { %2861 = vmatpush1.bf16.msra.mxu0 %v4352_v63  ;;  %2657 = vmatprep.subr.bf16.mxu1 %v4357_v0  ;;  %v4439_v63 = vld [vmem:[#allocation5 + $0xaa0] ss:$8 sps:$4 sm:$0xff]   ;;  %v4444_v0 = vld [vmem:[#allocation5 + $0xab4] ss:$8 sps:$4 sm:$0xff]  }
 0x19a   :  { %2862 = vmatprep.subr.bf16.mxu0 %v4360_v1  ;;  %v4442_v1 = vld [vmem:[#allocation5 + $0xab0] ss:$8 sps:$4 sm:$0xff]  }
 0x19c   :  { %2658 = vmatpush1.bf16.msra.mxu1 %v4355_v2  ;;  %v4447_v2 = vld [vmem:[#allocation5 + $0xac4] ss:$8 sps:$4 sm:$0xff]  }
 0x19d   :  { %2863 = vmatpush1.bf16.msra.mxu0 %v4358_v3  ;;  %2659 = vmatprep.subr.bf16.mxu1 %v4363_v4  ;;  %v4445_v3 = vld [vmem:[#allocation5 + $0xac0] ss:$8 sps:$4 sm:$0xff]   ;;  %v4450_v4 = vld [vmem:[#allocation5 + $0xad4] ss:$8 sps:$4 sm:$0xff]  }
 0x19e   :  { %2864 = vmatprep.subr.bf16.mxu0 %v4366_v5  ;;  %v4448_v5 = vld [vmem:[#allocation5 + $0xad0] ss:$8 sps:$4 sm:$0xff]  }
 0x1a0   :  { %2660 = vmatpush1.bf16.msra.mxu1 %v4361_v6  ;;  %v4453_v6 = vld [vmem:[#allocation5 + $0xae4] ss:$8 sps:$4 sm:$0xff]  }
 0x1a1   :  { %2865 = vmatpush1.bf16.msra.mxu0 %v4364_v7  ;;  %2661 = vmatprep.subr.bf16.mxu1 %v4369_v8  ;;  %v4451_v7 = vld [vmem:[#allocation5 + $0xae0] ss:$8 sps:$4 sm:$0xff]   ;;  %v4456_v8 = vld [vmem:[#allocation5 + $0xaf4] ss:$8 sps:$4 sm:$0xff]  }
 0x1a2   :  { %2866 = vmatprep.subr.bf16.mxu0 %v4372_v9  ;;  %v4454_v9 = vld [vmem:[#allocation5 + $0xaf0] ss:$8 sps:$4 sm:$0xff]  }
 0x1a4   :  { %2662 = vmatpush1.bf16.msra.mxu1 %v4367_v10  ;;  %v135_v10 = vld [vmem:[#allocation2 + $0xa0] sm:$0xff] }
 0x1a5   :  { %2867 = vmatpush1.bf16.msra.mxu0 %v4370_v11  ;;  %2663 = vmatprep.subr.bf16.mxu1 %v4375_v12  ;;  %v4459_v11 = vld [vmem:[#allocation5 + $0xb04] ss:$8 sps:$4 sm:$0xff]   ;;  %v138_v12 = vld [vmem:[#allocation2 + $0xb8] sm:$0xff] }
 0x1a6   :  { %2868 = vmatprep.subr.bf16.mxu0 %v4378_v13  ;;  %v159_v13 = vpack.c.bf16 %v135_v10, %v135_v10 }
 0x1a8   :  { %2664 = vmatpush1.bf16.msra.mxu1 %v4373_v14  ;;  %v4457_v14 = vld [vmem:[#allocation5 + $0xb00] ss:$8 sps:$4 sm:$0xff]  }
 0x1a9   :  { %2869 = vmatpush1.bf16.msra.mxu0 %v4376_v15  ;;  %2665 = vmatprep.subr.bf16.mxu1 %v4381_v16  ;;  %v162_v15 = vpack.c.bf16 %v138_v12, %v138_v12  ;;  %v4462_v16 = vld [vmem:[#allocation5 + $0xb14] ss:$8 sps:$4 sm:$0xff]  }
 0x1aa   :  { %2870 = vmatprep.subr.bf16.mxu0 %v4384_v17  ;;  %v4460_v17 = vld [vmem:[#allocation5 + $0xb10] ss:$8 sps:$4 sm:$0xff]  }
 0x1ac   :  { %2666 = vmatpush1.bf16.msra.mxu1 %v4379_v18  ;;  %v4465_v18 = vld [vmem:[#allocation5 + $0xb24] ss:$8 sps:$4 sm:$0xff]  }
 0x1ad   :  { %2871 = vmatpush1.bf16.msra.mxu0 %v4382_v19  ;;  %2667 = vmatprep.subr.bf16.mxu1 %v4387_v20  ;;  %v4463_v19 = vld [vmem:[#allocation5 + $0xb20] ss:$8 sps:$4 sm:$0xff]   ;;  %v4468_v20 = vld [vmem:[#allocation5 + $0xb34] ss:$8 sps:$4 sm:$0xff]  }
 0x1ae   :  { %2872 = vmatprep.subr.bf16.mxu0 %v4390_v21  ;;  %v4466_v21 = vld [vmem:[#allocation5 + $0xb30] ss:$8 sps:$4 sm:$0xff]  }
 0x1b0   :  { %2668 = vmatpush1.bf16.msra.mxu1 %v4385_v22  ;;  %v4471_v22 = vld [vmem:[#allocation5 + $0xb44] ss:$8 sps:$4 sm:$0xff]  }
 0x1b1   :  { %2873 = vmatpush1.bf16.msra.mxu0 %v4388_v23  ;;  %2669 = vmatprep.subr.bf16.mxu1 %v4393_v24  ;;  %v4469_v23 = vld [vmem:[#allocation5 + $0xb40] ss:$8 sps:$4 sm:$0xff]   ;;  %v4474_v24 = vld [vmem:[#allocation5 + $0xb54] ss:$8 sps:$4 sm:$0xff]  }
 0x1b2   :  { %2874 = vmatprep.subr.bf16.mxu0 %v4396_v25  ;;  %v4472_v25 = vld [vmem:[#allocation5 + $0xb50] ss:$8 sps:$4 sm:$0xff]  }
 0x1b4   :  { %2670 = vmatpush1.bf16.msra.mxu1 %v4391_v26  ;;  %v4477_v26 = vld [vmem:[#allocation5 + $0xb64] ss:$8 sps:$4 sm:$0xff]  }
 0x1b5   :  { %2875 = vmatpush1.bf16.msra.mxu0 %v4394_v27  ;;  %2671 = vmatprep.subr.bf16.mxu1 %v4399_v28  ;;  %v4475_v27 = vld [vmem:[#allocation5 + $0xb60] ss:$8 sps:$4 sm:$0xff]   ;;  %v4480_v28 = vld [vmem:[#allocation5 + $0xb74] ss:$8 sps:$4 sm:$0xff]  }
 0x1b6   :  { %2876 = vmatprep.subr.bf16.mxu0 %v4402_v29  ;;  %v4505_v29 = vld [vmem:[#allocation8] ss:$8 sps:$4 sm:$0xff]  }
 0x1b8   :  { %2672 = vmatpush1.bf16.msra.mxu1 %v4397_v30  ;;  %v4507_v30 = vld [vmem:[#allocation8 + $0x4] ss:$8 sps:$4 sm:$0xff]  }
 0x1b9   :  { %2877 = vmatpush1.bf16.msra.mxu0 %v4400_v31  ;;  %2673 = vmatprep.subr.bf16.mxu1 %v4405_v32  ;;  %v4510_v31 = vld [vmem:[#allocation8 + $0x14] ss:$8 sps:$4 sm:$0xff]  }
 0x1ba   :  { %2878 = vmatprep.subr.bf16.mxu0 %v4408_v33  ;;  %v4478_v32 = vld [vmem:[#allocation5 + $0xb70] ss:$8 sps:$4 sm:$0xff]  }
 0x1bb   :  { %v4508_v33 = vld [vmem:[#allocation8 + $0x10] ss:$8 sps:$4 sm:$0xff]  }
 0x1bc   :  { %2674 = vmatpush1.bf16.msra.mxu1 %v4403_v34  ;;  %v4483_v34 = vld [vmem:[#allocation5 + $0xb84] ss:$8 sps:$4 sm:$0xff]  }
 0x1bd   :  { %2879 = vmatpush1.bf16.msra.mxu0 %v4406_v35  ;;  %3179 = vmatprep.subr.bf16.mxu1 %v4507_v30  ;;  %v4513_v35 = vld [vmem:[#allocation8 + $0x24] ss:$8 sps:$4 sm:$0xff]  }
 0x1be   :  { %2889 = vmatprep.subr.bf16.mxu0 %v4411_v38  ;;  %v4486_v38 = vld [vmem:[#allocation5 + $0xb94] ss:$8 sps:$4 sm:$0xff]  }
 0x1bf   :  { %2676 = vmatmul.mubr.bf16.vlgmr.msra.gmra.mrb[0].mxu1 %v147_v40  ;;  %v4484_v40 = vld [vmem:[#allocation5 + $0xb90] ss:$8 sps:$4 sm:$0xff]  }
 0x1c0   :  { %2881 = vmatmul.mubr.bf16.vlgmr.msra.gmra.mrb[0].mxu0 %v157_v41  ;;  %3180 = vmatpush1.bf16.msra.mxu1 %v4505_v29  ;;  %v4514_v41 = vld [vmem:[#allocation8 + $0x30] ss:$8 sps:$4 sm:$0xff]  }
 0x1c1   :  { %2890 = vmatpush1.bf16.msra.mxu0 %v4409_v42  ;;  %2921 = vmatprep.mubr.bf16.mxu0 %v160_v43  ;;  %v4489_v42 = vld [vmem:[#allocation5 + $0xba4] ss:$8 sps:$4 sm:$0xff]  }
 0x1c2   :  { %2891 = vmatprep.subr.bf16.mxu0 %v4414_v44  ;;  %3181 = vmatprep.subr.bf16.mxu1 %v4510_v31  ;;  %v4519_v43 = vld [vmem:[#allocation8 + $0x44] ss:$8 sps:$4 sm:$0xff]  }
 0x1c3   :  { %v4487_v44 = vld [vmem:[#allocation5 + $0xba0] ss:$8 sps:$4 sm:$0xff]  }
 0x1c4   :  { %3182 = vmatpush1.bf16.msra.mxu1 %v4508_v33 }
 0x1c5   :  { %2892 = vmatpush1.bf16.msra.mxu0 %v4412_v45  ;;  %3183 = vmatprep.subr.bf16.mxu1 %v4513_v35  ;;  %v4517_v45 = vld [vmem:[#allocation8 + $0x40] ss:$8 sps:$4 sm:$0xff]  }
 0x1c6   :  { %2893 = vmatprep.subr.bf16.mxu0 %v4417_v46  ;;  %v4492_v46 = vld [vmem:[#allocation5 + $0xbb4] ss:$8 sps:$4 sm:$0xff]  }
 0x1c8   :  { %3184 = vmatpush1.bf16.msra.mxu1 %v4511_v37 }
 0x1c9   :  { %2894 = vmatpush1.bf16.msra.mxu0 %v4415_v47  ;;  %3185 = vmatprep.subr.bf16.mxu1 %v4516_v39  ;;  %v4522_v47 = vld [vmem:[#allocation8 + $0x54] ss:$8 sps:$4 sm:$0xff]   ;;  %v4554_v39 = vld [vmem:[#allocation11] sm:$0xff]  }
 0x1ca   :  { %2895 = vmatprep.subr.bf16.mxu0 %v4420_v48  ;;  %v4490_v48 = vld [vmem:[#allocation5 + $0xbb0] ss:$8 sps:$4 sm:$0xff]  }
 0x1cc   :  { %3186 = vmatpush1.bf16.msra.mxu1 %v4514_v41  ;;  %v4555_v41 = vld [vmem:[#allocation11 + $0x48] sm:$0xff]  }
 0x1cd   :  { %2896 = vmatpush1.bf16.msra.mxu0 %v4418_v49  ;;  %3187 = vmatprep.subr.bf16.mxu1 %v4519_v43  ;;  %v4520_v49 = vld [vmem:[#allocation8 + $0x50] ss:$8 sps:$4 sm:$0xff]  }
 0x1ce   :  { %2897 = vmatprep.subr.bf16.mxu0 %v4423_v50  ;;  %v4495_v50 = vld [vmem:[#allocation5 + $0xbc4] ss:$8 sps:$4 sm:$0xff]   ;;  %v4557_v43 = vld [vmem:[#allocation11 + $0x50] sm:$0xff]  }
 0x1d0   :  { %3188 = vmatpush1.bf16.msra.mxu1 %v4517_v45  ;;  %v4559_v45 = vld [vmem:[#allocation11 + $0x58] sm:$0xff]  }
 0x1d1   :  { %2898 = vmatpush1.bf16.msra.mxu0 %v4421_v51  ;;  %3189 = vmatprep.subr.bf16.mxu1 %v4522_v47  ;;  %v4525_v51 = vld [vmem:[#allocation8 + $0x64] ss:$8 sps:$4 sm:$0xff]  }
 0x1d2   :  { %2899 = vmatprep.subr.bf16.mxu0 %v4426_v52  ;;  %v4493_v52 = vld [vmem:[#allocation5 + $0xbc0] ss:$8 sps:$4 sm:$0xff]  }
 0x1d3   :  { %v4561_v47 = vld [vmem:[#allocation11 + $0x60] sm:$0xff]  }
 0x1d4   :  { %3190 = vmatpush1.bf16.msra.mxu1 %v4520_v49  ;;  %v4563_v49 = vld [vmem:[#allocation11 + $0x68] sm:$0xff]  }
 0x1d5   :  { %2900 = vmatpush1.bf16.msra.mxu0 %v4424_v53  ;;  %v4523_v53 = vld [vmem:[#allocation8 + $0x60] ss:$8 sps:$4 sm:$0xff]   ;;  %3191 = vmatprep.subr.bf16.mxu1 %v4525_v51  ;;  %v4565_v51 = vld [vmem:[#allocation11 + $0x70] sm:$0xff]  }
 0x1d6   :  { %2901 = vmatprep.subr.bf16.mxu0 %v4429_v54  ;;  %v4498_v54 = vld [vmem:[#allocation5 + $0xbd4] ss:$8 sps:$4 sm:$0xff]  }
 0x1d8   :  { %3192 = vmatpush1.bf16.msra.mxu1 %v4523_v53  ;;  %v4567_v53 = vld [vmem:[#allocation11 + $0x78] sm:$0xff]  }
 0x1d9   :  { %2902 = vmatpush1.bf16.msra.mxu0 %v4427_v55  ;;  %v4528_v55 = vld [vmem:[#allocation8 + $0x74] ss:$8 sps:$4 sm:$0xff]  }
 0x1da   :  { %2903 = vmatprep.subr.bf16.mxu0 %v4432_v56  ;;  %v4496_v56 = vld [vmem:[#allocation5 + $0xbd0] ss:$8 sps:$4 sm:$0xff]   ;;  %3193 = vmatprep.subr.bf16.mxu1 %v4528_v55  ;;  %v3007_v55 = vld [vmem:[#allocation10] sm:$0x3] }
 0x1dd   :  { %2904 = vmatpush1.bf16.msra.mxu0 %v4430_v57  ;;  %v4526_v57 = vld [vmem:[#allocation8 + $0x70] ss:$8 sps:$4 sm:$0xff]  }
 0x1de   :  { %2905 = vmatprep.subr.bf16.mxu0 %v4435_v58  ;;  %v4501_v58 = vld [vmem:[#allocation5 + $0xbe4] ss:$8 sps:$4 sm:$0xff]   ;;  %3194 = vmatpush1.bf16.msra.mxu1 %v4526_v57 }
 0x1e1   :  { %2906 = vmatpush1.bf16.msra.mxu0 %v4433_v59  ;;  %v4531_v59 = vld [vmem:[#allocation8 + $0x84] ss:$8 sps:$4 sm:$0xff]  }
 0x1e2   :  { %2907 = vmatprep.subr.bf16.mxu0 %v4438_v60  ;;  %v4499_v60 = vld [vmem:[#allocation5 + $0xbe0] ss:$8 sps:$4 sm:$0xff]   ;;  %3195 = vmatprep.subr.bf16.mxu1 %v4531_v59 }
 0x1e5   :  { %2908 = vmatpush1.bf16.msra.mxu0 %v4436_v61  ;;  %v4529_v61 = vld [vmem:[#allocation8 + $0x80] ss:$8 sps:$4 sm:$0xff]  }
 0x1e6   :  { %2909 = vmatprep.subr.bf16.mxu0 %v4441_v62  ;;  %v4504_v62 = vld [vmem:[#allocation5 + $0xbf4] ss:$8 sps:$4 sm:$0xff]   ;;  %3196 = vmatpush1.bf16.msra.mxu1 %v4529_v61 }
 0x1e9   :  { %2910 = vmatpush1.bf16.msra.mxu0 %v4439_v63  ;;  %v4534_v63 = vld [vmem:[#allocation8 + $0x94] ss:$8 sps:$4 sm:$0xff]  }
 0x1ea   :  { %2911 = vmatprep.subr.bf16.mxu0 %v4444_v0  ;;  %v4502_v0 = vld [vmem:[#allocation5 + $0xbf0] ss:$8 sps:$4 sm:$0xff]   ;;  %3197 = vmatprep.subr.bf16.mxu1 %v4534_v63 }
 0x1ed   :  { %2912 = vmatpush1.bf16.msra.mxu0 %v4442_v1  ;;  %v137_v1 = vld [vmem:[#allocation2 + $0xb0] sm:$0xff] }
 0x1ee   :  { %2913 = vmatprep.subr.bf16.mxu0 %v4447_v2  ;;  %v4532_v2 = vld [vmem:[#allocation8 + $0x90] ss:$8 sps:$4 sm:$0xff]  }
 0x1ef   :  { %3198 = vmatpush1.bf16.msra.mxu1 %v4532_v2 }
 0x1f1   :  { %2914 = vmatpush1.bf16.msra.mxu0 %v4445_v3  ;;  %v4537_v3 = vld [vmem:[#allocation8 + $0xa4] ss:$8 sps:$4 sm:$0xff]  }
 0x1f2   :  { %2915 = vmatprep.subr.bf16.mxu0 %v4450_v4  ;;  %v161_v4 = vpack.c.bf16 %v137_v1, %v137_v1  ;;  %3199 = vmatprep.subr.bf16.mxu1 %v4537_v3 }
 0x1f5   :  { %2916 = vmatpush1.bf16.msra.mxu0 %v4448_v5  ;;  %v4535_v5 = vld [vmem:[#allocation8 + $0xa0] ss:$8 sps:$4 sm:$0xff]  }
 0x1f6   :  { %2917 = vmatprep.subr.bf16.mxu0 %v4453_v6  ;;  %v4540_v6 = vld [vmem:[#allocation8 + $0xb4] ss:$8 sps:$4 sm:$0xff]   ;;  %3200 = vmatpush1.bf16.msra.mxu1 %v4535_v5  ;;  %v3834_v5 = vld [vmem:[#allocation13] ss:$0 sm:$0xff] }
 0x1f7   :  { %3201 = vmatprep.subr.bf16.mxu1 %v4540_v6 }
 0x1f9   :  { %2918 = vmatpush1.bf16.msra.mxu0 %v4451_v7  ;;  %v4538_v7 = vld [vmem:[#allocation8 + $0xb0] ss:$8 sps:$4 sm:$0xff]  }
 0x1fa   :  { %2919 = vmatprep.subr.bf16.mxu0 %v4456_v8  ;;  %3202 = vmatpush1.bf16.msra.mxu1 %v4538_v7 }
 0x1fd   :  { %2920 = vmatpush1.bf16.msra.mxu0 %v4454_v9  ;;  %v4543_v9 = vld [vmem:[#allocation8 + $0xc4] ss:$8 sps:$4 sm:$0xff]  }
 0x1fe   :  { %2930 = vmatprep.subr.bf16.mxu0 %v4459_v11  ;;  %v4541_v11 = vld [vmem:[#allocation8 + $0xc0] ss:$8 sps:$4 sm:$0xff]   ;;  %3203 = vmatprep.subr.bf16.mxu1 %v4543_v9 }
 0x1ff   :  { %3204 = vmatpush1.bf16.msra.mxu1 %v4541_v11 }
 0x200   :  { %2922 = vmatmul.mubr.bf16.vlgmr.msra.gmra.mrb[0].mxu0 %v159_v13 }
 0x201   :  { %2931 = vmatpush1.bf16.msra.mxu0 %v4457_v14  ;;  %2962 = vmatprep.mubr.bf16.mxu0 %v162_v15  ;;  %v4546_v14 = vld [vmem:[#allocation8 + $0xd4] ss:$8 sps:$4 sm:$0xff]   ;;  %v4544_v15 = vld [vmem:[#allocation8 + $0xd0] ss:$8 sps:$4 sm:$0xff]  }
 0x202   :  { %2932 = vmatprep.subr.bf16.mxu0 %v4462_v16  ;;  %3205 = vmatprep.subr.bf16.mxu1 %v4546_v14  ;;  %v4549_v16 = vld [vmem:[#allocation8 + $0xe4] ss:$8 sps:$4 sm:$0xff]  }
 0x203   :  { %3206 = vmatpush1.bf16.msra.mxu1 %v4544_v15 }
 0x204   :  { %3207 = vmatprep.subr.bf16.mxu1 %v4549_v16 }
 0x205   :  { %2933 = vmatpush1.bf16.msra.mxu0 %v4460_v17  ;;  %v4547_v17 = vld [vmem:[#allocation8 + $0xe0] ss:$8 sps:$4 sm:$0xff]  }
 0x206   :  { %2934 = vmatprep.subr.bf16.mxu0 %v4465_v18  ;;  %v4552_v18 = vld [vmem:[#allocation8 + $0xf4] ss:$8 sps:$4 sm:$0xff]  }
 0x207   :  { %3208 = vmatpush1.bf16.msra.mxu1 %v4547_v17 }
 0x208   :  { %3209 = vmatprep.subr.bf16.mxu1 %v4552_v18 }
 0x209   :  { %2935 = vmatpush1.bf16.msra.mxu0 %v4463_v19  ;;  %v4550_v19 = vld [vmem:[#allocation8 + $0xf0] ss:$8 sps:$4 sm:$0xff]  }
 0x20a   :  { %2936 = vmatprep.subr.bf16.mxu0 %v4468_v20  ;;  %v4553_v20 = vld [vmem:[#allocation11 + $0x40] sm:$0xff]  }
 0x20b   :  { %3210 = vmatpush1.bf16.msra.mxu1 %v4550_v19 }
 0x20c   :  { %3851 = vmatprep.subr.bf16.mxu1 %v4553_v20 }
 0x20d   :  { %2937 = vmatpush1.bf16.msra.mxu0 %v4466_v21  ;;  %v549_v21 = vlaneseq }
 0x20e   :  { %2938 = vmatprep.subr.bf16.mxu0 %v4471_v22 }
 0x20f   :  { %v550_v22 = vshrl.u32 %v549_v21, 7 }
 0x211   :  { %2939 = vmatpush1.bf16.msra.mxu0 %v4469_v23  ;;  %v551_v23 = vsub.s32 0, %v550_v22 }
 0x212   :  { %2940 = vmatprep.subr.bf16.mxu0 %v4474_v24  ;;  %v547_v24 = vld [vmem:[#allocation7] sm:$0x3] }
 0x215   :  { %2941 = vmatpush1.bf16.msra.mxu0 %v4472_v25  ;;  %v555_v25 = vsub.s32 1, %v550_v22 }
 0x216   :  { %2942 = vmatprep.subr.bf16.mxu0 %v4477_v26  ;;  %v552_v26 = vrot.slane %v547_v24, %v551_v23 }
 0x217   :  { %v3016_v57 = vrot.slane %v3007_v55, %v555_v25 }
 0x219   :  { %2943 = vmatpush1.bf16.msra.mxu0 %v4475_v27  ;;  %v556_v27 = vrot.slane %v547_v24, %v555_v25 }
 0x21a   :  { %2944 = vmatprep.subr.bf16.mxu0 %v4480_v28 }
 0x21d   :  { %2945 = vmatpush1.bf16.msra.mxu0 %v4478_v32 }
 0x21e   :  { %2946 = vmatprep.subr.bf16.mxu0 %v4483_v34 }
 0x221   :  { %2947 = vmatpush1.bf16.msra.mxu0 %v4481_v36 }
 0x222   :  { %2948 = vmatprep.subr.bf16.mxu0 %v4486_v38 }
 0x225   :  { %2949 = vmatpush1.bf16.msra.mxu0 %v4484_v40 }
 0x226   :  { %2950 = vmatprep.subr.bf16.mxu0 %v4489_v42  ;;  %v4556_v42 = vld [vmem:[#allocation11 + $0x8] sm:$0xff]  }
 0x229   :  { %2951 = vmatpush1.bf16.msra.mxu0 %v4487_v44  ;;  %v4558_v44 = vld [vmem:[#allocation11 + $0x10] sm:$0xff]  }
 0x22a   :  { %2952 = vmatprep.subr.bf16.mxu0 %v4492_v46  ;;  %v4560_v46 = vld [vmem:[#allocation11 + $0x18] sm:$0xff]  }
 0x22d   :  { %2953 = vmatpush1.bf16.msra.mxu0 %v4490_v48  ;;  %v4562_v48 = vld [vmem:[#allocation11 + $0x20] sm:$0xff]  }
 0x22e   :  { %2954 = vmatprep.subr.bf16.mxu0 %v4495_v50  ;;  %v4564_v50 = vld [vmem:[#allocation11 + $0x28] sm:$0xff]  }
 0x231   :  { %2955 = vmatpush1.bf16.msra.mxu0 %v4493_v52  ;;  %v4566_v52 = vld [vmem:[#allocation11 + $0x30] sm:$0xff]  }
 0x232   :  { %2956 = vmatprep.subr.bf16.mxu0 %v4498_v54  ;;  %v4568_v54 = vld [vmem:[#allocation11 + $0x38] sm:$0xff]  }
 0x235   :  { %2957 = vmatpush1.bf16.msra.mxu0 %v4496_v56  ;;  %v3012_v56 = vrot.slane %v3007_v55, %v551_v23 }
 0x236   :  { %2958 = vmatprep.subr.bf16.mxu0 %v4501_v58 }
 0x239   :  { %2959 = vmatpush1.bf16.msra.mxu0 %v4499_v60 }
 0x23a   :  { %2960 = vmatprep.subr.bf16.mxu0 %v4504_v62 }
 0x23d   :  { %2961 = vmatpush1.bf16.msra.mxu0 %v4502_v0 }
 0x240   :  { %2963 = vmatmul.mubr.bf16.vlgmr.msra.gmra.mrb[0].mxu0 %v161_v4 }
 0x292   :  { %v2677_v8 = vpop.f32.mrb[0].mxu1 }
 0x293   :  { %v2679_v10 = vpop.f32.mrb[1].mxu1  ;;  %v3873_v28 = vadd.f32 %v2677_v8, %v552_v26 }
 0x294   :  { %v2681_v12 = vpop.f32.mrb[2].mxu1  ;;  %v3875_v29 = vadd.f32 %v2679_v10, %v556_v27 }
 0x295   :  { %v2682_v13 = vpop.f32.mrb[3].mxu1 }
 0x313   :  { %v2964_v30 = vpop.f32.mrb[0].mxu0 }
 0x314   :  { %v3874_v31 = vadd.f32 %v3873_v28, %v2964_v30  ;;  %v2966_v32 = vpop.f32.mrb[1].mxu0 }
 0x315   :  { %v3876_v33 = vadd.f32 %v3875_v29, %v2966_v32  ;;  %v2968_v34 = vpop.f32.mrb[2].mxu0 }
 0x316   :  { %4569 = vtanh.f32 %v3874_v31  ;;  %v2969_v35 = vpop.f32.mrb[3].mxu0 }
 0x317   :  { %4571 = vtanh.f32 %v3876_v33 }
 0x320   :  { %v4570_v36 = vpop.eup %4569 }
 0x321   :  { %v4572_v37 = vpop.eup %4571  ;;  %v2973_v40 = vpack.c.bf16 %v4570_v36, %v4570_v36 }
 0x322   :  { %v2974_v38 = vpack.c.bf16 %v4572_v37, %v4572_v37 }
 0x324   :  { %3211 = vmatprep.mubr.bf16.mxu1 %v2974_v38 }
 0x325   :  { %3212 = vmatmul.mubr.bf16.vlgmr.msra.gmra.mrb[4].mxu1 %v2973_v40 }
 0x326   :  { %3852 = vmatpush3.bf16.msra.mxu1 %v4554_v39 }
 0x327   :  { %3853 = vmatprep.subr.bf16.mxu1 %v4555_v41 }
 0x32a   :  { %3854 = vmatpush3.bf16.msra.mxu1 %v4556_v42 }
 0x32b   :  { %3855 = vmatprep.subr.bf16.mxu1 %v4557_v43 }
 0x32e   :  { %3856 = vmatpush3.bf16.msra.mxu1 %v4558_v44 }
 0x32f   :  { %3857 = vmatprep.subr.bf16.mxu1 %v4559_v45 }
 0x332   :  { %3858 = vmatpush3.bf16.msra.mxu1 %v4560_v46 }
 0x333   :  { %3859 = vmatprep.subr.bf16.mxu1 %v4561_v47 }
 0x336   :  { %3860 = vmatpush3.bf16.msra.mxu1 %v4562_v48 }
 0x337   :  { %3861 = vmatprep.subr.bf16.mxu1 %v4563_v49 }
 0x33a   :  { %3862 = vmatpush3.bf16.msra.mxu1 %v4564_v50 }
 0x33b   :  { %3863 = vmatprep.subr.bf16.mxu1 %v4565_v51 }
 0x33e   :  { %3864 = vmatpush3.bf16.msra.mxu1 %v4566_v52 }
 0x33f   :  { %3865 = vmatprep.subr.bf16.mxu1 %v4567_v53 }
 0x342   :  { %3866 = vmatpush3.bf16.msra.mxu1 %v4568_v54 }
 0x3f8   :  { %v3213_v58 = vpop.f32.mrb[4].mxu1 }
 0x3f9   :  { %v3214_v59 = vadd.f32 %v3213_v58, %v3012_v56  ;;  %v3215_v60 = vpop.f32.mrb[5].mxu1 }
 0x3fa   :  { %v3216_v61 = vadd.f32 %v3215_v60, %v3016_v57  ;;  %v3217_v62 = vpop.f32.mrb[6].mxu1 }
 0x3fb   :  { %4573 = vtanh.f32 %v3214_v59  ;;  %v3218_v63 = vpop.f32.mrb[7].mxu1 }
 0x3fc   :  { %4575 = vtanh.f32 %v3216_v61 }
 0x405   :  { %v4574_v0 = vpop.eup %4573 }
 0x406   :  { %v4576_v1 = vpop.eup %4575  ;;  %v3222_v3 = vpack.c.bf16 %v4574_v0, %v4574_v0 }
 0x407   :  { %v3223_v2 = vpack.c.bf16 %v4576_v1, %v4576_v1 }
 0x409   :  { %3391 = vmatprep.mubr.bf16.mxu1 %v3223_v2 }
 0x40a   :  { %3392 = vmatmul.mubr.bf16.vlgmr.msra.gmra.mrb[8].mxu1 %v3222_v3 }
 0x4dd   :  { %v3867_v4 = vpop.f32.mrb[8].mxu1 }
 0x4de   :  { %v3868_v6 = vpop.f32.mrb[9].mxu1 }
 0x4df   :  { %v3869_v7 = vadd.f32 %v3868_v6, %v3867_v4  ;;  %v3870_v8 = vpop.f32.mrb[10].mxu1 }
 0x4e0   :  { %v3871_v9 = vpop.f32.mrb[11].mxu1 }
 0x4e1   :  { %v3394_v10 = vadd.f32 %v3869_v7, %v3834_v5 }
 0x4e3   :  { %3399 = vst [vmem:[#allocation14] sm:$0xff] %v3394_v10 }
 0x4e4   :  { %4742 = shalt.err (!%p4739_p4)
}
 0x4e5   :  { %s4743_s11 = scalar_lea.hbm %s4918_s7, 128 }
 0x4e6   :  { %p4744_p5 = scmp.ne.s32.totalorder %s4918_s7, %s4743_s11  ;;  %p4747_p6 = scmp.lt.u32.totalorder %s4743_s11, %s4918_s7 }
 0x4e8   :  { %p4749_p7 = pnand %p4747_p6, %p4744_p5 }
 0x4ea   :  { %4752 = shalt.err (!%p4749_p7)
}
 0x4eb   :  { %3409 = dma.vmem_to_hbm [thread:$0]  %s3407_s13, 128, %s4918_s7, [#allocation4]  }
 0x4ec   :  { %4761 = dma.done.wait [#allocation4], 128  }
 0x4ed   :  { %4762 = vsyncadd [#allocation4], 4294967168 }
 0x4ee   :  { %3413 = vsyncpa [#allocation3], 1 }
 0x4ef   :  { %3414 = vsyncpa [#allocation6], 1 }
 0x4f0   :  { %3415 = vsyncpa [#allocation9], 1 }
 0x4f1   :  { %3416 = vsyncpa [#allocation12], 1 }
 0x4f2   :  { %3417 = vsyncpa [#allocation4], 1 }

</bundles_post_ra>
